<compile_context>
chip_gen: v7x
topology: tpu7x:2x2x1
jax: 0.10.0
libtpu: 0.0.40
codegen_flags: <defaults>
</compile_context>

<pallas_src>
from functools import partial

import numpy as np
import jax
import jax.numpy as jnp
from jax.experimental import pallas as pl
from jax.experimental.pallas import tpu as pltpu


def get_label_list():
    return ['clouds', 'bridge', 'sports', 'protest', 'rocks', 'nighttime', 'surf', 'leaf',
            'beach', 'sky', 'toy', 'sand', 'tiger', 'railroad', 'flowers', 'fire', 'snow',
            'garden', 'sun', 'food', 'tower', 'elk', 'street', 'train', 'running', 'fox',
            'military', 'moon', 'fish', 'map', 'town', 'water', 'sunset', 'temple', 'bear',
            'tree', 'cityscape', 'book', 'sign', 'house', 'vehicle', 'police', 'buildings',
            'boats', 'cars', 'tattoo', 'rainbow', 'waterfall', 'earthquake', 'cow', 'horses',
            'glacier', 'plants', 'animal', 'whales', 'plane', 'swimmers', 'window', 'person',
            'cat', 'wedding', 'statue', 'harbor', 'mountain', 'birds', 'valley', 'flags',
            'road', 'dancing', 'frost', 'castle', 'dog', 'ocean', 'grass', 'computer',
            'zebra', 'reflection', 'coral', 'lake', 'soccer', 'airport']


PATCH = 32            # ViT-B/32 patch size
RESIZE = 224          # F.interpolate target
WIDTH = 256           # synthetic ViT width (real ViT-B/32 = 768)
FEAT_DIM = 128        # synthetic CLIP embedding dim (real = 512)
N_PAD = 128           # label axis padded to one full 128-lane row (80 real labels)
N_LABELS = len(get_label_list())
K_POS_PAD = 8         # fixed row padding of the positive-label masks (avoids retraces)
TOP_K = 7             # the PyTorch original hard-codes top_k = 7
TK_CAP = 16384        # K-tile rows; 2 int8 buffers + f32 dequant temp stay well under VMEM


def _round_up(x, m):
    return (x + m - 1) // m * m


def _choose_tiling(k_total):
    """Pick (k_pad, tk): tk multiple of 128, k_pad multiple of tk."""
    k_pad = _round_up(k_total, 128)
    if k_pad <= TK_CAP:
        return k_pad, k_pad
    return _round_up(k_total, TK_CAP), TK_CAP


def _vmem_limit_bytes(tk):
    w_int8 = 2 * tk * FEAT_DIM           # double-buffered int8 weight tiles
    w_f32 = tk * FEAT_DIM * 4            # dequantized matmul operand temporary
    x_buf = 2 * tk * 4                   # double-buffered image row tiles
    misc = 6 << 20                       # txt/pos/out/acc + spill headroom
    return int(min(max(w_int8 + w_f32 + x_buf + misc, 16 << 20), 48 << 20))


# ---------------- fused, K-tiled Pallas kernel ----------------

def _clip_fused_kernel(x_ref, w_ref, scale_ref, bias_ref, txt_ref, pos_ref, negk_ref,
                       out_ref, acc_ref):
    k = pl.program_id(0)

    @pl.when(k == 0)
    def _init():
        acc_ref[...] = jnp.zeros_like(acc_ref)

    # 1) preprocess this K-tile: (image/2 + 0.5).clamp(0, 1).  The (x-MEAN)/STD affine is
    #    folded into the weight rows (1/STD) and the bias (MEAN/STD @ W) at init.
    x = jnp.clip(x_ref[...] * 0.5 + 0.5, 0.0, 1.0)                       # (1, TK) f32

    # 2) streamed encode GEMV: int8 weight tile dequantized on the fly (per-column scale
    #    applied once in the epilogue), f32 MXU accumulate into resident scratch.
    w = w_ref[...].astype(jnp.float32)                                    # (TK, D)
    acc_ref[...] += jnp.dot(x, w, preferred_element_type=jnp.float32)     # (1, D)

    @pl.when(k == pl.num_programs(0) - 1)
    def _epilogue():
        # dequant + bias fold
        emb = acc_ref[...] * scale_ref[...] - bias_ref[...]                # (1, D) f32
        # cosine similarity * exp(logit_scale): image feature normalized with rsqrt (EUP),
        # text features pre-normalized + pre-scaled, stored (D, N_PAD).
        img_n = emb * jax.lax.rsqrt(jnp.sum(emb * emb, axis=1, keepdims=True) + 1e-12)
        logits = jnp.dot(img_n, txt_ref[...], preferred_element_type=jnp.float32)  # (1, N_PAD)

        # grouping softmax: for each true label k, softmax over {that positive} U {all
        # non-true labels}; positive prob scattered, negative probs accumulated / K.
        pos = pos_ref[...]                                  # (K_POS_PAD, N_PAD), 0-padded rows
        negk = negk_ref[...]                                # (1, N_PAD) = neg_mask / K
        rowvalid = jnp.sum(pos, axis=1, keepdims=True)      # 1 for real rows, 0 for padding
        mask = pos + rowvalid * negk                        # >0 where active; pad rows all 0
        ml = jnp.where(mask > 0, logits, jnp.float32(-1e30))
        m = jnp.max(ml, axis=1, keepdims=True)
        e = jnp.where(mask > 0, jnp.exp(ml - m), jnp.float32(0.0))
        denom = jnp.maximum(jnp.sum(e, axis=1, keepdims=True), jnp.float32(1e-30))
        p = e / denom                                       # pad rows -> exactly 0
        out_ref[...] = (jnp.sum(pos * p, axis=0, keepdims=True)
                        + negk * jnp.sum(p, axis=0, keepdims=True))        # (1, N_PAD)


@partial(jax.jit, static_argnames=("tk",))
def _clip_forward_device(image, w_q, scale, bias, txt_t, pos, negk, *, tk):
    b, c, h, w = image.shape
    k_total = c * h * w
    k_pad = w_q.shape[0]
    x = image.reshape(1, k_total).astype(jnp.float32)       # contiguous (c,h,w) flatten
    if k_pad != k_total:
        x = jnp.pad(x, ((0, 0), (0, k_pad - k_total)))      # padded weight rows are zero
    n_steps = k_pad // tk

    out = pl.pallas_call(
        _clip_fused_kernel,
        out_shape=jax.ShapeDtypeStruct((1, N_PAD), jnp.float32),
        grid_spec=pltpu.PrefetchScalarGridSpec(
            num_scalar_prefetch=0,
            grid=(n_steps,),
            in_specs=[
                pl.BlockSpec((1, tk), lambda k: (0, k)),                 # x tile
                pl.BlockSpec((tk, FEAT_DIM), lambda k: (k, 0)),          # int8 weight tile
                pl.BlockSpec((1, FEAT_DIM), lambda k: (0, 0)),           # dequant scale
                pl.BlockSpec((1, FEAT_DIM), lambda k: (0, 0)),           # bias
                pl.BlockSpec((FEAT_DIM, N_PAD), lambda k: (0, 0)),       # text features^T
                pl.BlockSpec((pos.shape[0], N_PAD), lambda k: (0, 0)),   # positive masks
                pl.BlockSpec((1, N_PAD), lambda k: (0, 0)),              # neg_mask / K
            ],
            out_specs=pl.BlockSpec((1, N_PAD), lambda k: (0, 0)),
            scratch_shapes=[pltpu.VMEM((1, FEAT_DIM), jnp.float32)],
        ),
        compiler_params=pltpu.CompilerParams(
            dimension_semantics=("arbitrary",),
            vmem_limit_bytes=_vmem_limit_bytes(tk),
        ),
        cost_estimate=pl.CostEstimate(
            flops=2 * k_pad * FEAT_DIM + 4 * FEAT_DIM * N_PAD,
            transcendentals=pos.shape[0] * N_PAD + FEAT_DIM,
            bytes_accessed=k_pad * (FEAT_DIM + 4) + 4 * (FEAT_DIM * N_PAD + 4 * N_PAD),
        ),
    )(x, w_q, scale, bias, txt_t, pos, negk)

    probs = out[0, :N_LABELS]
    vals, idx = jax.lax.top_k(probs, TOP_K)                  # device-side top-k
    return probs, vals, idx


# ---------------- pipeline ----------------

class ClipPipelinePallas:
    def __init__(self, key):
        self.labels = get_label_list()
        self.n_labels = len(self.labels)
        kp, kpr, kt = jax.random.split(key, 3)

        # TODO(synk): clip.load('ViT-B/32') pretrained weights, the 12 transformer blocks /
        # class token / LayerNorms of the image tower and the whole text tower (tokenizer +
        # transformer over the label prompts) cannot be reproduced here; the image encoder is
        # a synthetic patch-embed + projection and the text features are fixed synthetic
        # embeddings.  The mean-pool-before-matmul fold below is exact ONLY because the
        # transformer blocks are omitted.
        w_patch = 0.02 * np.asarray(jax.random.normal(kp, (3 * PATCH * PATCH, WIDTH), jnp.float32))
        w_proj = 0.02 * np.asarray(jax.random.normal(kpr, (WIDTH, FEAT_DIM), jnp.float32))
        self._w_fused = (w_patch @ w_proj).astype(np.float32)          # (3*32*32, FEAT_DIM)

        # text features: pre-normalize, pre-scale by exp(logit_scale), pad labels to 128,
        # store transposed so the kernel does a single (1,D)@(D,N_PAD) GEMV.
        text = np.asarray(jax.random.normal(kt, (self.n_labels, FEAT_DIM), jnp.float32))
        logit_scale = np.float32(np.log(1.0 / 0.07))                   # CLIP init
        text = text / np.linalg.norm(text, axis=1, keepdims=True)
        text = text * np.exp(logit_scale)
        txt_t = np.zeros((FEAT_DIM, N_PAD), np.float32)
        txt_t[:, :self.n_labels] = text.T
        self.txt_t = jnp.asarray(txt_t)

        self.mean = np.array([0.48145466, 0.4578275, 0.40821073], np.float32)
        self.std = np.array([0.26862954, 0.26130258, 0.27577711], np.float32)

        self._weight_cache = {}   # (H,W) -> (w_q int8 (k_pad,D), scale (1,D), bias (1,D), tk)
        self._gt_cache = {}       # tuple(true_label) -> (pos (K_POS_PAD,N_PAD), neg/K (1,N_PAD))

    # ---- fold nearest-resize + patchify + mean-pool + encoder + 1/STD into one matrix,
    #      then per-column int8 quantize and pad rows to the K-tile grid ----
    def _image_weights(self, H, W):
        cache_key = (H, W)
        if cache_key in self._weight_cache:
            return self._weight_cache[cache_key]
        n_p = RESIZE // PATCH                                   # 7 patches per side
        idx_h = (np.arange(RESIZE) * H) // RESIZE               # F.interpolate 'nearest'
        idx_w = (np.arange(RESIZE) * W) // RESIZE
        # Rh[kh, h] = how many patch-rows map offset kh onto source row h (same for cols)
        Rh = np.zeros((PATCH, H), np.float32)
        Rw = np.zeros((PATCH, W), np.float32)
        for k in range(PATCH):
            for p in range(n_p):
                Rh[k, idx_h[p * PATCH + k]] += 1.0
                Rw[k, idx_w[p * PATCH + k]] += 1.0
        wf = self._w_fused.reshape(3, PATCH, PATCH, FEAT_DIM)
        # G[c,h,w,f] = (1/49) * sum_{kh,kw} Rh[kh,h] * Rw[kw,w] * wf[c,kh,kw,f]
        tmp = np.einsum('ah,cabf->chbf', Rh, wf)
        G = np.einsum('bw,chbf->chwf', Rw, tmp) / float(n_p * n_p)      # (3, H, W, F)
        inv_std = (1.0 / self.std).astype(np.float32)
        G_scaled = (G * inv_std[:, None, None, None]).reshape(3 * H * W, FEAT_DIM)  # fold 1/STD
        bias = np.einsum('c,chwf->f', self.mean * inv_std, G)[None, :].astype(np.float32)

        # per-column symmetric int8 quantization; dequant scale applied in the epilogue
        col_amax = np.maximum(np.abs(G_scaled).max(axis=0), 1e-8).astype(np.float32)
        scale = (col_amax / 127.0)[None, :]
        w_q = np.clip(np.rint(G_scaled / scale), -127, 127).astype(np.int8)

        k_total = 3 * H * W
        k_pad, tk = _choose_tiling(k_total)
        w_q_pad = np.zeros((k_pad, FEAT_DIM), np.int8)          # zero rows -> no contribution
        w_q_pad[:k_total] = w_q

        out = (jnp.asarray(w_q_pad), jnp.asarray(scale, jnp.float32),
               jnp.asarray(bias, jnp.float32), tk)
        self._weight_cache[cache_key] = out
        return out

    # ---- ground-truth masks, cached per label set, padded to (K_POS_PAD, N_PAD) ----
    def _ground_truth(self, true_label):
        cache_key = tuple(true_label)
        if cache_key in self._gt_cache:
            return self._gt_cache[cache_key]
        k = len(true_label)
        k_rows = max(K_POS_PAD, _round_up(k, K_POS_PAD))        # fixed rows -> no retrace
        pos = np.zeros((k_rows, N_PAD), np.float32)
        for i, lab in enumerate(true_label):
            pos[i, self.labels.index(lab)] = 1.0
        negk = np.zeros((1, N_PAD), np.float32)
        negk[0, :self.n_labels] = 1.0
        negk[0, :self.n_labels] -= pos[:, :self.n_labels].sum(0)
        negk /= float(k)                                        # fold the /K into the mask
        out = (jnp.asarray(pos), jnp.asarray(negk))
        self._gt_cache[cache_key] = out
        return out

    def forward(self, image, top_k, true_label):
        B, C, H, W = image.shape
        assert B == 1 and C == 3, "pipeline operates on a single RGB image"
        # TODO(synk): batching several images (streaming w_q once per batch) and a 2-way
        # K-split across v7x's two TensorCores would further amortize the weight DMA; kept
        # single-image to match the PyTorch module's per-image forward.

        w_q, scale, bias, tk = self._image_weights(H, W)
        pos, negk = self._ground_truth(true_label)

        probs, vals, idx = _clip_forward_device(image, w_q, scale, bias,
                                                self.txt_t, pos, negk, tk=tk)

        # host-side label / confidence selection on just the device-computed top-7
        # (top_k is hard-coded to 7, as in the PyTorch original)
        vals = np.asarray(jax.device_get(vals)).tolist()
        idx = np.asarray(jax.device_get(idx)).tolist()
        label, confidence = [], []
        for v, i in zip(vals, idx):
            name = self.labels[int(i)]
            if v > 0.1 and name not in true_label:
                label.append(name)
                confidence.append('%.2f' % v)
            elif name in true_label:
                label.append(name)
                confidence.append('%.2f' % v)
        return probs, label, confidence


# ---------------- pure-numpy reference (same quantized weights) ----------------

def _reference_probs(pipe, image, true_label):
    img = np.asarray(image, np.float32)
    H, W = img.shape[2], img.shape[3]
    w_q, scale, bias, _ = pipe._image_weights(H, W)
    k_total = 3 * H * W
    w_deq = np.asarray(w_q, np.float32)[:k_total] * np.asarray(scale)
    x = np.clip(img.reshape(1, k_total) * 0.5 + 0.5, 0.0, 1.0)
    emb = x @ w_deq - np.asarray(bias)
    emb_n = emb / np.sqrt((emb * emb).sum(axis=1, keepdims=True) + 1e-12)
    logits = emb_n @ np.asarray(pipe.txt_t)
    pos, negk = pipe._ground_truth(true_label)
    pos = np.asarray(pos)
    negk = np.asarray(negk)
    rowvalid = pos.sum(axis=1, keepdims=True)
    mask = pos + rowvalid * negk
    ml = np.where(mask > 0, logits, -1e30)
    m = ml.max(axis=1, keepdims=True)
    e = np.where(mask > 0, np.exp(ml - m), 0.0)
    p = e / np.maximum(e.sum(axis=1, keepdims=True), 1e-30)
    return ((pos * p).sum(0) + negk[0] * p.sum(0))[:pipe.n_labels]


if __name__ == "__main__":
    key = jax.random.PRNGKey(0)
    k_img, k_params = jax.random.split(key)
    # diffusion-style image in roughly [-1, 1], NCHW
    image = jnp.tanh(jax.random.normal(k_img, (1, 3, 64, 64), jnp.float32))
    pipe = ClipPipelinePallas(k_params)
    softmax_all, label, confidence = pipe.forward(image, top_k=7, true_label=['dog', 'grass'])
    jax.block_until_ready(softmax_all)
    assert softmax_all.shape == (len(get_label_list()),)
    assert bool(jnp.all(jnp.isfinite(softmax_all)))
    ref = _reference_probs(pipe, image, ['dog', 'grass'])
    np.testing.assert_allclose(np.asarray(softmax_all), ref, atol=5e-2, rtol=0)
    print("KERNEL_OK")
</pallas_src>

<mosaic_0001>
module attributes {stable_mosaic.version = 11 : i64} {
  func.func @_clip_fused_kernel(%arg0: i32, %arg1: memref<1x12288xf32, #tpu.memory_space<vmem>>, %arg2: memref<12288x128xi8, #tpu.memory_space<vmem>>, %arg3: memref<1x128xf32, #tpu.memory_space<vmem>>, %arg4: memref<1x128xf32, #tpu.memory_space<vmem>>, %arg5: memref<128x128xf32, #tpu.memory_space<vmem>>, %arg6: memref<8x128xf32, #tpu.memory_space<vmem>>, %arg7: memref<1x128xf32, #tpu.memory_space<vmem>>, %arg8: memref<1x128xf32, #tpu.memory_space<vmem>>, %arg9: memref<1x128xf32, #tpu.memory_space<vmem>>) attributes {dimension_semantics = [#tpu.dimension_semantics<arbitrary>], iteration_bounds = array<i64: 1>, scalar_prefetch = 0 : i64, scratch_operands = 1 : i64, tpu.core_type = #tpu.core_type<tc>, window_params = [{transform_indices = @transform_0, window_bounds = array<i64: 1, 12288>}, {transform_indices = @transform_1, window_bounds = array<i64: 12288, 128>}, {pipeline_mode = #tpu.pipeline_mode<synchronous>, transform_indices = @transform_2, window_bounds = array<i64: 1, 128>}, {pipeline_mode = #tpu.pipeline_mode<synchronous>, transform_indices = @transform_3, window_bounds = array<i64: 1, 128>}, {pipeline_mode = #tpu.pipeline_mode<synchronous>, transform_indices = @transform_4, window_bounds = array<i64: 128, 128>}, {pipeline_mode = #tpu.pipeline_mode<synchronous>, transform_indices = @transform_5, window_bounds = array<i64: 8, 128>}, {pipeline_mode = #tpu.pipeline_mode<synchronous>, transform_indices = @transform_6, window_bounds = array<i64: 1, 128>}, {pipeline_mode = #tpu.pipeline_mode<synchronous>, transform_indices = @transform_7, window_bounds = array<i64: 1, 128>}]} {
    %c0_i32 = arith.constant 0 : i32
    %0 = arith.cmpi eq, %arg0, %c0_i32 : i32
    %1 = arith.extui %0 : i1 to i32
    %c0_i32_0 = arith.constant 0 : i32
    %2 = arith.cmpi ne, %1, %c0_i32_0 : i32
    scf.if %2 {
      %cst_14 = arith.constant 0.000000e+00 : f32
      %21 = vector.broadcast %cst_14 : f32 to vector<1x128xf32>
      %c0_15 = arith.constant 0 : index
      %c0_16 = arith.constant 0 : index
      %22 = vector.load %arg9[%c0_15, %c0_16] : memref<1x128xf32, #tpu.memory_space<vmem>>, vector<1x128xf32>
      tpu.vector_store %arg9[%c0_15, %c0_16], %21 {strides = array<i32>} : memref<1x128xf32, #tpu.memory_space<vmem>>, vector<1x128xf32>,
    } else {
    }
    %c0 = arith.constant 0 : index
    %c0_1 = arith.constant 0 : index
    %3 = vector.load %arg1[%c0, %c0_1] : memref<1x12288xf32, #tpu.memory_space<vmem>>, vector<1x12288xf32>
    %cst = arith.constant 5.000000e-01 : f32
    %4 = vector.broadcast %cst : f32 to vector<1x12288xf32>
    %5 = arith.mulf %3, %4 : vector<1x12288xf32>
    %cst_2 = arith.constant 5.000000e-01 : f32
    %6 = vector.broadcast %cst_2 : f32 to vector<1x12288xf32>
    %7 = arith.addf %5, %6 : vector<1x12288xf32>
    %cst_3 = arith.constant 0.000000e+00 : f32
    %cst_4 = arith.constant 1.000000e+00 : f32
    %8 = vector.broadcast %cst_3 : f32 to vector<1x12288xf32>
    %9 = arith.maximumf %8, %7 : vector<1x12288xf32>
    %10 = vector.broadcast %cst_4 : f32 to vector<1x12288xf32>
    %11 = arith.minimumf %10, %9 : vector<1x12288xf32>
    %c0_5 = arith.constant 0 : index
    %c0_6 = arith.constant 0 : index
    %12 = vector.load %arg2[%c0_5, %c0_6] : memref<12288x128xi8, #tpu.memory_space<vmem>>, vector<12288x128xi8>
    %13 = arith.sitofp %12 : vector<12288x128xi8> to vector<12288x128xf32>
    %c0_7 = arith.constant 0 : index
    %c0_8 = arith.constant 0 : index
    %14 = vector.load %arg9[%c0_7, %c0_8] : memref<1x128xf32, #tpu.memory_space<vmem>>, vector<1x128xf32>
    %cst_9 = arith.constant dense<0.000000e+00> : vector<1x128xf32>
    %15 = tpu.matmul %11, %13, %cst_9 {dimension_numbers = #tpu.dot_dimension_numbers<[1], [0], [0], [1], [0, 0, 1, 1], [], []>} : vector<1x12288xf32>, vector<12288x128xf32>, vector<1x128xf32> -> vector<1x128xf32>
    %16 = arith.addf %14, %15 : vector<1x128xf32>
    %c0_10 = arith.constant 0 : index
    %c0_11 = arith.constant 0 : index
    %17 = vector.load %arg9[%c0_10, %c0_11] : memref<1x128xf32, #tpu.memory_space<vmem>>, vector<1x128xf32>
    tpu.vector_store %arg9[%c0_10, %c0_11], %16 {strides = array<i32>} : memref<1x128xf32, #tpu.memory_space<vmem>>, vector<1x128xf32>,
    %c0_i32_12 = arith.constant 0 : i32
    %18 = arith.cmpi eq, %arg0, %c0_i32_12 : i32
    %19 = arith.extui %18 : i1 to i32
    %c0_i32_13 = arith.constant 0 : i32
    %20 = arith.cmpi ne, %19, %c0_i32_13 : i32
    scf.if %20 {
      %c0_14 = arith.constant 0 : index
      %c0_15 = arith.constant 0 : index
      %21 = vector.load %arg9[%c0_14, %c0_15] : memref<1x128xf32, #tpu.memory_space<vmem>>, vector<1x128xf32>
      %c0_16 = arith.constant 0 : index
      %c0_17 = arith.constant 0 : index
      %22 = vector.load %arg3[%c0_16, %c0_17] : memref<1x128xf32, #tpu.memory_space<vmem>>, vector<1x128xf32>
      %23 = arith.mulf %21, %22 : vector<1x128xf32>
      %c0_18 = arith.constant 0 : index
      %c0_19 = arith.constant 0 : index
      %24 = vector.load %arg4[%c0_18, %c0_19] : memref<1x128xf32, #tpu.memory_space<vmem>>, vector<1x128xf32>
      %25 = arith.subf %23, %24 : vector<1x128xf32>
      %26 = arith.mulf %25, %25 : vector<1x128xf32>
      %cst_20 = arith.constant dense<0.000000e+00> : vector<1xf32>
      %27 = vector.multi_reduction <add>, %26, %cst_20 [1] : vector<1x128xf32> to vector<1xf32>
      %28 = vector.shape_cast %27 : vector<1xf32> to vector<1x1xf32>
      %cst_21 = arith.constant 9.99999996E-13 : f32
      %29 = vector.broadcast %cst_21 : f32 to vector<1x1xf32>
      %30 = arith.addf %28, %29 : vector<1x1xf32>
      %31 = math.rsqrt %30 : vector<1x1xf32>
      %32 = vector.broadcast %31 : vector<1x1xf32> to vector<1x128xf32>
      %33 = arith.mulf %25, %32 : vector<1x128xf32>
      %c0_22 = arith.constant 0 : index
      %c0_23 = arith.constant 0 : index
      %34 = vector.load %arg5[%c0_22, %c0_23] : memref<128x128xf32, #tpu.memory_space<vmem>>, vector<128x128xf32>
      %cst_24 = arith.constant dense<0.000000e+00> : vector<1x128xf32>
      %35 = tpu.matmul %33, %34, %cst_24 {dimension_numbers = #tpu.dot_dimension_numbers<[1], [0], [0], [1], [0, 0, 1, 1], [], []>} : vector<1x128xf32>, vector<128x128xf32>, vector<1x128xf32> -> vector<1x128xf32>
      %c0_25 = arith.constant 0 : index
      %c0_26 = arith.constant 0 : index
      %36 = vector.load %arg6[%c0_25, %c0_26] : memref<8x128xf32, #tpu.memory_space<vmem>>, vector<8x128xf32>
      %c0_27 = arith.constant 0 : index
      %c0_28 = arith.constant 0 : index
      %37 = vector.load %arg7[%c0_27, %c0_28] : memref<1x128xf32, #tpu.memory_space<vmem>>, vector<1x128xf32>
      %cst_29 = arith.constant dense<0.000000e+00> : vector<8xf32>
      %38 = vector.multi_reduction <add>, %36, %cst_29 [1] : vector<8x128xf32> to vector<8xf32>
      %39 = vector.shape_cast %38 : vector<8xf32> to vector<8x1xf32>
      %40 = vector.broadcast %39 : vector<8x1xf32> to vector<8x128xf32>
      %41 = vector.broadcast %37 : vector<1x128xf32> to vector<8x128xf32>
      %42 = arith.mulf %40, %41 : vector<8x128xf32>
      %43 = arith.addf %36, %42 : vector<8x128xf32>
      %cst_30 = arith.constant 0.000000e+00 : f32
      %44 = vector.broadcast %cst_30 : f32 to vector<8x128xf32>
      %45 = arith.cmpf ogt, %43, %44 : vector<8x128xf32>
      %cst_31 = arith.constant -1.000000e+30 : f32
      %46 = vector.shape_cast %35 : vector<1x128xf32> to vector<1x128xf32>
      %47 = vector.broadcast %46 : vector<1x128xf32> to vector<8x128xf32>
      %48 = vector.broadcast %cst_31 : f32 to vector<8x128xf32>
      %49 = arith.select %45, %47, %48 : vector<8x128xi1>, vector<8x128xf32>
      %cst_32 = arith.constant dense<0xFF800000> : vector<8xf32>
      %50 = vector.multi_reduction <maximumf>, %49, %cst_32 [1] : vector<8x128xf32> to vector<8xf32>
      %51 = vector.shape_cast %50 : vector<8xf32> to vector<8x1xf32>
      %cst_33 = arith.constant 0.000000e+00 : f32
      %52 = vector.broadcast %cst_33 : f32 to vector<8x128xf32>
      %53 = arith.cmpf ogt, %43, %52 : vector<8x128xf32>
      %54 = vector.broadcast %51 : vector<8x1xf32> to vector<8x128xf32>
      %55 = arith.subf %49, %54 : vector<8x128xf32>
      %56 = math.exp %55 : vector<8x128xf32>
      %cst_34 = arith.constant 0.000000e+00 : f32
      %57 = vector.broadcast %cst_34 : f32 to vector<8x128xf32>
      %58 = arith.select %53, %56, %57 : vector<8x128xi1>, vector<8x128xf32>
      %cst_35 = arith.constant dense<0.000000e+00> : vector<8xf32>
      %59 = vector.multi_reduction <add>, %58, %cst_35 [1] : vector<8x128xf32> to vector<8xf32>
      %60 = vector.shape_cast %59 : vector<8xf32> to vector<8x1xf32>
      %cst_36 = arith.constant 1.000000e-30 : f32
      %61 = vector.broadcast %cst_36 : f32 to vector<8x1xf32>
      %62 = arith.maximumf %60, %61 : vector<8x1xf32>
      %63 = vector.broadcast %62 : vector<8x1xf32> to vector<8x128xf32>
      %64 = arith.divf %58, %63 : vector<8x128xf32>
      %65 = arith.mulf %36, %64 : vector<8x128xf32>
      %cst_37 = arith.constant dense<0.000000e+00> : vector<128xf32>
      %66 = vector.multi_reduction <add>, %65, %cst_37 [0] : vector<8x128xf32> to vector<128xf32>
      %67 = vector.shape_cast %66 : vector<128xf32> to vector<1x128xf32>
      %cst_38 = arith.constant dense<0.000000e+00> : vector<128xf32>
      %68 = vector.multi_reduction <add>, %64, %cst_38 [0] : vector<8x128xf32> to vector<128xf32>
      %69 = vector.shape_cast %68 : vector<128xf32> to vector<1x128xf32>
      %70 = arith.mulf %37, %69 : vector<1x128xf32>
      %71 = arith.addf %67, %70 : vector<1x128xf32>
      %c0_39 = arith.constant 0 : index
      %c0_40 = arith.constant 0 : index
      %72 = vector.load %arg8[%c0_39, %c0_40] : memref<1x128xf32, #tpu.memory_space<vmem>>, vector<1x128xf32>
      tpu.vector_store %arg8[%c0_39, %c0_40], %71 {strides = array<i32>} : memref<1x128xf32, #tpu.memory_space<vmem>>, vector<1x128xf32>,
    } else {
    }
    return
  }
  func.func @transform_0(%arg0: i32) -> (i32, i32) {
    %c0_i32 = arith.constant 0 : i32
    %c0_i32_0 = arith.constant 0 : i32
    return %c0_i32, %arg0 : i32, i32
  }
  func.func @transform_1(%arg0: i32) -> (i32, i32) {
    %c0_i32 = arith.constant 0 : i32
    %c0_i32_0 = arith.constant 0 : i32
    return %arg0, %c0_i32 : i32, i32
  }
  func.func @transform_2(%arg0: i32) -> (i32, i32) {
    %c0_i32 = arith.constant 0 : i32
    %c0_i32_0 = arith.constant 0 : i32
    %c0_i32_1 = arith.constant 0 : i32
    return %c0_i32, %c0_i32_0 : i32, i32
  }
  func.func @transform_3(%arg0: i32) -> (i32, i32) {
    %c0_i32 = arith.constant 0 : i32
    %c0_i32_0 = arith.constant 0 : i32
    %c0_i32_1 = arith.constant 0 : i32
    return %c0_i32, %c0_i32_0 : i32, i32
  }
  func.func @transform_4(%arg0: i32) -> (i32, i32) {
    %c0_i32 = arith.constant 0 : i32
    %c0_i32_0 = arith.constant 0 : i32
    %c0_i32_1 = arith.constant 0 : i32
    return %c0_i32, %c0_i32_0 : i32, i32
  }
  func.func @transform_5(%arg0: i32) -> (i32, i32) {
    %c0_i32 = arith.constant 0 : i32
    %c0_i32_0 = arith.constant 0 : i32
    %c0_i32_1 = arith.constant 0 : i32
    return %c0_i32, %c0_i32_0 : i32, i32
  }
  func.func @transform_6(%arg0: i32) -> (i32, i32) {
    %c0_i32 = arith.constant 0 : i32
    %c0_i32_0 = arith.constant 0 : i32
    %c0_i32_1 = arith.constant 0 : i32
    return %c0_i32, %c0_i32_0 : i32, i32
  }
  func.func @transform_7(%arg0: i32) -> (i32, i32) {
    %c0_i32 = arith.constant 0 : i32
    %c0_i32_0 = arith.constant 0 : i32
    %c0_i32_1 = arith.constant 0 : i32
    return %c0_i32, %c0_i32_0 : i32, i32
  }
}

</mosaic_0001>

<bundles_post_ra>
// kernel: _clip_forward_device.1
= control target key start
LH: loop header
LB: loop body
LE: loop exit
PB: predicated region body
PF: predicated region fallthrough
CT: control target
= control target key end

     0   :  { %12 = vsyncpa [#allocation4], 0  ;;  %s11544_s0 = inlined_call_operand.vmem [shape: f32[1,12288], index: 0, kind: input, shape index: {}]   ;;  %s11545_s1 = inlined_call_operand.hbm [shape: s8[12288,128], index: 1, kind: input, shape index: {}]   ;;  %s11546_s2 = inlined_call_operand.hbm [shape: f32[1,128], index: 2, kind: input, shape index: {}]   ;;  %s11547_s3 = inlined_call_operand.hbm [shape: f32[1,128], index: 3, kind: input, shape index: {}]   ;;  %s11548_s4 = inlined_call_operand.hbm [shape: f32[128,128], index: 4, kind: input, shape index: {}]   ;;  %s11549_s5 = inlined_call_operand.hbm [shape: f32[8,128], index: 5, kind: input, shape index: {}]   ;;  %s11550_s6 = inlined_call_operand.hbm [shape: f32[1,128], index: 6, kind: input, shape index: {}]   ;;  %s11551_s7 = inlined_call_operand.vmem [shape: f32[1,128], index: 7, kind: output, shape index: {}]  }
   0x1   :  { %13 = vsyncpa [#allocation6], 0 }
   0x2   :  { %14 = vsyncpa [#allocation9], 0 }
   0x3   :  { %15 = vsyncpa [#allocation12], 0  ;;  %s11080_s24 = smov [#allocation5]   ;;  %s10940_s28 = scalar_lea.hbm %s11546_s2, 16 }
   0x4   :  { %s36_s25 = sshll.u32 %s11080_s24, 4  ;;  %p10941_p0 = scmp.ne.s32.totalorder %s11546_s2, %s10940_s28  ;;  %s37_s25 = int_to_ptr.vmem [resolvable:$true] %s36_s25 }
   0x5   :  { %p10944_p1 = scmp.lt.u32.totalorder %s10940_s28, %s11546_s2 }
   0x7   :  { %p10946_p2 = pnand %p10944_p1, %p10941_p0 }
   0x9   :  { %10949 = shalt.err (!%p10946_p2)
}
   0xa   :  { %s10950_s10 = scalar_lea.vmem %s37_s25, 16  ;;  %s10954_s11 = scalar_lea.vmem %s37_s25, 32 }
   0xb   :  { %p10951_p3 = scmp.ne.s32.totalorder %s37_s25, %s10950_s10  ;;  %p10955_p4 = scmp.lt.s32.totalorder %s37_s25, %s37_s25 }
   0xc   :  { %p10956_p5 = scmp.lt.s32.totalorder %s10954_s11, %s10950_s10 }
   0xe   :  { %p10957_p6 = por %p10956_p5, %p10955_p4 }
  0x10   :  { %p10958_p7 = pnand %p10957_p6, %p10951_p3 }
  0x12   :  { %10961 = shalt.err (!%p10958_p7)
}
  0x13   :  { %39 = dma.hbm_to_vmem [thread:$0]  %s11546_s2, 16, %s37_s25, [#allocation6]  }
  0x14   :  { %s11081_s14 = smov [#allocation8]   ;;  %s11082_s16 = smov [#allocation3]  }
  0x15   :  { %s55_s15 = sshll.u32 %s11081_s14, 4  ;;  %s23_s17 = sshll.u32 %s11082_s16, 4  ;;  %s56_s15 = int_to_ptr.vmem [resolvable:$true] %s55_s15  ;;  %s24_s17 = int_to_ptr.vmem [resolvable:$true] %s23_s17 }
  0x16   :  { %s10962_s20 = scalar_lea.hbm %s11548_s4, 2048 }
  0x17   :  { %p10963_p8 = scmp.ne.s32.totalorder %s11548_s4, %s10962_s20  ;;  %p10966_p9 = scmp.lt.u32.totalorder %s10962_s20, %s11548_s4 }
  0x19   :  { %p10968_p10 = pnand %p10966_p9, %p10963_p8 }
  0x1b   :  { %10971 = shalt.err (!%p10968_p10)
}
  0x1c   :  { %s10972_s2 = scalar_lea.vmem %s56_s15, 2048  ;;  %p10977_p12 = scmp.lt.s32.totalorder %s56_s15, %s56_s15 }
  0x1d   :  { %p10973_p11 = scmp.ne.s32.totalorder %s56_s15, %s10972_s2  ;;  %p10978_p13 = scmp.lt.s32.totalorder %s10972_s2, %s10972_s2 }
  0x1f   :  { %p10979_p0 = por %p10978_p13, %p10977_p12 }
  0x21   :  { %p10980_p1 = pnand %p10979_p0, %p10973_p11 }
  0x23   :  { %10983 = shalt.err (!%p10980_p1)
}
  0x24   :  { %s11083_s25 = smov 128   ;;  %s11084_s26 = smov 8  }
  0x25   :  { %61 = dma.hbm_to_vmem [thread:$0]  %s11548_s4, 2048, %s56_s15, [#allocation9], %s11083_s25, %s11083_s25, %s11084_s26  }
  0x26   :  { %s10984_s8 = scalar_lea.hbm %s11545_s1, 49152 }
  0x27   :  { %p10985_p2 = scmp.ne.s32.totalorder %s11545_s1, %s10984_s8  ;;  %p10988_p3 = scmp.lt.u32.totalorder %s10984_s8, %s11545_s1 }
  0x29   :  { %p10990_p4 = pnand %p10988_p3, %p10985_p2 }
  0x2b   :  { %10993 = shalt.err (!%p10990_p4)
}
  0x2c   :  { %s10994_s13 = scalar_lea.vmem %s24_s17, 49152  ;;  %p10999_p6 = scmp.lt.s32.totalorder %s24_s17, %s24_s17 }
  0x2d   :  { %p10995_p5 = scmp.ne.s32.totalorder %s24_s17, %s10994_s13  ;;  %p11000_p7 = scmp.lt.s32.totalorder %s10994_s13, %s10994_s13 }
  0x2f   :  { %p11001_p8 = por %p11000_p7, %p10999_p6 }
  0x31   :  { %p11002_p9 = pnand %p11001_p8, %p10995_p5 }
  0x33   :  { %11005 = shalt.err (!%p11002_p9)
}
  0x34   :  { %29 = dma.hbm_to_vmem [thread:$0]  %s11545_s1, 49152, %s24_s17, [#allocation4], %s11083_s25, %s11083_s25, %s11084_s26  }
  0x35   :  { %s11085_s15 = smov [#allocation7]   ;;  %s11086_s18 = smov [#allocation10]  }
  0x36   :  { %s46_s16 = sshll.u32 %s11085_s15, 4  ;;  %s68_s19 = sshll.u32 %s11086_s18, 4  ;;  %s47_s16 = int_to_ptr.vmem [resolvable:$true] %s46_s16  ;;  %s69_s19 = int_to_ptr.vmem [resolvable:$true] %s68_s19 }
  0x37   :  { %s11006_s22 = scalar_lea.hbm %s11547_s3, 16 }
  0x38   :  { %p11007_p10 = scmp.ne.s32.totalorder %s11547_s3, %s11006_s22  ;;  %p11010_p11 = scmp.lt.u32.totalorder %s11006_s22, %s11547_s3 }
  0x3a   :  { %p11012_p12 = pnand %p11010_p11, %p11007_p10 }
  0x3c   :  { %11015 = shalt.err (!%p11012_p12)
}
  0x3d   :  { %s11016_s1 = scalar_lea.vmem %s47_s16, 16  ;;  %s11020_s17 = scalar_lea.vmem %s47_s16, 32 }
  0x3e   :  { %p11017_p13 = scmp.ne.s32.totalorder %s47_s16, %s11016_s1  ;;  %p11021_p0 = scmp.lt.s32.totalorder %s47_s16, %s47_s16 }
  0x3f   :  { %p11022_p1 = scmp.lt.s32.totalorder %s11020_s17, %s11016_s1 }
  0x41   :  { %p11023_p2 = por %p11022_p1, %p11021_p0 }
  0x43   :  { %p11024_p3 = pnand %p11023_p2, %p11017_p13 }
  0x45   :  { %11027 = shalt.err (!%p11024_p3)
}
  0x46   :  { %49 = dma.hbm_to_vmem [thread:$0]  %s11547_s3, 16, %s47_s16, [#allocation6]  }
  0x47   :  { %s11028_s30 = scalar_lea.hbm %s11549_s5, 128 }
  0x48   :  { %p11029_p4 = scmp.ne.s32.totalorder %s11549_s5, %s11028_s30  ;;  %p11032_p5 = scmp.lt.u32.totalorder %s11028_s30, %s11549_s5 }
  0x4a   :  { %p11034_p6 = pnand %p11032_p5, %p11029_p4 }
  0x4c   :  { %11037 = shalt.err (!%p11034_p6)
}
  0x4d   :  { %s11038_s12 = scalar_lea.vmem %s69_s19, 128  ;;  %p11043_p8 = scmp.lt.s32.totalorder %s69_s19, %s69_s19 }
  0x4e   :  { %p11039_p7 = scmp.ne.s32.totalorder %s69_s19, %s11038_s12  ;;  %p11044_p9 = scmp.lt.s32.totalorder %s11038_s12, %s11038_s12 }
  0x50   :  { %p11045_p10 = por %p11044_p9, %p11043_p8 }
  0x52   :  { %p11046_p11 = pnand %p11045_p10, %p11039_p7 }
  0x54   :  { %11049 = shalt.err (!%p11046_p11)
}
  0x55   :  { %71 = dma.hbm_to_vmem [thread:$0]  %s11549_s5, 128, %s69_s19, [#allocation9]  }
  0x56   :  { %s11087_s4 = smov [#allocation11]   ;;  %s11050_s18 = scalar_lea.hbm %s11550_s6, 16 }
  0x57   :  { %s78_s14 = sshll.u32 %s11087_s4, 4  ;;  %p11051_p12 = scmp.ne.s32.totalorder %s11550_s6, %s11050_s18  ;;  %s79_s14 = int_to_ptr.vmem [resolvable:$true] %s78_s14 }
  0x58   :  { %p11054_p13 = scmp.lt.u32.totalorder %s11050_s18, %s11550_s6 }
  0x5a   :  { %p11056_p0 = pnand %p11054_p13, %p11051_p12 }
  0x5c   :  { %11059 = shalt.err (!%p11056_p0)
}
  0x5d   :  { %s11060_s24 = scalar_lea.vmem %s79_s14, 16  ;;  %s11064_s5 = scalar_lea.vmem %s79_s14, 32 }
  0x5e   :  { %p11061_p1 = scmp.ne.s32.totalorder %s79_s14, %s11060_s24  ;;  %p11065_p2 = scmp.lt.s32.totalorder %s79_s14, %s79_s14 }
  0x5f   :  { %p11066_p3 = scmp.lt.s32.totalorder %s11064_s5, %s11060_s24 }
  0x61   :  { %p11067_p4 = por %p11066_p3, %p11065_p2 }
  0x63   :  { %p11068_p5 = pnand %p11067_p4, %p11061_p1 }
  0x65   :  { %11071 = shalt.err (!%p11068_p5)
}
  0x66   :  { %81 = dma.hbm_to_vmem [thread:$0]  %s11550_s6, 16, %s79_s14, [#allocation12]  }
  0x67   :  { %11072 = dma.done.wait [#allocation4], 49152  }
  0x68   :  { %11073 = vsyncadd [#allocation4], 4294918144 }
  0x69   :  { %11074 = dma.done.wait [#allocation6], 32  }
  0x6a   :  { %11075 = vsyncadd [#allocation6], 4294967264 }
  0x6b   :  { %11076 = dma.done.wait [#allocation9], 2176  }
  0x6c   :  { %11077 = vsyncadd [#allocation9], 4294965120 }
  0x6d   :  { %11078 = dma.done.wait [#allocation12], 16  }
  0x6e   :  { %11079 = vsyncadd [#allocation12], 4294967280  ;;  %v169_v0 = vld [vmem:[#allocation3 + $0x20] sm:$0xff]  ;;  %v170_v10 = vld [vmem:[#allocation3 + $0x28] sm:$0xff]  ;;  %v3634_v14 = vlaneseq  ;;  %vm7485_vm0 = vcmask 1040384   ;;  %vm11090_vm1 = vmmov 0  }
  0x6f   :  { %v177_v1 = vld [vmem:[#allocation3 + $0x60] sm:$0xff]  ;;  %v9363_v3 = vunpack.c.l.s8.bf16 %v169_v0  ;;  %v9367_v4 = vunpack.c.h.s8.bf16 %v169_v0  ;;  %v178_v11 = vld [vmem:[#allocation3 + $0x68] sm:$0xff]  ;;  %v9371_v15 = vunpack.c.l.s8.bf16 %v170_v10  ;;  %v9375_v23 = vunpack.c.h.s8.bf16 %v170_v10  ;;  %v171_v26 = vld [vmem:[#allocation3 + $0x30] sm:$0xff] }
  0x70   :  { %v165_v2 = vld [vmem:[#allocation3] sm:$0xff]  ;;  %v9395_v5 = vunpack.c.l.s8.bf16 %v177_v1  ;;  %v9399_v6 = vunpack.c.h.s8.bf16 %v177_v1  ;;  %v9403_v16 = vunpack.c.l.s8.bf16 %v178_v11  ;;  %v166_v17 = vld [vmem:[#allocation3 + $0x8] sm:$0xff]  ;;  %v11206_v22 = vshrl.u32 %v3634_v14, 7  ;;  %v179_v27 = vld [vmem:[#allocation3 + $0x70] sm:$0xff] }
  0x71   :  { %v173_v7 = vld [vmem:[#allocation3 + $0x40] sm:$0xff]  ;;  %v9365_v8 = vunpack.c.l.s8.bf16 %v165_v2  ;;  %9364 = vmatprep.subr.bf16.mxu0 %v9363_v3  ;;  %v9369_v12 = vunpack.c.h.s8.bf16 %v165_v2  ;;  %v174_v18 = vld [vmem:[#allocation3 + $0x48] sm:$0xff]  ;;  %v9373_v20 = vunpack.c.l.s8.bf16 %v166_v17  ;;  %v9407_v24 = vunpack.c.h.s8.bf16 %v178_v11  ;;  %v167_v34 = vld [vmem:[#allocation3 + $0x10] sm:$0xff] }
  0x72   :  { %v9397_v9 = vunpack.c.l.s8.bf16 %v173_v7  ;;  %9396 = vmatprep.subr.bf16.mxu1 %v9395_v5  ;;  %v9401_v13 = vunpack.c.h.s8.bf16 %v173_v7  ;;  %v105_v19 = vld [vmem:[%s11544_s0] sm:$0xff]  ;;  %v9405_v21 = vunpack.c.l.s8.bf16 %v174_v18  ;;  %v9377_v29 = vunpack.c.h.s8.bf16 %v166_v17  ;;  %v175_v35 = vld [vmem:[#allocation3 + $0x50] sm:$0xff]  ;;  %v186_v11 = vld [vmem:[#allocation3 + $0xa8] sm:$0xff] }
  0x73   :  { %9366 = vmatpush3.bf16.msra.mxu0 %v9365_v8  ;;  %v117_v25 = vmul.f32 0.5, %v105_v19  ;;  %v9409_v30 = vunpack.c.h.s8.bf16 %v174_v18  ;;  %v11209_v31 = vsub.s32 1, %v11206_v22  ;;  %v9379_v32 = vunpack.c.l.s8.bf16 %v171_v26  ;;  %v172_v45 = vld [vmem:[#allocation3 + $0x38] sm:$0xff]  ;;  %v185_v57 = vld [vmem:[#allocation3 + $0xa0] sm:$0xff]  ;;  %v182_v18 = vld [vmem:[#allocation3 + $0x88] sm:$0xff] }
  0x74   :  { %9398 = vmatpush3.bf16.msra.mxu1 %v9397_v9  ;;  %9368 = vmatprep.subr.bf16.mxu0 %v9367_v4  ;;  %v9411_v33 = vunpack.c.l.s8.bf16 %v179_v27  ;;  %v11212_v37 = vsub.s32 3, %v11206_v22  ;;  %v9381_v39 = vunpack.c.l.s8.bf16 %v167_v34  ;;  %v9413_v40 = vunpack.c.l.s8.bf16 %v175_v35  ;;  %v180_v46 = vld [vmem:[#allocation3 + $0x78] sm:$0xff]  ;;  %v193_v58 = vld [vmem:[#allocation3 + $0xe0] sm:$0xff] }
  0x75   :  { %9400 = vmatprep.subr.bf16.mxu1 %v9399_v6  ;;  %v129_v28 = vadd.f32 0.5, %v117_v25  ;;  %v9383_v41 = vunpack.c.h.s8.bf16 %v171_v26  ;;  %v9415_v42 = vunpack.c.h.s8.bf16 %v179_v27  ;;  %v9385_v47 = vunpack.c.h.s8.bf16 %v167_v34  ;;  %v168_v51 = vld [vmem:[#allocation3 + $0x18] sm:$0xff]  ;;  %v181_v0 = vld [vmem:[#allocation3 + $0x80] sm:$0xff]  ;;  %v187_v26 = vld [vmem:[#allocation3 + $0xb0] sm:$0xff] }
  0x76   :  { %v9417_v48 = vunpack.c.h.s8.bf16 %v175_v35  ;;  %v9387_v49 = vunpack.c.l.s8.bf16 %v172_v45  ;;  %v9419_v50 = vunpack.c.l.s8.bf16 %v180_v46  ;;  %v176_v52 = vld [vmem:[#allocation3 + $0x58] sm:$0xff]  ;;  %v9389_v53 = vunpack.c.l.s8.bf16 %v168_v51  ;;  %v189_v2 = vld [vmem:[#allocation3 + $0xc0] sm:$0xff]  ;;  %v195_v27 = vld [vmem:[#allocation3 + $0xf0] sm:$0xff] }
  0x77   :  { %9370 = vmatpush3.bf16.msra.mxu0 %v9369_v12  ;;  %v141_v36 = vmax.f32 %v129_v28, 0.0  ;;  %v9421_v54 = vunpack.c.l.s8.bf16 %v176_v52  ;;  %v9391_v55 = vunpack.c.h.s8.bf16 %v172_v45  ;;  %v9423_v56 = vunpack.c.h.s8.bf16 %v180_v46  ;;  %v194_v12 = vld [vmem:[#allocation3 + $0xe8] sm:$0xff]  ;;  %v191_v34 = vld [vmem:[#allocation3 + $0xd0] sm:$0xff] }
  0x78   :  { %9402 = vmatpush3.bf16.msra.mxu1 %v9401_v13  ;;  %9372 = vmatprep.subr.bf16.mxu0 %v9371_v15  ;;  %v11221_v59 = vsub.s32 0, %v11206_v22  ;;  %v11224_v60 = vsub.s32 2, %v11206_v22  ;;  %v9393_v61 = vunpack.c.h.s8.bf16 %v168_v51  ;;  %v9425_v62 = vunpack.c.h.s8.bf16 %v176_v52  ;;  %v106_v35 = vld [vmem:[%s11544_s0 + $0x8] sm:$0xff] }
  0x79   :  { %9404 = vmatprep.subr.bf16.mxu1 %v9403_v16  ;;  %v11214_v38 = vmin.f32 %v141_v36, 1.0  ;;  %v9427_v63 = vunpack.c.l.s8.bf16 %v185_v57  ;;  %v9459_v1 = vunpack.c.l.s8.bf16 %v193_v58  ;;  %v11227_v3 = vsub.s32 5, %v11206_v22 }
  0x7a   :  { %v11230_v4 = vsub.s32 7, %v11206_v22  ;;  %v9429_v7 = vunpack.c.l.s8.bf16 %v181_v0  ;;  %v9461_v8 = vunpack.c.l.s8.bf16 %v189_v2  ;;  %v9431_v9 = vunpack.c.h.s8.bf16 %v185_v57  ;;  %v209_v57 = vld [vmem:[#allocation3 + $0x160] sm:$0xff] }
  0x7b   :  { %9374 = vmatpush3.bf16.msra.mxu0 %v9373_v20  ;;  %v3641_v43 = vrot.slane %v11214_v38, %v11209_v31  ;;  %v3649_v44 = vrot.slane %v11214_v38, %v11212_v37  ;;  %v3637_v5 = vrot.slane %v11214_v38, %v11221_v59  ;;  %v3645_v6 = vrot.slane %v11214_v38, %v11224_v60  ;;  %v190_v20 = vld [vmem:[#allocation3 + $0xc8] sm:$0xff] }
  0x7c   :  { %9406 = vmatpush3.bf16.msra.mxu1 %v9405_v21  ;;  %9376 = vmatprep.subr.bf16.mxu0 %v9375_v23  ;;  %v9463_v10 = vunpack.c.h.s8.bf16 %v193_v58  ;;  %v3657_v13 = vrot.slane %v11214_v38, %v11227_v3  ;;  %v3665_v14 = vrot.slane %v11214_v38, %v11230_v4  ;;  %v9433_v15 = vunpack.c.h.s8.bf16 %v181_v0 }
  0x7d   :  { %9408 = vmatprep.subr.bf16.mxu1 %v9407_v24  ;;  %4178 = vmatprep.mubr.f32.mxu0 %v3641_v43  ;;  %v9465_v16 = vunpack.c.h.s8.bf16 %v189_v2  ;;  %v9435_v17 = vunpack.c.l.s8.bf16 %v186_v11  ;;  %v9467_v19 = vunpack.c.l.s8.bf16 %v194_v12  ;;  %v9437_v21 = vunpack.c.l.s8.bf16 %v182_v18  ;;  %v196_v43 = vld [vmem:[#allocation3 + $0xf8] sm:$0xff]  ;;  %v197_v2 = vld [vmem:[#allocation3 + $0x100] sm:$0xff] }
  0x7e   :  { %4248 = vmatprep.mubr.f32.mxu1 %v3649_v44  ;;  %v9469_v23 = vunpack.c.l.s8.bf16 %v190_v20  ;;  %v9439_v24 = vunpack.c.h.s8.bf16 %v186_v11  ;;  %v9471_v25 = vunpack.c.h.s8.bf16 %v194_v12  ;;  %v9441_v28 = vunpack.c.h.s8.bf16 %v182_v18 }
  0x7f   :  { %9378 = vmatpush3.bf16.msra.mxu0 %v9377_v29  ;;  %v9473_v29 = vunpack.c.h.s8.bf16 %v190_v20  ;;  %v118_v44 = vmul.f32 0.5, %v106_v35  ;;  %v9481_v46 = vunpack.c.h.s8.bf16 %v191_v34  ;;  %v9527_v12 = vunpack.c.h.s8.bf16 %v209_v57  ;;  %v207_v35 = vld [vmem:[#allocation3 + $0x150] sm:$0xff] }
  0x80   :  { %9410 = vmatpush3.bf16.msra.mxu1 %v9409_v30  ;;  %9380 = vmatprep.subr.bf16.mxu0 %v9379_v32  ;;  %v9443_v30 = vunpack.c.l.s8.bf16 %v187_v26  ;;  %v183_v32 = vld [vmem:[#allocation3 + $0x90] sm:$0xff] }
  0x81   :  { %9412 = vmatprep.subr.bf16.mxu1 %v9411_v33  ;;  %v9475_v33 = vunpack.c.l.s8.bf16 %v195_v27  ;;  %v9445_v36 = vunpack.c.l.s8.bf16 %v183_v32  ;;  %v9449_v45 = vunpack.c.h.s8.bf16 %v183_v32  ;;  %v130_v51 = vadd.f32 0.5, %v118_v44 }
  0x83   :  { %9382 = vmatpush3.bf16.msra.mxu0 %v9381_v39  ;;  %v9477_v39 = vunpack.c.l.s8.bf16 %v191_v34  ;;  %v142_v58 = vmax.f32 %v130_v51, 0.0 }
  0x84   :  { %9414 = vmatpush3.bf16.msra.mxu1 %v9413_v40  ;;  %9384 = vmatprep.subr.bf16.mxu0 %v9383_v41  ;;  %v9447_v40 = vunpack.c.h.s8.bf16 %v187_v26  ;;  %v9479_v41 = vunpack.c.h.s8.bf16 %v195_v27  ;;  %v203_v27 = vld [vmem:[#allocation3 + $0x130] sm:$0xff] }
  0x85   :  { %9416 = vmatprep.subr.bf16.mxu1 %v9415_v42  ;;  %v188_v42 = vld [vmem:[#allocation3 + $0xb8] sm:$0xff]  ;;  %v9507_v32 = vunpack.c.l.s8.bf16 %v203_v27 }
  0x87   :  { %9386 = vmatpush3.bf16.msra.mxu0 %v9385_v47  ;;  %v9451_v47 = vunpack.c.l.s8.bf16 %v188_v42 }
  0x88   :  { %9418 = vmatpush3.bf16.msra.mxu1 %v9417_v48  ;;  %9388 = vmatprep.subr.bf16.mxu0 %v9387_v49  ;;  %v184_v48 = vld [vmem:[#allocation3 + $0x98] sm:$0xff]  ;;  %v9483_v49 = vunpack.c.l.s8.bf16 %v196_v43 }
  0x89   :  { %9420 = vmatprep.subr.bf16.mxu1 %v9419_v50  ;;  %v192_v50 = vld [vmem:[#allocation3 + $0xd8] sm:$0xff]  ;;  %v9453_v52 = vunpack.c.l.s8.bf16 %v184_v48 }
  0x8a   :  { %v9489_v0 = vunpack.c.h.s8.bf16 %v192_v50 }
  0x8b   :  { %9390 = vmatpush3.bf16.msra.mxu0 %v9389_v53  ;;  %v9485_v53 = vunpack.c.l.s8.bf16 %v192_v50 }
  0x8c   :  { %9422 = vmatpush3.bf16.msra.mxu1 %v9421_v54  ;;  %9392 = vmatprep.subr.bf16.mxu0 %v9391_v55  ;;  %v9455_v54 = vunpack.c.h.s8.bf16 %v188_v42  ;;  %v9487_v55 = vunpack.c.h.s8.bf16 %v196_v43  ;;  %v204_v42 = vld [vmem:[#allocation3 + $0x138] sm:$0xff] }
  0x8d   :  { %9424 = vmatprep.subr.bf16.mxu1 %v9423_v56  ;;  %v201_v56 = vld [vmem:[#allocation3 + $0x120] sm:$0xff]  ;;  %v212_v43 = vld [vmem:[#allocation3 + $0x178] sm:$0xff] }
  0x8e   :  { %v9495_v11 = vunpack.c.h.s8.bf16 %v201_v56 }
  0x8f   :  { %9394 = vmatpush3.bf16.msra.mxu0 %v9393_v61  ;;  %v11244_v61 = vsub.s32 4, %v11206_v22 }
  0x90   :  { %9426 = vmatpush3.bf16.msra.mxu1 %v9425_v62  ;;  %9428 = vmatprep.subr.bf16.mxu0 %v9427_v63  ;;  %v11247_v62 = vsub.s32 6, %v11206_v22  ;;  %v9457_v63 = vunpack.c.h.s8.bf16 %v184_v48  ;;  %v9493_v22 = vunpack.c.l.s8.bf16 %v197_v2  ;;  %v9547_v48 = vunpack.c.l.s8.bf16 %v212_v43 }
  0x91   :  { %9460 = vmatprep.subr.bf16.mxu1 %v9459_v1  ;;  %v9491_v1 = vunpack.c.l.s8.bf16 %v201_v56 }
  0x92   :  { %4179 = vmatmul.mubr.f32.vlgmr.msra.gmra.mrb[0].mxu0 %v3637_v5  ;;  %v9523_v5 = vunpack.c.l.s8.bf16 %v209_v57 }
  0x93   :  { %4249 = vmatmul.mubr.f32.vlgmr.msra.gmra.mrb[0].mxu1 %v3645_v6  ;;  %9430 = vmatpush3.bf16.msra.mxu0 %v9429_v7  ;;  %v205_v6 = vld [vmem:[#allocation3 + $0x140] sm:$0xff]  ;;  %v11249_v7 = vmin.f32 %v142_v58, 1.0 }
  0x94   :  { %9462 = vmatpush3.bf16.msra.mxu1 %v9461_v8  ;;  %9432 = vmatprep.subr.bf16.mxu0 %v9431_v9  ;;  %v3653_v8 = vrot.slane %v11214_v38, %v11244_v61  ;;  %v3661_v9 = vrot.slane %v11214_v38, %v11247_v62  ;;  %v9497_v38 = vunpack.c.h.s8.bf16 %v197_v2 }
  0x95   :  { %9464 = vmatprep.subr.bf16.mxu1 %v9463_v10  ;;  %4318 = vmatprep.mubr.f32.mxu0 %v3657_v13  ;;  %v9525_v10 = vunpack.c.l.s8.bf16 %v205_v6  ;;  %v202_v13 = vld [vmem:[#allocation3 + $0x128] sm:$0xff]  ;;  %v3669_v2 = vrot.slane %v11249_v7, %v11221_v59 }
  0x96   :  { %4388 = vmatprep.mubr.f32.mxu1 %v3665_v14  ;;  %v210_v14 = vld [vmem:[#allocation3 + $0x168] sm:$0xff]  ;;  %v9499_v18 = vunpack.c.l.s8.bf16 %v202_v13 }
  0x97   :  { %9434 = vmatpush3.bf16.msra.mxu0 %v9433_v15  ;;  %v3673_v15 = vrot.slane %v11249_v7, %v11209_v31  ;;  %v9531_v20 = vunpack.c.l.s8.bf16 %v210_v14  ;;  %v9535_v26 = vunpack.c.h.s8.bf16 %v210_v14 }
  0x98   :  { %9466 = vmatpush3.bf16.msra.mxu1 %v9465_v16  ;;  %9436 = vmatprep.subr.bf16.mxu0 %v9435_v17  ;;  %v3681_v16 = vrot.slane %v11249_v7, %v11212_v37  ;;  %v9529_v17 = vunpack.c.h.s8.bf16 %v205_v6 }
  0x99   :  { %9468 = vmatprep.subr.bf16.mxu1 %v9467_v19  ;;  %v198_v19 = vld [vmem:[#allocation3 + $0x108] sm:$0xff] }
  0x9b   :  { %9438 = vmatpush3.bf16.msra.mxu0 %v9437_v21  ;;  %v206_v21 = vld [vmem:[#allocation3 + $0x148] sm:$0xff] }
  0x9c   :  { %9470 = vmatpush3.bf16.msra.mxu1 %v9469_v23  ;;  %9440 = vmatprep.subr.bf16.mxu0 %v9439_v24  ;;  %v9501_v23 = vunpack.c.l.s8.bf16 %v198_v19  ;;  %v9533_v24 = vunpack.c.l.s8.bf16 %v206_v21 }
  0x9d   :  { %9472 = vmatprep.subr.bf16.mxu1 %v9471_v25  ;;  %v9503_v25 = vunpack.c.h.s8.bf16 %v202_v13  ;;  %v3697_v13 = vrot.slane %v11249_v7, %v11230_v4 }
  0x9f   :  { %9442 = vmatpush3.bf16.msra.mxu0 %v9441_v28  ;;  %v211_v28 = vld [vmem:[#allocation3 + $0x170] sm:$0xff] }
  0xa0   :  { %9474 = vmatpush3.bf16.msra.mxu1 %v9473_v29  ;;  %9444 = vmatprep.subr.bf16.mxu0 %v9443_v30  ;;  %v9505_v29 = vunpack.c.h.s8.bf16 %v198_v19  ;;  %v9537_v30 = vunpack.c.h.s8.bf16 %v206_v21  ;;  %v9539_v34 = vunpack.c.l.s8.bf16 %v211_v28 }
  0xa1   :  { %9476 = vmatprep.subr.bf16.mxu1 %v9475_v33  ;;  %v199_v33 = vld [vmem:[#allocation3 + $0x110] sm:$0xff] }
  0xa2   :  { %v9513_v44 = vunpack.c.h.s8.bf16 %v199_v33 }
  0xa3   :  { %9446 = vmatpush3.bf16.msra.mxu0 %v9445_v36  ;;  %v9509_v36 = vunpack.c.l.s8.bf16 %v199_v33  ;;  %v107_v33 = vld [vmem:[%s11544_s0 + $0x10] sm:$0xff] }
  0xa4   :  { %9478 = vmatpush3.bf16.msra.mxu1 %v9477_v39  ;;  %9448 = vmatprep.subr.bf16.mxu0 %v9447_v40  ;;  %v9541_v39 = vunpack.c.l.s8.bf16 %v207_v35  ;;  %v9511_v40 = vunpack.c.h.s8.bf16 %v203_v27 }
  0xa5   :  { %9480 = vmatprep.subr.bf16.mxu1 %v9479_v41  ;;  %v9543_v41 = vunpack.c.h.s8.bf16 %v211_v28 }
  0xa7   :  { %9450 = vmatpush3.bf16.msra.mxu0 %v9449_v45  ;;  %v9545_v45 = vunpack.c.h.s8.bf16 %v207_v35 }
  0xa8   :  { %9482 = vmatpush3.bf16.msra.mxu1 %v9481_v46  ;;  %9452 = vmatprep.subr.bf16.mxu0 %v9451_v47  ;;  %v9515_v46 = vunpack.c.l.s8.bf16 %v204_v42  ;;  %v200_v47 = vld [vmem:[#allocation3 + $0x118] sm:$0xff] }
  0xa9   :  { %9484 = vmatprep.subr.bf16.mxu1 %v9483_v49  ;;  %v208_v49 = vld [vmem:[#allocation3 + $0x158] sm:$0xff]  ;;  %v9517_v50 = vunpack.c.l.s8.bf16 %v200_v47  ;;  %v9521_v56 = vunpack.c.h.s8.bf16 %v200_v47 }
  0xaa   :  { %v9549_v51 = vunpack.c.l.s8.bf16 %v208_v49  ;;  %v9553_v57 = vunpack.c.h.s8.bf16 %v208_v49 }
  0xab   :  { %9454 = vmatpush3.bf16.msra.mxu0 %v9453_v52  ;;  %v9519_v52 = vunpack.c.h.s8.bf16 %v204_v42  ;;  %v119_v42 = vmul.f32 0.5, %v107_v33  ;;  %v239_v33 = vld [vmem:[#allocation3 + $0x250] sm:$0xff] }
  0xac   :  { %9486 = vmatpush3.bf16.msra.mxu1 %v9485_v53  ;;  %9456 = vmatprep.subr.bf16.mxu0 %v9455_v54  ;;  %v9551_v53 = vunpack.c.h.s8.bf16 %v212_v43  ;;  %v217_v54 = vld [vmem:[#allocation3 + $0x1a0] sm:$0xff] }
  0xad   :  { %9488 = vmatprep.subr.bf16.mxu1 %v9487_v55  ;;  %v225_v55 = vld [vmem:[#allocation3 + $0x1e0] sm:$0xff]  ;;  %v9555_v58 = vunpack.c.l.s8.bf16 %v217_v54  ;;  %v131_v49 = vadd.f32 0.5, %v119_v42 }
  0xaf   :  { %9458 = vmatpush3.bf16.msra.mxu0 %v9457_v63  ;;  %v213_v63 = vld [vmem:[#allocation3 + $0x180] sm:$0xff] }
  0xb0   :  { %9490 = vmatpush3.bf16.msra.mxu1 %v9489_v0  ;;  %9492 = vmatprep.subr.bf16.mxu0 %v9491_v1  ;;  %v9587_v0 = vunpack.c.l.s8.bf16 %v225_v55  ;;  %v221_v1 = vld [vmem:[#allocation3 + $0x1c0] sm:$0xff]  ;;  %v9557_v6 = vunpack.c.l.s8.bf16 %v213_v63  ;;  %v9561_v14 = vunpack.c.h.s8.bf16 %v213_v63 }
  0xb1   :  { %9524 = vmatprep.subr.bf16.mxu1 %v9523_v5  ;;  %v3677_v5 = vrot.slane %v11249_v7, %v11224_v60 }
  0xb2   :  { %4319 = vmatmul.mubr.f32.vlgmr.msra.gmra.mrb[2].mxu0 %v3653_v8  ;;  %v9589_v8 = vunpack.c.l.s8.bf16 %v221_v1 }
  0xb3   :  { %4389 = vmatmul.mubr.f32.vlgmr.msra.gmra.mrb[2].mxu1 %v3661_v9  ;;  %9494 = vmatpush3.bf16.msra.mxu0 %v9493_v22  ;;  %v9559_v9 = vunpack.c.h.s8.bf16 %v217_v54  ;;  %v9591_v22 = vunpack.c.h.s8.bf16 %v225_v55  ;;  %v233_v54 = vld [vmem:[#allocation3 + $0x220] sm:$0xff] }
  0xb4   :  { %9526 = vmatpush3.bf16.msra.mxu1 %v9525_v10  ;;  %9496 = vmatprep.subr.bf16.mxu0 %v9495_v11  ;;  %v218_v10 = vld [vmem:[#allocation3 + $0x1a8] sm:$0xff]  ;;  %v241_v55 = vld [vmem:[#allocation3 + $0x260] sm:$0xff]  ;;  %v9619_v63 = vunpack.c.l.s8.bf16 %v233_v54 }
  0xb5   :  { %9528 = vmatprep.subr.bf16.mxu1 %v9527_v12  ;;  %4458 = vmatprep.mubr.f32.mxu0 %v3673_v15  ;;  %v226_v11 = vld [vmem:[#allocation3 + $0x1e8] sm:$0xff]  ;;  %v3689_v12 = vrot.slane %v11249_v7, %v11227_v3  ;;  %v9593_v15 = vunpack.c.h.s8.bf16 %v221_v1  ;;  %v9567_v21 = vunpack.c.h.s8.bf16 %v218_v10  ;;  %v9651_v1 = vunpack.c.l.s8.bf16 %v241_v55 }
  0xb6   :  { %4528 = vmatprep.mubr.f32.mxu1 %v3681_v16  ;;  %v9563_v16 = vunpack.c.l.s8.bf16 %v218_v10  ;;  %v9623_v10 = vunpack.c.h.s8.bf16 %v233_v54 }
  0xb7   :  { %9498 = vmatpush3.bf16.msra.mxu0 %v9497_v38  ;;  %v214_v38 = vld [vmem:[#allocation3 + $0x188] sm:$0xff] }
  0xb8   :  { %9530 = vmatpush3.bf16.msra.mxu1 %v9529_v17  ;;  %9500 = vmatprep.subr.bf16.mxu0 %v9499_v18  ;;  %v9595_v17 = vunpack.c.l.s8.bf16 %v226_v11  ;;  %v222_v18 = vld [vmem:[#allocation3 + $0x1c8] sm:$0xff]  ;;  %v9565_v19 = vunpack.c.l.s8.bf16 %v214_v38 }
  0xb9   :  { %9532 = vmatprep.subr.bf16.mxu1 %v9531_v20  ;;  %v9597_v20 = vunpack.c.l.s8.bf16 %v222_v18  ;;  %v9601_v27 = vunpack.c.h.s8.bf16 %v222_v18 }
  0xbb   :  { %9502 = vmatpush3.bf16.msra.mxu0 %v9501_v23  ;;  %v9599_v23 = vunpack.c.h.s8.bf16 %v226_v11  ;;  %v9655_v11 = vunpack.c.h.s8.bf16 %v241_v55 }
  0xbc   :  { %9534 = vmatpush3.bf16.msra.mxu1 %v9533_v24  ;;  %9504 = vmatprep.subr.bf16.mxu0 %v9503_v25  ;;  %v219_v24 = vld [vmem:[#allocation3 + $0x1b0] sm:$0xff] }
  0xbd   :  { %9536 = vmatprep.subr.bf16.mxu1 %v9535_v26  ;;  %v227_v25 = vld [vmem:[#allocation3 + $0x1f0] sm:$0xff]  ;;  %v9569_v26 = vunpack.c.h.s8.bf16 %v214_v38  ;;  %v9571_v28 = vunpack.c.l.s8.bf16 %v219_v24 }
  0xbf   :  { %9506 = vmatpush3.bf16.msra.mxu0 %v9505_v29  ;;  %v215_v29 = vld [vmem:[#allocation3 + $0x190] sm:$0xff] }
  0xc0   :  { %9538 = vmatpush3.bf16.msra.mxu1 %v9537_v30  ;;  %9508 = vmatprep.subr.bf16.mxu0 %v9507_v32  ;;  %v9603_v30 = vunpack.c.l.s8.bf16 %v227_v25  ;;  %v223_v32 = vld [vmem:[#allocation3 + $0x1d0] sm:$0xff]  ;;  %v9577_v43 = vunpack.c.h.s8.bf16 %v215_v29 }
  0xc1   :  { %9540 = vmatprep.subr.bf16.mxu1 %v9539_v34  ;;  %v9573_v34 = vunpack.c.l.s8.bf16 %v215_v29  ;;  %v9605_v35 = vunpack.c.l.s8.bf16 %v223_v32 }
  0xc3   :  { %9510 = vmatpush3.bf16.msra.mxu0 %v9509_v36  ;;  %v9575_v36 = vunpack.c.h.s8.bf16 %v219_v24 }
  0xc4   :  { %9542 = vmatpush3.bf16.msra.mxu1 %v9541_v39  ;;  %9512 = vmatprep.subr.bf16.mxu0 %v9511_v40  ;;  %v9607_v39 = vunpack.c.h.s8.bf16 %v227_v25  ;;  %v220_v40 = vld [vmem:[#allocation3 + $0x1b8] sm:$0xff]  ;;  %v235_v25 = vld [vmem:[#allocation3 + $0x230] sm:$0xff] }
  0xc5   :  { %9544 = vmatprep.subr.bf16.mxu1 %v9543_v41  ;;  %v228_v41 = vld [vmem:[#allocation3 + $0x1f8] sm:$0xff]  ;;  %v9635_v29 = vunpack.c.l.s8.bf16 %v235_v25 }
  0xc6   :  { %v9611_v47 = vunpack.c.l.s8.bf16 %v228_v41 }
  0xc7   :  { %9514 = vmatpush3.bf16.msra.mxu0 %v9513_v44  ;;  %v9609_v44 = vunpack.c.h.s8.bf16 %v223_v32 }
  0xc8   :  { %9546 = vmatpush3.bf16.msra.mxu1 %v9545_v45  ;;  %9516 = vmatprep.subr.bf16.mxu0 %v9515_v46  ;;  %v9579_v45 = vunpack.c.l.s8.bf16 %v220_v40  ;;  %v216_v46 = vld [vmem:[#allocation3 + $0x198] sm:$0xff] }
  0xc9   :  { %9548 = vmatprep.subr.bf16.mxu1 %v9547_v48  ;;  %v224_v48 = vld [vmem:[#allocation3 + $0x1d8] sm:$0xff] }
  0xcb   :  { %9518 = vmatpush3.bf16.msra.mxu0 %v9517_v50  ;;  %v9581_v50 = vunpack.c.l.s8.bf16 %v216_v46 }
  0xcc   :  { %9550 = vmatpush3.bf16.msra.mxu1 %v9549_v51  ;;  %9520 = vmatprep.subr.bf16.mxu0 %v9519_v52  ;;  %v9613_v51 = vunpack.c.l.s8.bf16 %v224_v48  ;;  %v9583_v52 = vunpack.c.h.s8.bf16 %v220_v40  ;;  %v236_v40 = vld [vmem:[#allocation3 + $0x238] sm:$0xff] }
  0xcd   :  { %9552 = vmatprep.subr.bf16.mxu1 %v9551_v53  ;;  %v9615_v53 = vunpack.c.h.s8.bf16 %v228_v41  ;;  %v244_v41 = vld [vmem:[#allocation3 + $0x278] sm:$0xff] }
  0xcf   :  { %9522 = vmatpush3.bf16.msra.mxu0 %v9521_v56  ;;  %v143_v56 = vmax.f32 %v131_v49, 0.0 }
  0xd0   :  { %9554 = vmatpush3.bf16.msra.mxu1 %v9553_v57  ;;  %9556 = vmatprep.subr.bf16.mxu0 %v9555_v58  ;;  %v9585_v57 = vunpack.c.h.s8.bf16 %v216_v46  ;;  %v9617_v58 = vunpack.c.h.s8.bf16 %v224_v48  ;;  %v9675_v46 = vunpack.c.l.s8.bf16 %v244_v41 }
  0xd1   :  { %9588 = vmatprep.subr.bf16.mxu1 %v9587_v0  ;;  %v229_v0 = vld [vmem:[#allocation3 + $0x200] sm:$0xff] }
  0xd2   :  { %4459 = vmatmul.mubr.f32.vlgmr.msra.gmra.mrb[4].mxu0 %v3669_v2  ;;  %v237_v2 = vld [vmem:[#allocation3 + $0x240] sm:$0xff] }
  0xd3   :  { %4529 = vmatmul.mubr.f32.vlgmr.msra.gmra.mrb[4].mxu1 %v3677_v5  ;;  %9558 = vmatpush3.bf16.msra.mxu0 %v9557_v6  ;;  %v11270_v5 = vmin.f32 %v143_v56, 1.0  ;;  %v3685_v6 = vrot.slane %v11249_v7, %v11244_v61 }
  0xd4   :  { %9590 = vmatpush3.bf16.msra.mxu1 %v9589_v8  ;;  %9560 = vmatprep.subr.bf16.mxu0 %v9559_v9  ;;  %v3693_v8 = vrot.slane %v11249_v7, %v11247_v62  ;;  %v9621_v9 = vunpack.c.l.s8.bf16 %v229_v0  ;;  %v9625_v7 = vunpack.c.h.s8.bf16 %v229_v0 }
  0xd5   :  { %9592 = vmatprep.subr.bf16.mxu1 %v9591_v22  ;;  %4598 = vmatprep.mubr.f32.mxu0 %v3689_v12  ;;  %v9653_v22 = vunpack.c.l.s8.bf16 %v237_v2  ;;  %v234_v12 = vld [vmem:[#allocation3 + $0x228] sm:$0xff]  ;;  %v3701_v0 = vrot.slane %v11270_v5, %v11221_v59 }
  0xd6   :  { %4668 = vmatprep.mubr.f32.mxu1 %v3697_v13  ;;  %v242_v13 = vld [vmem:[#allocation3 + $0x268] sm:$0xff]  ;;  %v9627_v38 = vunpack.c.l.s8.bf16 %v234_v12 }
  0xd7   :  { %9562 = vmatpush3.bf16.msra.mxu0 %v9561_v14  ;;  %v3705_v14 = vrot.slane %v11270_v5, %v11209_v31  ;;  %v9659_v18 = vunpack.c.l.s8.bf16 %v242_v13  ;;  %v9663_v24 = vunpack.c.h.s8.bf16 %v242_v13 }
  0xd8   :  { %9594 = vmatpush3.bf16.msra.mxu1 %v9593_v15  ;;  %9564 = vmatprep.subr.bf16.mxu0 %v9563_v16  ;;  %v3713_v15 = vrot.slane %v11270_v5, %v11212_v37  ;;  %v9657_v16 = vunpack.c.h.s8.bf16 %v237_v2 }
  0xd9   :  { %9596 = vmatprep.subr.bf16.mxu1 %v9595_v17  ;;  %v230_v17 = vld [vmem:[#allocation3 + $0x208] sm:$0xff] }
  0xdb   :  { %9566 = vmatpush3.bf16.msra.mxu0 %v9565_v19  ;;  %v238_v19 = vld [vmem:[#allocation3 + $0x248] sm:$0xff] }
  0xdc   :  { %9598 = vmatpush3.bf16.msra.mxu1 %v9597_v20  ;;  %9568 = vmatprep.subr.bf16.mxu0 %v9567_v21  ;;  %v9629_v20 = vunpack.c.l.s8.bf16 %v230_v17  ;;  %v9661_v21 = vunpack.c.l.s8.bf16 %v238_v19 }
  0xdd   :  { %9600 = vmatprep.subr.bf16.mxu1 %v9599_v23  ;;  %v9631_v23 = vunpack.c.h.s8.bf16 %v234_v12  ;;  %v3729_v12 = vrot.slane %v11270_v5, %v11230_v4 }
  0xdf   :  { %9570 = vmatpush3.bf16.msra.mxu0 %v9569_v26  ;;  %v243_v26 = vld [vmem:[#allocation3 + $0x270] sm:$0xff] }
  0xe0   :  { %9602 = vmatpush3.bf16.msra.mxu1 %v9601_v27  ;;  %9572 = vmatprep.subr.bf16.mxu0 %v9571_v28  ;;  %v9633_v27 = vunpack.c.h.s8.bf16 %v230_v17  ;;  %v9665_v28 = vunpack.c.h.s8.bf16 %v238_v19  ;;  %v9667_v32 = vunpack.c.l.s8.bf16 %v243_v26 }
  0xe1   :  { %9604 = vmatprep.subr.bf16.mxu1 %v9603_v30  ;;  %v231_v30 = vld [vmem:[#allocation3 + $0x210] sm:$0xff] }
  0xe2   :  { %v9641_v42 = vunpack.c.h.s8.bf16 %v231_v30 }
  0xe3   :  { %9574 = vmatpush3.bf16.msra.mxu0 %v9573_v34  ;;  %v9637_v34 = vunpack.c.l.s8.bf16 %v231_v30  ;;  %v108_v30 = vld [vmem:[%s11544_s0 + $0x18] sm:$0xff] }
  0xe4   :  { %9606 = vmatpush3.bf16.msra.mxu1 %v9605_v35  ;;  %9576 = vmatprep.subr.bf16.mxu0 %v9575_v36  ;;  %v9669_v35 = vunpack.c.l.s8.bf16 %v239_v33  ;;  %v9639_v36 = vunpack.c.h.s8.bf16 %v235_v25 }
  0xe5   :  { %9608 = vmatprep.subr.bf16.mxu1 %v9607_v39  ;;  %v9671_v39 = vunpack.c.h.s8.bf16 %v243_v26 }
  0xe7   :  { %9578 = vmatpush3.bf16.msra.mxu0 %v9577_v43  ;;  %v9673_v43 = vunpack.c.h.s8.bf16 %v239_v33 }
  0xe8   :  { %9610 = vmatpush3.bf16.msra.mxu1 %v9609_v44  ;;  %9580 = vmatprep.subr.bf16.mxu0 %v9579_v45  ;;  %v9643_v44 = vunpack.c.l.s8.bf16 %v236_v40  ;;  %v232_v45 = vld [vmem:[#allocation3 + $0x218] sm:$0xff] }
  0xe9   :  { %9612 = vmatprep.subr.bf16.mxu1 %v9611_v47  ;;  %v240_v47 = vld [vmem:[#allocation3 + $0x258] sm:$0xff]  ;;  %v9645_v48 = vunpack.c.l.s8.bf16 %v232_v45  ;;  %v9649_v54 = vunpack.c.h.s8.bf16 %v232_v45 }
  0xea   :  { %v9677_v49 = vunpack.c.l.s8.bf16 %v240_v47  ;;  %v9681_v55 = vunpack.c.h.s8.bf16 %v240_v47 }
  0xeb   :  { %9582 = vmatpush3.bf16.msra.mxu0 %v9581_v50  ;;  %v9647_v50 = vunpack.c.h.s8.bf16 %v236_v40  ;;  %v120_v40 = vmul.f32 0.5, %v108_v30  ;;  %v271_v30 = vld [vmem:[#allocation3 + $0x350] sm:$0xff] }
  0xec   :  { %9614 = vmatpush3.bf16.msra.mxu1 %v9613_v51  ;;  %9584 = vmatprep.subr.bf16.mxu0 %v9583_v52  ;;  %v9679_v51 = vunpack.c.h.s8.bf16 %v244_v41  ;;  %v249_v52 = vld [vmem:[#allocation3 + $0x2a0] sm:$0xff] }
  0xed   :  { %9616 = vmatprep.subr.bf16.mxu1 %v9615_v53  ;;  %v257_v53 = vld [vmem:[#allocation3 + $0x2e0] sm:$0xff]  ;;  %v9683_v56 = vunpack.c.l.s8.bf16 %v249_v52  ;;  %v132_v47 = vadd.f32 0.5, %v120_v40 }
  0xef   :  { %9586 = vmatpush3.bf16.msra.mxu0 %v9585_v57  ;;  %v245_v57 = vld [vmem:[#allocation3 + $0x280] sm:$0xff] }
  0xf0   :  { %9618 = vmatpush3.bf16.msra.mxu1 %v9617_v58  ;;  %9620 = vmatprep.subr.bf16.mxu0 %v9619_v63  ;;  %v9715_v58 = vunpack.c.l.s8.bf16 %v257_v53  ;;  %v253_v63 = vld [vmem:[#allocation3 + $0x2c0] sm:$0xff]  ;;  %v9685_v2 = vunpack.c.l.s8.bf16 %v245_v57  ;;  %v9689_v13 = vunpack.c.h.s8.bf16 %v245_v57 }
  0xf1   :  { %9652 = vmatprep.subr.bf16.mxu1 %v9651_v1  ;;  %v3709_v1 = vrot.slane %v11270_v5, %v11224_v60 }
  0xf2   :  { %4599 = vmatmul.mubr.f32.vlgmr.msra.gmra.mrb[6].mxu0 %v3685_v6  ;;  %v9717_v6 = vunpack.c.l.s8.bf16 %v253_v63 }
  0xf3   :  { %4669 = vmatmul.mubr.f32.vlgmr.msra.gmra.mrb[6].mxu1 %v3693_v8  ;;  %9622 = vmatpush3.bf16.msra.mxu0 %v9621_v9  ;;  %v9687_v8 = vunpack.c.h.s8.bf16 %v249_v52  ;;  %v9719_v9 = vunpack.c.h.s8.bf16 %v257_v53  ;;  %v265_v52 = vld [vmem:[#allocation3 + $0x320] sm:$0xff] }
  0xf4   :  { %9654 = vmatpush3.bf16.msra.mxu1 %v9653_v22  ;;  %9624 = vmatprep.subr.bf16.mxu0 %v9623_v10  ;;  %v250_v22 = vld [vmem:[#allocation3 + $0x2a8] sm:$0xff]  ;;  %v273_v53 = vld [vmem:[#allocation3 + $0x360] sm:$0xff]  ;;  %v9747_v57 = vunpack.c.l.s8.bf16 %v265_v52 }
  0xf5   :  { %9656 = vmatprep.subr.bf16.mxu1 %v9655_v11  ;;  %4738 = vmatprep.mubr.f32.mxu0 %v3705_v14  ;;  %v258_v10 = vld [vmem:[#allocation3 + $0x2e8] sm:$0xff]  ;;  %v3721_v11 = vrot.slane %v11270_v5, %v11227_v3  ;;  %v9721_v14 = vunpack.c.h.s8.bf16 %v253_v63  ;;  %v9695_v19 = vunpack.c.h.s8.bf16 %v250_v22  ;;  %v9779_v63 = vunpack.c.l.s8.bf16 %v273_v53 }
  0xf6   :  { %4808 = vmatprep.mubr.f32.mxu1 %v3713_v15  ;;  %v9691_v15 = vunpack.c.l.s8.bf16 %v250_v22  ;;  %v9751_v22 = vunpack.c.h.s8.bf16 %v265_v52 }
  0xf7   :  { %9626 = vmatpush3.bf16.msra.mxu0 %v9625_v7  ;;  %v246_v7 = vld [vmem:[#allocation3 + $0x288] sm:$0xff] }
  0xf8   :  { %9658 = vmatpush3.bf16.msra.mxu1 %v9657_v16  ;;  %9628 = vmatprep.subr.bf16.mxu0 %v9627_v38  ;;  %v9723_v16 = vunpack.c.l.s8.bf16 %v258_v10  ;;  %v254_v38 = vld [vmem:[#allocation3 + $0x2c8] sm:$0xff]  ;;  %v9693_v17 = vunpack.c.l.s8.bf16 %v246_v7 }
  0xf9   :  { %9660 = vmatprep.subr.bf16.mxu1 %v9659_v18  ;;  %v9725_v18 = vunpack.c.l.s8.bf16 %v254_v38  ;;  %v9729_v25 = vunpack.c.h.s8.bf16 %v254_v38 }
  0xfb   :  { %9630 = vmatpush3.bf16.msra.mxu0 %v9629_v20  ;;  %v9727_v20 = vunpack.c.h.s8.bf16 %v258_v10  ;;  %v9783_v10 = vunpack.c.h.s8.bf16 %v273_v53 }
  0xfc   :  { %9662 = vmatpush3.bf16.msra.mxu1 %v9661_v21  ;;  %9632 = vmatprep.subr.bf16.mxu0 %v9631_v23  ;;  %v251_v21 = vld [vmem:[#allocation3 + $0x2b0] sm:$0xff] }
  0xfd   :  { %9664 = vmatprep.subr.bf16.mxu1 %v9663_v24  ;;  %v259_v23 = vld [vmem:[#allocation3 + $0x2f0] sm:$0xff]  ;;  %v9697_v24 = vunpack.c.h.s8.bf16 %v246_v7  ;;  %v9699_v26 = vunpack.c.l.s8.bf16 %v251_v21 }
  0xff   :  { %9634 = vmatpush3.bf16.msra.mxu0 %v9633_v27  ;;  %v247_v27 = vld [vmem:[#allocation3 + $0x290] sm:$0xff] }
 0x100   :  { %9666 = vmatpush3.bf16.msra.mxu1 %v9665_v28  ;;  %9636 = vmatprep.subr.bf16.mxu0 %v9635_v29  ;;  %v9731_v28 = vunpack.c.l.s8.bf16 %v259_v23  ;;  %v255_v29 = vld [vmem:[#allocation3 + $0x2d0] sm:$0xff]  ;;  %v9705_v41 = vunpack.c.h.s8.bf16 %v247_v27 }
 0x101   :  { %9668 = vmatprep.subr.bf16.mxu1 %v9667_v32  ;;  %v9701_v32 = vunpack.c.l.s8.bf16 %v247_v27  ;;  %v9733_v33 = vunpack.c.l.s8.bf16 %v255_v29 }
 0x103   :  { %9638 = vmatpush3.bf16.msra.mxu0 %v9637_v34  ;;  %v9703_v34 = vunpack.c.h.s8.bf16 %v251_v21 }
 0x104   :  { %9670 = vmatpush3.bf16.msra.mxu1 %v9669_v35  ;;  %9640 = vmatprep.subr.bf16.mxu0 %v9639_v36  ;;  %v9735_v35 = vunpack.c.h.s8.bf16 %v259_v23  ;;  %v252_v36 = vld [vmem:[#allocation3 + $0x2b8] sm:$0xff]  ;;  %v267_v23 = vld [vmem:[#allocation3 + $0x330] sm:$0xff] }
 0x105   :  { %9672 = vmatprep.subr.bf16.mxu1 %v9671_v39  ;;  %v260_v39 = vld [vmem:[#allocation3 + $0x2f8] sm:$0xff]  ;;  %v9763_v27 = vunpack.c.l.s8.bf16 %v267_v23 }
 0x106   :  { %v9739_v45 = vunpack.c.l.s8.bf16 %v260_v39 }
 0x107   :  { %9642 = vmatpush3.bf16.msra.mxu0 %v9641_v42  ;;  %v9737_v42 = vunpack.c.h.s8.bf16 %v255_v29 }
 0x108   :  { %9674 = vmatpush3.bf16.msra.mxu1 %v9673_v43  ;;  %9644 = vmatprep.subr.bf16.mxu0 %v9643_v44  ;;  %v9707_v43 = vunpack.c.l.s8.bf16 %v252_v36  ;;  %v248_v44 = vld [vmem:[#allocation3 + $0x298] sm:$0xff] }
 0x109   :  { %9676 = vmatprep.subr.bf16.mxu1 %v9675_v46  ;;  %v256_v46 = vld [vmem:[#allocation3 + $0x2d8] sm:$0xff] }
 0x10b   :  { %9646 = vmatpush3.bf16.msra.mxu0 %v9645_v48  ;;  %v9709_v48 = vunpack.c.l.s8.bf16 %v248_v44 }
 0x10c   :  { %9678 = vmatpush3.bf16.msra.mxu1 %v9677_v49  ;;  %9648 = vmatprep.subr.bf16.mxu0 %v9647_v50  ;;  %v9741_v49 = vunpack.c.l.s8.bf16 %v256_v46  ;;  %v9711_v50 = vunpack.c.h.s8.bf16 %v252_v36  ;;  %v268_v36 = vld [vmem:[#allocation3 + $0x338] sm:$0xff] }
 0x10d   :  { %9680 = vmatprep.subr.bf16.mxu1 %v9679_v51  ;;  %v9743_v51 = vunpack.c.h.s8.bf16 %v260_v39  ;;  %v276_v39 = vld [vmem:[#allocation3 + $0x378] sm:$0xff] }
 0x10f   :  { %9650 = vmatpush3.bf16.msra.mxu0 %v9649_v54  ;;  %v144_v54 = vmax.f32 %v132_v47, 0.0 }
 0x110   :  { %9682 = vmatpush3.bf16.msra.mxu1 %v9681_v55  ;;  %9684 = vmatprep.subr.bf16.mxu0 %v9683_v56  ;;  %v9713_v55 = vunpack.c.h.s8.bf16 %v248_v44  ;;  %v9745_v56 = vunpack.c.h.s8.bf16 %v256_v46  ;;  %v9803_v44 = vunpack.c.l.s8.bf16 %v276_v39 }
 0x111   :  { %9716 = vmatprep.subr.bf16.mxu1 %v9715_v58  ;;  %v261_v58 = vld [vmem:[#allocation3 + $0x300] sm:$0xff] }
 0x112   :  { %4739 = vmatmul.mubr.f32.vlgmr.msra.gmra.mrb[8].mxu0 %v3701_v0  ;;  %v269_v0 = vld [vmem:[#allocation3 + $0x340] sm:$0xff] }
 0x113   :  { %4809 = vmatmul.mubr.f32.vlgmr.msra.gmra.mrb[8].mxu1 %v3709_v1  ;;  %9686 = vmatpush3.bf16.msra.mxu0 %v9685_v2  ;;  %v11291_v1 = vmin.f32 %v144_v54, 1.0  ;;  %v3717_v2 = vrot.slane %v11270_v5, %v11244_v61 }
 0x114   :  { %9718 = vmatpush3.bf16.msra.mxu1 %v9717_v6  ;;  %9688 = vmatprep.subr.bf16.mxu0 %v9687_v8  ;;  %v3725_v6 = vrot.slane %v11270_v5, %v11247_v62  ;;  %v9749_v8 = vunpack.c.l.s8.bf16 %v261_v58  ;;  %v9753_v5 = vunpack.c.h.s8.bf16 %v261_v58 }
 0x115   :  { %9720 = vmatprep.subr.bf16.mxu1 %v9719_v9  ;;  %4878 = vmatprep.mubr.f32.mxu0 %v3721_v11  ;;  %v9781_v9 = vunpack.c.l.s8.bf16 %v269_v0  ;;  %v266_v11 = vld [vmem:[#allocation3 + $0x328] sm:$0xff]  ;;  %v3733_v58 = vrot.slane %v11291_v1, %v11221_v59 }
 0x116   :  { %4948 = vmatprep.mubr.f32.mxu1 %v3729_v12  ;;  %v274_v12 = vld [vmem:[#allocation3 + $0x368] sm:$0xff]  ;;  %v9755_v7 = vunpack.c.l.s8.bf16 %v266_v11 }
 0x117   :  { %9690 = vmatpush3.bf16.msra.mxu0 %v9689_v13  ;;  %v3737_v13 = vrot.slane %v11291_v1, %v11209_v31  ;;  %v9787_v38 = vunpack.c.l.s8.bf16 %v274_v12  ;;  %v9791_v21 = vunpack.c.h.s8.bf16 %v274_v12 }
 0x118   :  { %9722 = vmatpush3.bf16.msra.mxu1 %v9721_v14  ;;  %9692 = vmatprep.subr.bf16.mxu0 %v9691_v15  ;;  %v3745_v14 = vrot.slane %v11291_v1, %v11212_v37  ;;  %v9785_v15 = vunpack.c.h.s8.bf16 %v269_v0 }
 0x119   :  { %9724 = vmatprep.subr.bf16.mxu1 %v9723_v16  ;;  %v262_v16 = vld [vmem:[#allocation3 + $0x308] sm:$0xff] }
 0x11b   :  { %9694 = vmatpush3.bf16.msra.mxu0 %v9693_v17  ;;  %v270_v17 = vld [vmem:[#allocation3 + $0x348] sm:$0xff] }
 0x11c   :  { %9726 = vmatpush3.bf16.msra.mxu1 %v9725_v18  ;;  %9696 = vmatprep.subr.bf16.mxu0 %v9695_v19  ;;  %v9757_v18 = vunpack.c.l.s8.bf16 %v262_v16  ;;  %v9789_v19 = vunpack.c.l.s8.bf16 %v270_v17 }
 0x11d   :  { %9728 = vmatprep.subr.bf16.mxu1 %v9727_v20  ;;  %v9759_v20 = vunpack.c.h.s8.bf16 %v266_v11  ;;  %v3761_v11 = vrot.slane %v11291_v1, %v11230_v4 }
 0x11f   :  { %9698 = vmatpush3.bf16.msra.mxu0 %v9697_v24  ;;  %v275_v24 = vld [vmem:[#allocation3 + $0x370] sm:$0xff] }
 0x120   :  { %9730 = vmatpush3.bf16.msra.mxu1 %v9729_v25  ;;  %9700 = vmatprep.subr.bf16.mxu0 %v9699_v26  ;;  %v9761_v25 = vunpack.c.h.s8.bf16 %v262_v16  ;;  %v9793_v26 = vunpack.c.h.s8.bf16 %v270_v17  ;;  %v9795_v29 = vunpack.c.l.s8.bf16 %v275_v24 }
 0x121   :  { %9732 = vmatprep.subr.bf16.mxu1 %v9731_v28  ;;  %v263_v28 = vld [vmem:[#allocation3 + $0x310] sm:$0xff] }
 0x122   :  { %v9769_v40 = vunpack.c.h.s8.bf16 %v263_v28 }
 0x123   :  { %9702 = vmatpush3.bf16.msra.mxu0 %v9701_v32  ;;  %v9765_v32 = vunpack.c.l.s8.bf16 %v263_v28  ;;  %v109_v28 = vld [vmem:[%s11544_s0 + $0x20] sm:$0xff] }
 0x124   :  { %9734 = vmatpush3.bf16.msra.mxu1 %v9733_v33  ;;  %9704 = vmatprep.subr.bf16.mxu0 %v9703_v34  ;;  %v9797_v33 = vunpack.c.l.s8.bf16 %v271_v30  ;;  %v9767_v34 = vunpack.c.h.s8.bf16 %v267_v23 }
 0x125   :  { %9736 = vmatprep.subr.bf16.mxu1 %v9735_v35  ;;  %v9799_v35 = vunpack.c.h.s8.bf16 %v275_v24 }
 0x127   :  { %9706 = vmatpush3.bf16.msra.mxu0 %v9705_v41  ;;  %v9801_v41 = vunpack.c.h.s8.bf16 %v271_v30 }
 0x128   :  { %9738 = vmatpush3.bf16.msra.mxu1 %v9737_v42  ;;  %9708 = vmatprep.subr.bf16.mxu0 %v9707_v43  ;;  %v9771_v42 = vunpack.c.l.s8.bf16 %v268_v36  ;;  %v264_v43 = vld [vmem:[#allocation3 + $0x318] sm:$0xff] }
 0x129   :  { %9740 = vmatprep.subr.bf16.mxu1 %v9739_v45  ;;  %v272_v45 = vld [vmem:[#allocation3 + $0x358] sm:$0xff]  ;;  %v9773_v46 = vunpack.c.l.s8.bf16 %v264_v43  ;;  %v9777_v52 = vunpack.c.h.s8.bf16 %v264_v43 }
 0x12a   :  { %v9805_v47 = vunpack.c.l.s8.bf16 %v272_v45  ;;  %v9809_v53 = vunpack.c.h.s8.bf16 %v272_v45 }
 0x12b   :  { %9710 = vmatpush3.bf16.msra.mxu0 %v9709_v48  ;;  %v9775_v48 = vunpack.c.h.s8.bf16 %v268_v36  ;;  %v121_v36 = vmul.f32 0.5, %v109_v28  ;;  %v299_v28 = vld [vmem:[#allocation3 + $0x430] sm:$0xff] }
 0x12c   :  { %9742 = vmatpush3.bf16.msra.mxu1 %v9741_v49  ;;  %9712 = vmatprep.subr.bf16.mxu0 %v9711_v50  ;;  %v9807_v49 = vunpack.c.h.s8.bf16 %v276_v39  ;;  %v281_v50 = vld [vmem:[#allocation3 + $0x3a0] sm:$0xff] }
 0x12d   :  { %9744 = vmatprep.subr.bf16.mxu1 %v9743_v51  ;;  %v289_v51 = vld [vmem:[#allocation3 + $0x3e0] sm:$0xff]  ;;  %v9811_v54 = vunpack.c.l.s8.bf16 %v281_v50 }
 0x12f   :  { %9714 = vmatpush3.bf16.msra.mxu0 %v9713_v55  ;;  %v277_v55 = vld [vmem:[#allocation3 + $0x380] sm:$0xff] }
 0x130   :  { %9746 = vmatpush3.bf16.msra.mxu1 %v9745_v56  ;;  %9748 = vmatprep.subr.bf16.mxu0 %v9747_v57  ;;  %v9843_v56 = vunpack.c.l.s8.bf16 %v289_v51  ;;  %v285_v57 = vld [vmem:[#allocation3 + $0x3c0] sm:$0xff]  ;;  %v9813_v0 = vunpack.c.l.s8.bf16 %v277_v55  ;;  %v9817_v12 = vunpack.c.h.s8.bf16 %v277_v55 }
 0x131   :  { %9780 = vmatprep.subr.bf16.mxu1 %v9779_v63  ;;  %v3741_v63 = vrot.slane %v11291_v1, %v11224_v60 }
 0x132   :  { %4879 = vmatmul.mubr.f32.vlgmr.msra.gmra.mrb[10].mxu0 %v3717_v2  ;;  %v9845_v2 = vunpack.c.l.s8.bf16 %v285_v57 }
 0x133   :  { %4949 = vmatmul.mubr.f32.vlgmr.msra.gmra.mrb[10].mxu1 %v3725_v6  ;;  %9750 = vmatpush3.bf16.msra.mxu0 %v9749_v8  ;;  %v9815_v6 = vunpack.c.h.s8.bf16 %v281_v50  ;;  %v9847_v8 = vunpack.c.h.s8.bf16 %v289_v51 }
 0x134   :  { %9782 = vmatpush3.bf16.msra.mxu1 %v9781_v9  ;;  %9752 = vmatprep.subr.bf16.mxu0 %v9751_v22  ;;  %v282_v9 = vld [vmem:[#allocation3 + $0x3a8] sm:$0xff] }
 0x135   :  { %9784 = vmatprep.subr.bf16.mxu1 %v9783_v10  ;;  %5018 = vmatprep.mubr.f32.mxu0 %v3737_v13  ;;  %v290_v22 = vld [vmem:[#allocation3 + $0x3e8] sm:$0xff]  ;;  %v3753_v10 = vrot.slane %v11291_v1, %v11227_v3  ;;  %v9849_v13 = vunpack.c.h.s8.bf16 %v285_v57  ;;  %v9823_v17 = vunpack.c.h.s8.bf16 %v282_v9  ;;  %v297_v57 = vld [vmem:[#allocation3 + $0x420] sm:$0xff] }
 0x136   :  { %5088 = vmatprep.mubr.f32.mxu1 %v3745_v14  ;;  %v9819_v14 = vunpack.c.l.s8.bf16 %v282_v9 }
 0x137   :  { %9754 = vmatpush3.bf16.msra.mxu0 %v9753_v5  ;;  %v278_v5 = vld [vmem:[#allocation3 + $0x388] sm:$0xff] }
 0x138   :  { %9786 = vmatpush3.bf16.msra.mxu1 %v9785_v15  ;;  %9756 = vmatprep.subr.bf16.mxu0 %v9755_v7  ;;  %v9851_v15 = vunpack.c.l.s8.bf16 %v290_v22  ;;  %v286_v7 = vld [vmem:[#allocation3 + $0x3c8] sm:$0xff]  ;;  %v9821_v16 = vunpack.c.l.s8.bf16 %v278_v5 }
 0x139   :  { %9788 = vmatprep.subr.bf16.mxu1 %v9787_v38  ;;  %v9853_v38 = vunpack.c.l.s8.bf16 %v286_v7  ;;  %v9857_v23 = vunpack.c.h.s8.bf16 %v286_v7  ;;  %v298_v7 = vld [vmem:[#allocation3 + $0x428] sm:$0xff] }
 0x13b   :  { %9758 = vmatpush3.bf16.msra.mxu0 %v9757_v18  ;;  %v9855_v18 = vunpack.c.h.s8.bf16 %v290_v22  ;;  %v301_v22 = vld [vmem:[#allocation3 + $0x440] sm:$0xff] }
 0x13c   :  { %9790 = vmatpush3.bf16.msra.mxu1 %v9789_v19  ;;  %9760 = vmatprep.subr.bf16.mxu0 %v9759_v20  ;;  %v283_v19 = vld [vmem:[#allocation3 + $0x3b0] sm:$0xff] }
 0x13d   :  { %9792 = vmatprep.subr.bf16.mxu1 %v9791_v21  ;;  %v291_v20 = vld [vmem:[#allocation3 + $0x3f0] sm:$0xff]  ;;  %v9825_v21 = vunpack.c.h.s8.bf16 %v278_v5  ;;  %v9827_v24 = vunpack.c.l.s8.bf16 %v283_v19  ;;  %v9879_v5 = vunpack.c.h.s8.bf16 %v297_v57 }
 0x13f   :  { %9762 = vmatpush3.bf16.msra.mxu0 %v9761_v25  ;;  %v279_v25 = vld [vmem:[#allocation3 + $0x390] sm:$0xff] }
 0x140   :  { %9794 = vmatpush3.bf16.msra.mxu1 %v9793_v26  ;;  %9764 = vmatprep.subr.bf16.mxu0 %v9763_v27  ;;  %v9859_v26 = vunpack.c.l.s8.bf16 %v291_v20  ;;  %v287_v27 = vld [vmem:[#allocation3 + $0x3d0] sm:$0xff]  ;;  %v9833_v39 = vunpack.c.h.s8.bf16 %v279_v25 }
 0x141   :  { %9796 = vmatprep.subr.bf16.mxu1 %v9795_v29  ;;  %v9829_v29 = vunpack.c.l.s8.bf16 %v279_v25  ;;  %v9861_v30 = vunpack.c.l.s8.bf16 %v287_v27 }
 0x143   :  { %9766 = vmatpush3.bf16.msra.mxu0 %v9765_v32  ;;  %v9831_v32 = vunpack.c.h.s8.bf16 %v283_v19  ;;  %v9883_v19 = vunpack.c.l.s8.bf16 %v298_v7 }
 0x144   :  { %9798 = vmatpush3.bf16.msra.mxu1 %v9797_v33  ;;  %9768 = vmatprep.subr.bf16.mxu0 %v9767_v34  ;;  %v9863_v33 = vunpack.c.h.s8.bf16 %v291_v20  ;;  %v284_v34 = vld [vmem:[#allocation3 + $0x3b8] sm:$0xff]  ;;  %v294_v20 = vld [vmem:[#allocation3 + $0x408] sm:$0xff] }
 0x145   :  { %9800 = vmatprep.subr.bf16.mxu1 %v9799_v35  ;;  %v292_v35 = vld [vmem:[#allocation3 + $0x3f8] sm:$0xff] }
 0x146   :  { %v9867_v43 = vunpack.c.l.s8.bf16 %v292_v35  ;;  %v9871_v55 = vunpack.c.h.s8.bf16 %v292_v35 }
 0x147   :  { %9770 = vmatpush3.bf16.msra.mxu0 %v9769_v40  ;;  %v9865_v40 = vunpack.c.h.s8.bf16 %v287_v27 }
 0x148   :  { %9802 = vmatpush3.bf16.msra.mxu1 %v9801_v41  ;;  %9772 = vmatprep.subr.bf16.mxu0 %v9771_v42  ;;  %v9835_v41 = vunpack.c.l.s8.bf16 %v284_v34  ;;  %v280_v42 = vld [vmem:[#allocation3 + $0x398] sm:$0xff] }
 0x149   :  { %9804 = vmatprep.subr.bf16.mxu1 %v9803_v44  ;;  %v288_v44 = vld [vmem:[#allocation3 + $0x3d8] sm:$0xff] }
 0x14b   :  { %9774 = vmatpush3.bf16.msra.mxu0 %v9773_v46 }
 0x14c   :  { %9806 = vmatpush3.bf16.msra.mxu1 %v9805_v47  ;;  %9776 = vmatprep.subr.bf16.mxu0 %v9775_v48  ;;  %v133_v47 = vadd.f32 0.5, %v121_v36  ;;  %v303_v36 = vld [vmem:[#allocation3 + $0x450] sm:$0xff] }
 0x14d   :  { %9808 = vmatprep.subr.bf16.mxu1 %v9807_v49 }
 0x14f   :  { %9778 = vmatpush3.bf16.msra.mxu0 %v9777_v52  ;;  %v9837_v52 = vunpack.c.l.s8.bf16 %v280_v42 }
 0x150   :  { %9810 = vmatpush3.bf16.msra.mxu1 %v9809_v53  ;;  %9812 = vmatprep.subr.bf16.mxu0 %v9811_v54  ;;  %v9869_v53 = vunpack.c.l.s8.bf16 %v288_v44  ;;  %v9839_v54 = vunpack.c.h.s8.bf16 %v284_v34  ;;  %v295_v34 = vld [vmem:[#allocation3 + $0x410] sm:$0xff] }
 0x151   :  { %9844 = vmatprep.subr.bf16.mxu1 %v9843_v56 }
 0x152   :  { %5019 = vmatmul.mubr.f32.vlgmr.msra.gmra.mrb[12].mxu0 %v3733_v58  ;;  %v305_v58 = vld [vmem:[#allocation3 + $0x460] sm:$0xff] }
 0x153   :  { %5089 = vmatmul.mubr.f32.vlgmr.msra.gmra.mrb[12].mxu1 %v3741_v63  ;;  %9814 = vmatpush3.bf16.msra.mxu0 %v9813_v0  ;;  %v145_v63 = vmax.f32 %v133_v47, 0.0  ;;  %v9841_v0 = vunpack.c.h.s8.bf16 %v280_v42  ;;  %v9907_v9 = vunpack.c.l.s8.bf16 %v305_v58 }
 0x154   :  { %9846 = vmatpush3.bf16.msra.mxu1 %v9845_v2  ;;  %9816 = vmatprep.subr.bf16.mxu0 %v9815_v6  ;;  %v9873_v2 = vunpack.c.h.s8.bf16 %v288_v44  ;;  %v9875_v6 = vunpack.c.l.s8.bf16 %v297_v57  ;;  %v308_v44 = vld [vmem:[#allocation3 + $0x478] sm:$0xff] }
 0x155   :  { %9848 = vmatprep.subr.bf16.mxu1 %v9847_v8  ;;  %5158 = vmatprep.mubr.f32.mxu0 %v3753_v10  ;;  %v293_v8 = vld [vmem:[#allocation3 + $0x400] sm:$0xff]  ;;  %v11314_v10 = vmin.f32 %v145_v63, 1.0 }
 0x156   :  { %5228 = vmatprep.mubr.f32.mxu1 %v3761_v11  ;;  %v3749_v11 = vrot.slane %v11291_v1, %v11244_v61 }
 0x157   :  { %9818 = vmatpush3.bf16.msra.mxu0 %v9817_v12  ;;  %v3757_v12 = vrot.slane %v11291_v1, %v11247_v62  ;;  %v9881_v1 = vunpack.c.h.s8.bf16 %v293_v8 }
 0x158   :  { %9850 = vmatpush3.bf16.msra.mxu1 %v9849_v13  ;;  %9820 = vmatprep.subr.bf16.mxu0 %v9819_v14  ;;  %v9877_v13 = vunpack.c.l.s8.bf16 %v293_v8  ;;  %v9909_v14 = vunpack.c.l.s8.bf16 %v301_v22  ;;  %v313_v8 = vld [vmem:[#allocation3 + $0x4a0] sm:$0xff] }
 0x159   :  { %9852 = vmatprep.subr.bf16.mxu1 %v9851_v15  ;;  %v9911_v15 = vunpack.c.h.s8.bf16 %v305_v58 }
 0x15b   :  { %9822 = vmatpush3.bf16.msra.mxu0 %v9821_v16  ;;  %v306_v16 = vld [vmem:[#allocation3 + $0x468] sm:$0xff] }
 0x15c   :  { %9854 = vmatpush3.bf16.msra.mxu1 %v9853_v38  ;;  %9824 = vmatprep.subr.bf16.mxu0 %v9823_v17  ;;  %v3769_v38 = vrot.slane %v11314_v10, %v11209_v31  ;;  %v3777_v17 = vrot.slane %v11314_v10, %v11212_v37  ;;  %v9919_v27 = vunpack.c.h.s8.bf16 %v306_v16 }
 0x15d   :  { %9856 = vmatprep.subr.bf16.mxu1 %v9855_v18  ;;  %v9913_v18 = vunpack.c.h.s8.bf16 %v301_v22 }
 0x15f   :  { %9826 = vmatpush3.bf16.msra.mxu0 %v9825_v21  ;;  %v9915_v21 = vunpack.c.l.s8.bf16 %v306_v16 }
 0x160   :  { %9858 = vmatpush3.bf16.msra.mxu1 %v9857_v23  ;;  %9828 = vmatprep.subr.bf16.mxu0 %v9827_v24  ;;  %v302_v23 = vld [vmem:[#allocation3 + $0x448] sm:$0xff]  ;;  %v9885_v24 = vunpack.c.l.s8.bf16 %v294_v20 }
 0x161   :  { %9860 = vmatprep.subr.bf16.mxu1 %v9859_v26  ;;  %v9917_v25 = vunpack.c.l.s8.bf16 %v302_v23  ;;  %v9887_v26 = vunpack.c.h.s8.bf16 %v298_v7  ;;  %v3765_v7 = vrot.slane %v11314_v10, %v11221_v59 }
 0x163   :  { %9830 = vmatpush3.bf16.msra.mxu0 %v9829_v29  ;;  %v307_v29 = vld [vmem:[#allocation3 + $0x470] sm:$0xff] }
 0x164   :  { %9862 = vmatpush3.bf16.msra.mxu1 %v9861_v30  ;;  %9832 = vmatprep.subr.bf16.mxu0 %v9831_v32  ;;  %v9889_v30 = vunpack.c.h.s8.bf16 %v294_v20  ;;  %v9921_v32 = vunpack.c.h.s8.bf16 %v302_v23  ;;  %v9923_v35 = vunpack.c.l.s8.bf16 %v307_v29  ;;  %v9927_v42 = vunpack.c.h.s8.bf16 %v307_v29 }
 0x165   :  { %9864 = vmatprep.subr.bf16.mxu1 %v9863_v33  ;;  %v7663_v45 = vpop.f32.mrb[0].mxu0  ;;  %v9891_v33 = vunpack.c.l.s8.bf16 %v299_v28  ;;  %v3785_v20 = vrot.slane %v11314_v10, %v11227_v3 }
 0x166   :  { %v7698_v46 = vpop.f32.mrb[0].mxu1  ;;  %v7664_v48 = vpop.f32.mrb[1].mxu0 }
 0x167   :  { %v7699_v49 = vpop.f32.mrb[1].mxu1  ;;  %v7665_v50 = vadd.f32 %v7664_v48, %v7663_v45  ;;  %9834 = vmatpush3.bf16.msra.mxu0 %v9833_v39  ;;  %v9893_v39 = vunpack.c.l.s8.bf16 %v295_v34  ;;  %v9897_v45 = vunpack.c.h.s8.bf16 %v295_v34  ;;  %v296_v48 = vld [vmem:[#allocation3 + $0x418] sm:$0xff]  ;;  %v315_v34 = vld [vmem:[#allocation3 + $0x4b0] sm:$0xff] }
 0x168   :  { %v7700_v51 = vadd.f32 %v7699_v49, %v7698_v46  ;;  %9866 = vmatpush3.bf16.msra.mxu1 %v9865_v40  ;;  %9836 = vmatprep.subr.bf16.mxu0 %v9835_v41  ;;  %v9925_v40 = vunpack.c.l.s8.bf16 %v303_v36  ;;  %v9895_v41 = vunpack.c.h.s8.bf16 %v299_v28  ;;  %v9929_v46 = vunpack.c.h.s8.bf16 %v303_v36  ;;  %v318_v28 = vld [vmem:[#allocation3 + $0x4c8] sm:$0xff] }
 0x169   :  { %9868 = vmatprep.subr.bf16.mxu1 %v9867_v43  ;;  %v300_v43 = vld [vmem:[#allocation3 + $0x438] sm:$0xff]  ;;  %v9931_v49 = vunpack.c.l.s8.bf16 %v308_v44  ;;  %v9901_v58 = vunpack.c.l.s8.bf16 %v296_v48 }
 0x16a   :  { %v11312_v56 = vadd.f32 %v7700_v51, %v7665_v50  ;;  %v9899_v47 = vunpack.c.l.s8.bf16 %v300_v43  ;;  %v304_v50 = vld [vmem:[#allocation3 + $0x458] sm:$0xff] }
 0x16b   :  { %9838 = vmatpush3.bf16.msra.mxu0 %v9837_v52  ;;  %v9933_v63 = vunpack.c.l.s8.bf16 %v304_v50 }
 0x16c   :  { %9870 = vmatpush3.bf16.msra.mxu1 %v9869_v53  ;;  %9840 = vmatprep.subr.bf16.mxu0 %v9839_v54 }
 0x16d   :  { %9872 = vmatprep.subr.bf16.mxu1 %v9871_v55 }
 0x16f   :  { %9842 = vmatpush3.bf16.msra.mxu0 %v9841_v0  ;;  %v9903_v0 = vunpack.c.h.s8.bf16 %v300_v43  ;;  %v319_v43 = vld [vmem:[#allocation3 + $0x4d0] sm:$0xff] }
 0x170   :  { %9874 = vmatpush3.bf16.msra.mxu1 %v9873_v2  ;;  %9876 = vmatprep.subr.bf16.mxu0 %v9875_v6  ;;  %v9935_v2 = vunpack.c.h.s8.bf16 %v308_v44  ;;  %v110_v44 = vld [vmem:[%s11544_s0 + $0x28] sm:$0xff] }
 0x171   :  { %9908 = vmatprep.subr.bf16.mxu1 %v9907_v9  ;;  %v321_v9 = vld [vmem:[#allocation3 + $0x4e0] sm:$0xff] }
 0x172   :  { %5159 = vmatmul.mubr.f32.vlgmr.msra.gmra.mrb[14].mxu0 %v3749_v11  ;;  %v9905_v11 = vunpack.c.h.s8.bf16 %v296_v48 }
 0x173   :  { %5229 = vmatmul.mubr.f32.vlgmr.msra.gmra.mrb[14].mxu1 %v3757_v12  ;;  %9878 = vmatpush3.bf16.msra.mxu0 %v9877_v13  ;;  %v9937_v12 = vunpack.c.h.s8.bf16 %v304_v50  ;;  %v9939_v13 = vunpack.c.l.s8.bf16 %v313_v8  ;;  %v324_v50 = vld [vmem:[#allocation3 + $0x4f8] sm:$0xff] }
 0x174   :  { %9910 = vmatpush3.bf16.msra.mxu1 %v9909_v14  ;;  %9880 = vmatprep.subr.bf16.mxu0 %v9879_v5  ;;  %v309_v14 = vld [vmem:[#allocation3 + $0x480] sm:$0xff]  ;;  %v9971_v5 = vunpack.c.l.s8.bf16 %v321_v9 }
 0x175   :  { %9912 = vmatprep.subr.bf16.mxu1 %v9911_v15  ;;  %5298 = vmatprep.mubr.f32.mxu0 %v3769_v38  ;;  %v317_v15 = vld [vmem:[#allocation3 + $0x4c0] sm:$0xff]  ;;  %v9941_v16 = vunpack.c.l.s8.bf16 %v309_v14  ;;  %v9945_v23 = vunpack.c.h.s8.bf16 %v309_v14 }
 0x176   :  { %5368 = vmatprep.mubr.f32.mxu1 %v3777_v17  ;;  %v9973_v38 = vunpack.c.l.s8.bf16 %v317_v15  ;;  %v9943_v17 = vunpack.c.h.s8.bf16 %v313_v8 }
 0x177   :  { %9882 = vmatpush3.bf16.msra.mxu0 %v9881_v1  ;;  %v9975_v1 = vunpack.c.h.s8.bf16 %v321_v9 }
 0x178   :  { %9914 = vmatpush3.bf16.msra.mxu1 %v9913_v18  ;;  %9884 = vmatprep.subr.bf16.mxu0 %v9883_v19  ;;  %v314_v18 = vld [vmem:[#allocation3 + $0x4a8] sm:$0xff] }
 0x179   :  { %9916 = vmatprep.subr.bf16.mxu1 %v9915_v21  ;;  %v322_v19 = vld [vmem:[#allocation3 + $0x4e8] sm:$0xff]  ;;  %v3793_v21 = vrot.slane %v11314_v10, %v11230_v4 }
 0x17b   :  { %9886 = vmatpush3.bf16.msra.mxu0 %v9885_v24  ;;  %v9977_v24 = vunpack.c.h.s8.bf16 %v317_v15 }
 0x17c   :  { %9918 = vmatpush3.bf16.msra.mxu1 %v9917_v25  ;;  %9888 = vmatprep.subr.bf16.mxu0 %v9887_v26  ;;  %v9947_v25 = vunpack.c.l.s8.bf16 %v314_v18  ;;  %v310_v26 = vld [vmem:[#allocation3 + $0x488] sm:$0xff] }
 0x17d   :  { %9920 = vmatprep.subr.bf16.mxu1 %v9919_v27  ;;  %v9979_v27 = vunpack.c.l.s8.bf16 %v322_v19  ;;  %v9949_v29 = vunpack.c.l.s8.bf16 %v310_v26  ;;  %v9953_v36 = vunpack.c.h.s8.bf16 %v310_v26 }
 0x17f   :  { %9890 = vmatpush3.bf16.msra.mxu0 %v9889_v30  ;;  %v9981_v30 = vunpack.c.l.s8.bf16 %v318_v28 }
 0x180   :  { %9922 = vmatpush3.bf16.msra.mxu1 %v9921_v32  ;;  %9892 = vmatprep.subr.bf16.mxu0 %v9891_v33  ;;  %v9951_v32 = vunpack.c.h.s8.bf16 %v314_v18  ;;  %v9983_v33 = vunpack.c.h.s8.bf16 %v322_v19  ;;  %v325_v19 = vld [vmem:[#allocation3 + $0x500] sm:$0xff] }
 0x181   :  { %9924 = vmatprep.subr.bf16.mxu1 %v9923_v35  ;;  %v323_v35 = vld [vmem:[#allocation3 + $0x4f0] sm:$0xff] }
 0x182   :  { %v9991_v48 = vunpack.c.h.s8.bf16 %v323_v35 }
 0x183   :  { %9894 = vmatpush3.bf16.msra.mxu0 %v9893_v39  ;;  %v9985_v39 = vunpack.c.h.s8.bf16 %v318_v28 }
 0x184   :  { %9926 = vmatpush3.bf16.msra.mxu1 %v9925_v40  ;;  %9896 = vmatprep.subr.bf16.mxu0 %v9895_v41  ;;  %v9955_v40 = vunpack.c.l.s8.bf16 %v315_v34  ;;  %v311_v41 = vld [vmem:[#allocation3 + $0x490] sm:$0xff] }
 0x185   :  { %9928 = vmatprep.subr.bf16.mxu1 %v9927_v42  ;;  %v7733_v51 = vpop.f32.mrb[2].mxu0  ;;  %v9987_v42 = vunpack.c.l.s8.bf16 %v323_v35 }
 0x186   :  { %v7768_v52 = vpop.f32.mrb[2].mxu1  ;;  %v7734_v53 = vpop.f32.mrb[3].mxu0 }
 0x187   :  { %v7769_v54 = vpop.f32.mrb[3].mxu1  ;;  %v7735_v55 = vadd.f32 %v7734_v53, %v7733_v51  ;;  %9898 = vmatpush3.bf16.msra.mxu0 %v9897_v45  ;;  %v9957_v45 = vunpack.c.l.s8.bf16 %v311_v41  ;;  %v122_v51 = vmul.f32 0.5, %v110_v44  ;;  %v9993_v53 = vunpack.c.h.s8.bf16 %v319_v43 }
 0x188   :  { %v7770_v57 = vadd.f32 %v7769_v54, %v7768_v52  ;;  %9930 = vmatpush3.bf16.msra.mxu1 %v9929_v46  ;;  %9900 = vmatprep.subr.bf16.mxu0 %v9899_v47  ;;  %v9989_v46 = vunpack.c.l.s8.bf16 %v319_v43  ;;  %v9959_v47 = vunpack.c.h.s8.bf16 %v315_v34  ;;  %v9961_v52 = vunpack.c.h.s8.bf16 %v311_v41 }
 0x189   :  { %9932 = vmatprep.subr.bf16.mxu1 %v9931_v49  ;;  %v4321_v6 = vadd.f32 %v7735_v55, %v11312_v56  ;;  %v3773_v56 = vrot.slane %v11314_v10, %v11224_v60  ;;  %v316_v49 = vld [vmem:[#allocation3 + $0x4b8] sm:$0xff] }
 0x18a   :  { %v9963_v54 = vunpack.c.l.s8.bf16 %v316_v49  ;;  %v312_v55 = vld [vmem:[#allocation3 + $0x498] sm:$0xff]  ;;  %v9967_v14 = vunpack.c.h.s8.bf16 %v316_v49 }
 0x18b   :  { %v11325_v22 = vadd.f32 %v7770_v57, %v4321_v6  ;;  %9902 = vmatpush3.bf16.msra.mxu0 %v9901_v58  ;;  %v9995_v57 = vunpack.c.l.s8.bf16 %v324_v50  ;;  %v320_v58 = vld [vmem:[#allocation3 + $0x4d8] sm:$0xff] }
 0x18c   :  { %9934 = vmatpush3.bf16.msra.mxu1 %v9933_v63  ;;  %9904 = vmatprep.subr.bf16.mxu0 %v9903_v0 }
 0x18d   :  { %9936 = vmatprep.subr.bf16.mxu1 %v9935_v2  ;;  %v134_v2 = vadd.f32 0.5, %v122_v51 }
 0x18f   :  { %9906 = vmatpush3.bf16.msra.mxu0 %v9905_v11 }
 0x190   :  { %9938 = vmatpush3.bf16.msra.mxu1 %v9937_v12  ;;  %9940 = vmatprep.subr.bf16.mxu0 %v9939_v13  ;;  %v9965_v12 = vunpack.c.l.s8.bf16 %v312_v55  ;;  %v9997_v13 = vunpack.c.l.s8.bf16 %v320_v58 }
 0x191   :  { %9972 = vmatprep.subr.bf16.mxu1 %v9971_v5  ;;  %v9999_v5 = vunpack.c.h.s8.bf16 %v324_v50  ;;  %v327_v50 = vld [vmem:[#allocation3 + $0x510] sm:$0xff] }
 0x192   :  { %5299 = vmatmul.mubr.f32.vlgmr.msra.gmra.mrb[16].mxu0 %v3765_v7  ;;  %v329_v7 = vld [vmem:[#allocation3 + $0x520] sm:$0xff] }
 0x193   :  { %5369 = vmatmul.mubr.f32.vlgmr.msra.gmra.mrb[16].mxu1 %v3773_v56  ;;  %9942 = vmatpush3.bf16.msra.mxu0 %v9941_v16  ;;  %v337_v56 = vld [vmem:[#allocation3 + $0x560] sm:$0xff]  ;;  %v146_v16 = vmax.f32 %v134_v2, 0.0  ;;  %v10003_v18 = vunpack.c.l.s8.bf16 %v329_v7 }
 0x194   :  { %9974 = vmatpush3.bf16.msra.mxu1 %v9973_v38  ;;  %9944 = vmatprep.subr.bf16.mxu0 %v9943_v17  ;;  %v9969_v17 = vunpack.c.h.s8.bf16 %v312_v55  ;;  %v10039_v28 = vunpack.c.h.s8.bf16 %v337_v56 }
 0x195   :  { %9976 = vmatprep.subr.bf16.mxu1 %v9975_v1  ;;  %5438 = vmatprep.mubr.f32.mxu0 %v3785_v20  ;;  %v10001_v1 = vunpack.c.h.s8.bf16 %v320_v58  ;;  %v10035_v20 = vunpack.c.l.s8.bf16 %v337_v56  ;;  %v332_v58 = vld [vmem:[#allocation3 + $0x538] sm:$0xff] }
 0x196   :  { %5508 = vmatprep.mubr.f32.mxu1 %v3793_v21  ;;  %v333_v21 = vld [vmem:[#allocation3 + $0x540] sm:$0xff] }
 0x197   :  { %9946 = vmatpush3.bf16.msra.mxu0 %v9945_v23  ;;  %v11341_v23 = vmin.f32 %v146_v16, 1.0  ;;  %v10037_v26 = vunpack.c.l.s8.bf16 %v333_v21  ;;  %v10041_v34 = vunpack.c.h.s8.bf16 %v333_v21 }
 0x198   :  { %9978 = vmatpush3.bf16.msra.mxu1 %v9977_v24  ;;  %9948 = vmatprep.subr.bf16.mxu0 %v9947_v25  ;;  %v3789_v24 = vrot.slane %v11314_v10, %v11247_v62  ;;  %v10005_v25 = vunpack.c.l.s8.bf16 %v325_v19 }
 0x199   :  { %9980 = vmatprep.subr.bf16.mxu1 %v9979_v27  ;;  %v10007_v27 = vunpack.c.h.s8.bf16 %v329_v7 }
 0x19b   :  { %9950 = vmatpush3.bf16.msra.mxu0 %v9949_v29  ;;  %v330_v29 = vld [vmem:[#allocation3 + $0x528] sm:$0xff] }
 0x19c   :  { %9982 = vmatpush3.bf16.msra.mxu1 %v9981_v30  ;;  %9952 = vmatprep.subr.bf16.mxu0 %v9951_v32  ;;  %v338_v30 = vld [vmem:[#allocation3 + $0x568] sm:$0xff]  ;;  %v3801_v32 = vrot.slane %v11341_v23, %v11209_v31  ;;  %v10011_v35 = vunpack.c.l.s8.bf16 %v330_v29  ;;  %v10015_v43 = vunpack.c.h.s8.bf16 %v330_v29  ;;  %v3797_v29 = vrot.slane %v11341_v23, %v11221_v59 }
 0x19d   :  { %9984 = vmatprep.subr.bf16.mxu1 %v9983_v33  ;;  %v3809_v33 = vrot.slane %v11341_v23, %v11212_v37  ;;  %v10047_v44 = vunpack.c.h.s8.bf16 %v338_v30 }
 0x19f   :  { %9954 = vmatpush3.bf16.msra.mxu0 %v9953_v36  ;;  %v326_v36 = vld [vmem:[#allocation3 + $0x508] sm:$0xff] }
 0x1a0   :  { %9986 = vmatpush3.bf16.msra.mxu1 %v9985_v39  ;;  %9956 = vmatprep.subr.bf16.mxu0 %v9955_v40  ;;  %v10043_v39 = vunpack.c.l.s8.bf16 %v338_v30  ;;  %v334_v40 = vld [vmem:[#allocation3 + $0x548] sm:$0xff]  ;;  %v10013_v41 = vunpack.c.l.s8.bf16 %v326_v36 }
 0x1a1   :  { %9988 = vmatprep.subr.bf16.mxu1 %v9987_v42  ;;  %v10045_v42 = vunpack.c.l.s8.bf16 %v334_v40 }
 0x1a3   :  { %9958 = vmatpush3.bf16.msra.mxu0 %v9957_v45  ;;  %v331_v45 = vld [vmem:[#allocation3 + $0x530] sm:$0xff] }
 0x1a4   :  { %9990 = vmatpush3.bf16.msra.mxu1 %v9989_v46  ;;  %9960 = vmatprep.subr.bf16.mxu0 %v9959_v47  ;;  %v339_v46 = vld [vmem:[#allocation3 + $0x570] sm:$0xff]  ;;  %v10017_v47 = vunpack.c.h.s8.bf16 %v326_v36  ;;  %v10019_v49 = vunpack.c.l.s8.bf16 %v331_v45  ;;  %v10023_v55 = vunpack.c.h.s8.bf16 %v331_v45  ;;  %v3817_v36 = vrot.slane %v11341_v23, %v11227_v3  ;;  %v350_v45 = vld [vmem:[#allocation3 + $0x5c8] sm:$0xff] }
 0x1a5   :  { %9992 = vmatprep.subr.bf16.mxu1 %v9991_v48  ;;  %v7803_v63 = vpop.f32.mrb[4].mxu0  ;;  %v10049_v48 = vunpack.c.h.s8.bf16 %v334_v40  ;;  %v10051_v51 = vunpack.c.l.s8.bf16 %v339_v46 }
 0x1a6   :  { %v7838_v0 = vpop.f32.mrb[4].mxu1  ;;  %v7804_v6 = vpop.f32.mrb[5].mxu0 }
 0x1a7   :  { %v7839_v8 = vpop.f32.mrb[5].mxu1  ;;  %v7805_v9 = vadd.f32 %v7804_v6, %v7803_v63  ;;  %9962 = vmatpush3.bf16.msra.mxu0 %v9961_v52  ;;  %v335_v52 = vld [vmem:[#allocation3 + $0x550] sm:$0xff]  ;;  %v340_v63 = vld [vmem:[#allocation3 + $0x578] sm:$0xff]  ;;  %v10027_v6 = vunpack.c.l.s8.bf16 %v332_v58 }
 0x1a8   :  { %v7840_v11 = vadd.f32 %v7839_v8, %v7838_v0  ;;  %9994 = vmatpush3.bf16.msra.mxu1 %v9993_v53  ;;  %9964 = vmatprep.subr.bf16.mxu0 %v9963_v54  ;;  %v10021_v53 = vunpack.c.l.s8.bf16 %v327_v50  ;;  %v10053_v54 = vunpack.c.l.s8.bf16 %v335_v52  ;;  %v10025_v0 = vunpack.c.h.s8.bf16 %v327_v50  ;;  %v328_v8 = vld [vmem:[#allocation3 + $0x518] sm:$0xff]  ;;  %v347_v50 = vld [vmem:[#allocation3 + $0x5b0] sm:$0xff] }
 0x1a9   :  { %9996 = vmatprep.subr.bf16.mxu1 %v9995_v57  ;;  %v4461_v15 = vadd.f32 %v7805_v9, %v11325_v22  ;;  %v3781_v22 = vrot.slane %v11314_v10, %v11244_v61  ;;  %v10009_v10 = vunpack.c.h.s8.bf16 %v325_v19  ;;  %v10055_v57 = vunpack.c.h.s8.bf16 %v339_v46  ;;  %v345_v19 = vld [vmem:[#allocation3 + $0x5a0] sm:$0xff] }
 0x1aa   :  { %v10057_v2 = vunpack.c.h.s8.bf16 %v335_v52  ;;  %v10059_v9 = vunpack.c.l.s8.bf16 %v340_v63  ;;  %v10029_v56 = vunpack.c.l.s8.bf16 %v328_v8 }
 0x1ab   :  { %v11339_v38 = vadd.f32 %v7840_v11, %v4461_v15  ;;  %9966 = vmatpush3.bf16.msra.mxu0 %v9965_v12  ;;  %v336_v11 = vld [vmem:[#allocation3 + $0x558] sm:$0xff] }
 0x1ac   :  { %9998 = vmatpush3.bf16.msra.mxu1 %v9997_v13  ;;  %9968 = vmatprep.subr.bf16.mxu0 %v9967_v14  ;;  %v10061_v16 = vunpack.c.l.s8.bf16 %v336_v11 }
 0x1ad   :  { %10000 = vmatprep.subr.bf16.mxu1 %v9999_v5 }
 0x1af   :  { %9970 = vmatpush3.bf16.msra.mxu0 %v9969_v17  ;;  %v10031_v17 = vunpack.c.h.s8.bf16 %v332_v58  ;;  %v351_v58 = vld [vmem:[#allocation3 + $0x5d0] sm:$0xff] }
 0x1b0   :  { %10002 = vmatpush3.bf16.msra.mxu1 %v10001_v1  ;;  %10004 = vmatprep.subr.bf16.mxu0 %v10003_v18  ;;  %v10063_v1 = vunpack.c.h.s8.bf16 %v340_v63  ;;  %v111_v63 = vld [vmem:[%s11544_s0 + $0x30] sm:$0xff] }
 0x1b1   :  { %10036 = vmatprep.subr.bf16.mxu1 %v10035_v20  ;;  %v353_v20 = vld [vmem:[#allocation3 + $0x5e0] sm:$0xff] }
 0x1b2   :  { %5439 = vmatmul.mubr.f32.vlgmr.msra.gmra.mrb[18].mxu0 %v3781_v22  ;;  %v10033_v22 = vunpack.c.h.s8.bf16 %v328_v8 }
 0x1b3   :  { %5509 = vmatmul.mubr.f32.vlgmr.msra.gmra.mrb[18].mxu1 %v3789_v24  ;;  %10006 = vmatpush3.bf16.msra.mxu0 %v10005_v25  ;;  %v10065_v24 = vunpack.c.h.s8.bf16 %v336_v11  ;;  %v10067_v25 = vunpack.c.l.s8.bf16 %v345_v19  ;;  %v356_v11 = vld [vmem:[#allocation3 + $0x5f8] sm:$0xff] }
 0x1b4   :  { %10038 = vmatpush3.bf16.msra.mxu1 %v10037_v26  ;;  %10008 = vmatprep.subr.bf16.mxu0 %v10007_v27  ;;  %v341_v26 = vld [vmem:[#allocation3 + $0x580] sm:$0xff]  ;;  %v10099_v27 = vunpack.c.l.s8.bf16 %v353_v20 }
 0x1b5   :  { %10040 = vmatprep.subr.bf16.mxu1 %v10039_v28  ;;  %5578 = vmatprep.mubr.f32.mxu0 %v3801_v32  ;;  %v349_v28 = vld [vmem:[#allocation3 + $0x5c0] sm:$0xff]  ;;  %v10069_v30 = vunpack.c.l.s8.bf16 %v341_v26  ;;  %v10073_v40 = vunpack.c.h.s8.bf16 %v341_v26 }
 0x1b6   :  { %5648 = vmatprep.mubr.f32.mxu1 %v3809_v33  ;;  %v10101_v32 = vunpack.c.l.s8.bf16 %v349_v28  ;;  %v10071_v33 = vunpack.c.h.s8.bf16 %v345_v19 }
 0x1b7   :  { %10010 = vmatpush3.bf16.msra.mxu0 %v10009_v10  ;;  %v10103_v10 = vunpack.c.h.s8.bf16 %v353_v20 }
 0x1b8   :  { %10042 = vmatpush3.bf16.msra.mxu1 %v10041_v34  ;;  %10012 = vmatprep.subr.bf16.mxu0 %v10011_v35  ;;  %v346_v34 = vld [vmem:[#allocation3 + $0x5a8] sm:$0xff] }
 0x1b9   :  { %10044 = vmatprep.subr.bf16.mxu1 %v10043_v39  ;;  %v354_v35 = vld [vmem:[#allocation3 + $0x5e8] sm:$0xff]  ;;  %v3825_v39 = vrot.slane %v11341_v23, %v11230_v4 }
 0x1bb   :  { %10014 = vmatpush3.bf16.msra.mxu0 %v10013_v41  ;;  %v10105_v41 = vunpack.c.h.s8.bf16 %v349_v28 }
 0x1bc   :  { %10046 = vmatpush3.bf16.msra.mxu1 %v10045_v42  ;;  %10016 = vmatprep.subr.bf16.mxu0 %v10015_v43  ;;  %v10075_v42 = vunpack.c.l.s8.bf16 %v346_v34  ;;  %v342_v43 = vld [vmem:[#allocation3 + $0x588] sm:$0xff] }
 0x1bd   :  { %10048 = vmatprep.subr.bf16.mxu1 %v10047_v44  ;;  %v10107_v44 = vunpack.c.l.s8.bf16 %v354_v35  ;;  %v10077_v46 = vunpack.c.l.s8.bf16 %v342_v43  ;;  %v10081_v52 = vunpack.c.h.s8.bf16 %v342_v43 }
 0x1bf   :  { %10018 = vmatpush3.bf16.msra.mxu0 %v10017_v47  ;;  %v10109_v47 = vunpack.c.l.s8.bf16 %v350_v45 }
 0x1c0   :  { %10050 = vmatpush3.bf16.msra.mxu1 %v10049_v48  ;;  %10020 = vmatprep.subr.bf16.mxu0 %v10019_v49  ;;  %v10079_v48 = vunpack.c.h.s8.bf16 %v346_v34  ;;  %v10111_v49 = vunpack.c.h.s8.bf16 %v354_v35  ;;  %v357_v35 = vld [vmem:[#allocation3 + $0x600] sm:$0xff] }
 0x1c1   :  { %10052 = vmatprep.subr.bf16.mxu1 %v10051_v51  ;;  %v355_v51 = vld [vmem:[#allocation3 + $0x5f0] sm:$0xff] }
 0x1c2   :  { %v10119_v8 = vunpack.c.h.s8.bf16 %v355_v51 }
 0x1c3   :  { %10022 = vmatpush3.bf16.msra.mxu0 %v10021_v53  ;;  %v10113_v53 = vunpack.c.h.s8.bf16 %v350_v45 }
 0x1c4   :  { %10054 = vmatpush3.bf16.msra.mxu1 %v10053_v54  ;;  %10024 = vmatprep.subr.bf16.mxu0 %v10023_v55  ;;  %v10083_v54 = vunpack.c.l.s8.bf16 %v347_v50  ;;  %v343_v55 = vld [vmem:[#allocation3 + $0x590] sm:$0xff] }
 0x1c5   :  { %10056 = vmatprep.subr.bf16.mxu1 %v10055_v57  ;;  %v7873_v12 = vpop.f32.mrb[6].mxu0  ;;  %v10115_v57 = vunpack.c.l.s8.bf16 %v355_v51 }
 0x1c6   :  { %v7908_v13 = vpop.f32.mrb[6].mxu1  ;;  %v7874_v14 = vpop.f32.mrb[7].mxu0 }
 0x1c7   :  { %v7909_v5 = vpop.f32.mrb[7].mxu1  ;;  %v7875_v15 = vadd.f32 %v7874_v14, %v7873_v12  ;;  %10026 = vmatpush3.bf16.msra.mxu0 %v10025_v0  ;;  %v10085_v0 = vunpack.c.l.s8.bf16 %v343_v55  ;;  %v123_v12 = vmul.f32 0.5, %v111_v63  ;;  %v10121_v14 = vunpack.c.h.s8.bf16 %v351_v58 }
 0x1c8   :  { %v7910_v7 = vadd.f32 %v7909_v5, %v7908_v13  ;;  %10058 = vmatpush3.bf16.msra.mxu1 %v10057_v2  ;;  %10028 = vmatprep.subr.bf16.mxu0 %v10027_v6  ;;  %v10117_v2 = vunpack.c.l.s8.bf16 %v351_v58  ;;  %v10087_v6 = vunpack.c.h.s8.bf16 %v347_v50  ;;  %v10089_v13 = vunpack.c.h.s8.bf16 %v343_v55 }
 0x1c9   :  { %10060 = vmatprep.subr.bf16.mxu1 %v10059_v9  ;;  %v4601_v18 = vadd.f32 %v7875_v15, %v11339_v38  ;;  %v3805_v38 = vrot.slane %v11341_v23, %v11224_v60  ;;  %v348_v9 = vld [vmem:[#allocation3 + $0x5b8] sm:$0xff] }
 0x1ca   :  { %v10091_v5 = vunpack.c.l.s8.bf16 %v348_v9  ;;  %v344_v15 = vld [vmem:[#allocation3 + $0x598] sm:$0xff]  ;;  %v10095_v26 = vunpack.c.h.s8.bf16 %v348_v9 }
 0x1cb   :  { %v11352_v21 = vadd.f32 %v7910_v7, %v4601_v18  ;;  %10030 = vmatpush3.bf16.msra.mxu0 %v10029_v56  ;;  %v10123_v7 = vunpack.c.l.s8.bf16 %v356_v11  ;;  %v352_v56 = vld [vmem:[#allocation3 + $0x5d8] sm:$0xff] }
 0x1cc   :  { %10062 = vmatpush3.bf16.msra.mxu1 %v10061_v16  ;;  %10032 = vmatprep.subr.bf16.mxu0 %v10031_v17 }
 0x1cd   :  { %10064 = vmatprep.subr.bf16.mxu1 %v10063_v1  ;;  %v135_v1 = vadd.f32 0.5, %v123_v12 }
 0x1cf   :  { %10034 = vmatpush3.bf16.msra.mxu0 %v10033_v22 }
 0x1d0   :  { %10066 = vmatpush3.bf16.msra.mxu1 %v10065_v24  ;;  %10068 = vmatprep.subr.bf16.mxu0 %v10067_v25  ;;  %v10093_v24 = vunpack.c.l.s8.bf16 %v344_v15  ;;  %v10125_v25 = vunpack.c.l.s8.bf16 %v352_v56 }
 0x1d1   :  { %10100 = vmatprep.subr.bf16.mxu1 %v10099_v27  ;;  %v10127_v27 = vunpack.c.h.s8.bf16 %v356_v11  ;;  %v359_v11 = vld [vmem:[#allocation3 + $0x610] sm:$0xff] }
 0x1d2   :  { %5579 = vmatmul.mubr.f32.vlgmr.msra.gmra.mrb[20].mxu0 %v3797_v29  ;;  %v361_v29 = vld [vmem:[#allocation3 + $0x620] sm:$0xff] }
 0x1d3   :  { %5649 = vmatmul.mubr.f32.vlgmr.msra.gmra.mrb[20].mxu1 %v3805_v38  ;;  %10070 = vmatpush3.bf16.msra.mxu0 %v10069_v30  ;;  %v369_v38 = vld [vmem:[#allocation3 + $0x660] sm:$0xff]  ;;  %v147_v30 = vmax.f32 %v135_v1, 0.0  ;;  %v10131_v34 = vunpack.c.l.s8.bf16 %v361_v29 }
 0x1d4   :  { %10102 = vmatpush3.bf16.msra.mxu1 %v10101_v32  ;;  %10072 = vmatprep.subr.bf16.mxu0 %v10071_v33  ;;  %v10097_v33 = vunpack.c.h.s8.bf16 %v344_v15  ;;  %v10167_v45 = vunpack.c.h.s8.bf16 %v369_v38 }
 0x1d5   :  { %10104 = vmatprep.subr.bf16.mxu1 %v10103_v10  ;;  %5718 = vmatprep.mubr.f32.mxu0 %v3817_v36  ;;  %v10129_v10 = vunpack.c.h.s8.bf16 %v352_v56  ;;  %v10163_v36 = vunpack.c.l.s8.bf16 %v369_v38  ;;  %v364_v56 = vld [vmem:[#allocation3 + $0x638] sm:$0xff] }
 0x1d6   :  { %5788 = vmatprep.mubr.f32.mxu1 %v3825_v39  ;;  %v365_v39 = vld [vmem:[#allocation3 + $0x640] sm:$0xff] }
 0x1d7   :  { %10074 = vmatpush3.bf16.msra.mxu0 %v10073_v40  ;;  %v11368_v40 = vmin.f32 %v147_v30, 1.0  ;;  %v10165_v43 = vunpack.c.l.s8.bf16 %v365_v39  ;;  %v10169_v50 = vunpack.c.h.s8.bf16 %v365_v39 }
 0x1d8   :  { %10106 = vmatpush3.bf16.msra.mxu1 %v10105_v41  ;;  %10076 = vmatprep.subr.bf16.mxu0 %v10075_v42  ;;  %v3821_v41 = vrot.slane %v11341_v23, %v11247_v62  ;;  %v10133_v42 = vunpack.c.l.s8.bf16 %v357_v35 }
 0x1d9   :  { %10108 = vmatprep.subr.bf16.mxu1 %v10107_v44  ;;  %v10135_v44 = vunpack.c.h.s8.bf16 %v361_v29 }
 0x1db   :  { %10078 = vmatpush3.bf16.msra.mxu0 %v10077_v46  ;;  %v362_v46 = vld [vmem:[#allocation3 + $0x628] sm:$0xff] }
 0x1dc   :  { %10110 = vmatpush3.bf16.msra.mxu1 %v10109_v47  ;;  %10080 = vmatprep.subr.bf16.mxu0 %v10079_v48  ;;  %v370_v47 = vld [vmem:[#allocation3 + $0x668] sm:$0xff]  ;;  %v3833_v48 = vrot.slane %v11368_v40, %v11209_v31  ;;  %v10139_v51 = vunpack.c.l.s8.bf16 %v362_v46  ;;  %v10143_v58 = vunpack.c.h.s8.bf16 %v362_v46  ;;  %v3829_v46 = vrot.slane %v11368_v40, %v11221_v59 }
 0x1dd   :  { %10112 = vmatprep.subr.bf16.mxu1 %v10111_v49  ;;  %v3841_v49 = vrot.slane %v11368_v40, %v11212_v37  ;;  %v10175_v63 = vunpack.c.h.s8.bf16 %v370_v47 }
 0x1df   :  { %10082 = vmatpush3.bf16.msra.mxu0 %v10081_v52  ;;  %v358_v52 = vld [vmem:[#allocation3 + $0x608] sm:$0xff] }
 0x1e0   :  { %10114 = vmatpush3.bf16.msra.mxu1 %v10113_v53  ;;  %10084 = vmatprep.subr.bf16.mxu0 %v10083_v54  ;;  %v10171_v53 = vunpack.c.l.s8.bf16 %v370_v47  ;;  %v366_v54 = vld [vmem:[#allocation3 + $0x648] sm:$0xff]  ;;  %v10141_v55 = vunpack.c.l.s8.bf16 %v358_v52 }
 0x1e1   :  { %10116 = vmatprep.subr.bf16.mxu1 %v10115_v57  ;;  %v10173_v57 = vunpack.c.l.s8.bf16 %v366_v54 }
 0x1e3   :  { %10086 = vmatpush3.bf16.msra.mxu0 %v10085_v0  ;;  %v363_v0 = vld [vmem:[#allocation3 + $0x630] sm:$0xff] }
 0x1e4   :  { %10118 = vmatpush3.bf16.msra.mxu1 %v10117_v2  ;;  %10088 = vmatprep.subr.bf16.mxu0 %v10087_v6  ;;  %v371_v2 = vld [vmem:[#allocation3 + $0x670] sm:$0xff]  ;;  %v10145_v6 = vunpack.c.h.s8.bf16 %v358_v52  ;;  %v10147_v9 = vunpack.c.l.s8.bf16 %v363_v0  ;;  %v10151_v15 = vunpack.c.h.s8.bf16 %v363_v0  ;;  %v3849_v52 = vrot.slane %v11368_v40, %v11227_v3  ;;  %v382_v0 = vld [vmem:[#allocation3 + $0x6c8] sm:$0xff] }
 0x1e5   :  { %10120 = vmatprep.subr.bf16.mxu1 %v10119_v8  ;;  %v7943_v16 = vpop.f32.mrb[8].mxu0  ;;  %v10177_v8 = vunpack.c.h.s8.bf16 %v366_v54  ;;  %v10179_v12 = vunpack.c.l.s8.bf16 %v371_v2 }
 0x1e6   :  { %v7978_v17 = vpop.f32.mrb[8].mxu1  ;;  %v7944_v18 = vpop.f32.mrb[9].mxu0 }
 0x1e7   :  { %v7979_v19 = vpop.f32.mrb[9].mxu1  ;;  %v7945_v20 = vadd.f32 %v7944_v18, %v7943_v16  ;;  %10090 = vmatpush3.bf16.msra.mxu0 %v10089_v13  ;;  %v367_v13 = vld [vmem:[#allocation3 + $0x650] sm:$0xff]  ;;  %v372_v16 = vld [vmem:[#allocation3 + $0x678] sm:$0xff]  ;;  %v10155_v18 = vunpack.c.l.s8.bf16 %v364_v56 }
 0x1e8   :  { %v7980_v22 = vadd.f32 %v7979_v19, %v7978_v17  ;;  %10122 = vmatpush3.bf16.msra.mxu1 %v10121_v14  ;;  %10092 = vmatprep.subr.bf16.mxu0 %v10091_v5  ;;  %v10149_v14 = vunpack.c.l.s8.bf16 %v359_v11  ;;  %v10181_v5 = vunpack.c.l.s8.bf16 %v367_v13  ;;  %v10153_v17 = vunpack.c.h.s8.bf16 %v359_v11  ;;  %v360_v19 = vld [vmem:[#allocation3 + $0x618] sm:$0xff]  ;;  %v379_v11 = vld [vmem:[#allocation3 + $0x6b0] sm:$0xff] }
 0x1e9   :  { %10124 = vmatprep.subr.bf16.mxu1 %v10123_v7  ;;  %v4741_v28 = vadd.f32 %v7945_v20, %v11352_v21  ;;  %v3813_v21 = vrot.slane %v11341_v23, %v11244_v61  ;;  %v10137_v23 = vunpack.c.h.s8.bf16 %v357_v35  ;;  %v10183_v7 = vunpack.c.h.s8.bf16 %v371_v2  ;;  %v377_v35 = vld [vmem:[#allocation3 + $0x6a0] sm:$0xff] }
 0x1ea   :  { %v10185_v1 = vunpack.c.h.s8.bf16 %v367_v13  ;;  %v10187_v20 = vunpack.c.l.s8.bf16 %v372_v16  ;;  %v10157_v38 = vunpack.c.l.s8.bf16 %v360_v19 }
 0x1eb   :  { %v11366_v32 = vadd.f32 %v7980_v22, %v4741_v28  ;;  %10094 = vmatpush3.bf16.msra.mxu0 %v10093_v24  ;;  %v368_v22 = vld [vmem:[#allocation3 + $0x658] sm:$0xff] }
 0x1ec   :  { %10126 = vmatpush3.bf16.msra.mxu1 %v10125_v25  ;;  %10096 = vmatprep.subr.bf16.mxu0 %v10095_v26  ;;  %v10189_v30 = vunpack.c.l.s8.bf16 %v368_v22 }
 0x1ed   :  { %10128 = vmatprep.subr.bf16.mxu1 %v10127_v27 }
 0x1ef   :  { %10098 = vmatpush3.bf16.msra.mxu0 %v10097_v33  ;;  %v10159_v33 = vunpack.c.h.s8.bf16 %v364_v56  ;;  %v383_v56 = vld [vmem:[#allocation3 + $0x6d0] sm:$0xff] }
 0x1f0   :  { %10130 = vmatpush3.bf16.msra.mxu1 %v10129_v10  ;;  %10132 = vmatprep.subr.bf16.mxu0 %v10131_v34  ;;  %v10191_v10 = vunpack.c.h.s8.bf16 %v372_v16  ;;  %v112_v16 = vld [vmem:[%s11544_s0 + $0x38] sm:$0xff] }
 0x1f1   :  { %10164 = vmatprep.subr.bf16.mxu1 %v10163_v36  ;;  %v385_v36 = vld [vmem:[#allocation3 + $0x6e0] sm:$0xff] }
 0x1f2   :  { %5719 = vmatmul.mubr.f32.vlgmr.msra.gmra.mrb[22].mxu0 %v3813_v21  ;;  %v10161_v21 = vunpack.c.h.s8.bf16 %v360_v19 }
 0x1f3   :  { %5789 = vmatmul.mubr.f32.vlgmr.msra.gmra.mrb[22].mxu1 %v3821_v41  ;;  %10134 = vmatpush3.bf16.msra.mxu0 %v10133_v42  ;;  %v10193_v41 = vunpack.c.h.s8.bf16 %v368_v22  ;;  %v10195_v42 = vunpack.c.l.s8.bf16 %v377_v35  ;;  %v388_v22 = vld [vmem:[#allocation3 + $0x6f8] sm:$0xff] }
 0x1f4   :  { %10166 = vmatpush3.bf16.msra.mxu1 %v10165_v43  ;;  %10136 = vmatprep.subr.bf16.mxu0 %v10135_v44  ;;  %v373_v43 = vld [vmem:[#allocation3 + $0x680] sm:$0xff]  ;;  %v10227_v44 = vunpack.c.l.s8.bf16 %v385_v36 }
 0x1f5   :  { %10168 = vmatprep.subr.bf16.mxu1 %v10167_v45  ;;  %5858 = vmatprep.mubr.f32.mxu0 %v3833_v48  ;;  %v381_v45 = vld [vmem:[#allocation3 + $0x6c0] sm:$0xff]  ;;  %v10197_v47 = vunpack.c.l.s8.bf16 %v373_v43  ;;  %v10201_v54 = vunpack.c.h.s8.bf16 %v373_v43 }
 0x1f6   :  { %5928 = vmatprep.mubr.f32.mxu1 %v3841_v49  ;;  %v10229_v48 = vunpack.c.l.s8.bf16 %v381_v45  ;;  %v10199_v49 = vunpack.c.h.s8.bf16 %v377_v35 }
 0x1f7   :  { %10138 = vmatpush3.bf16.msra.mxu0 %v10137_v23  ;;  %v10231_v23 = vunpack.c.h.s8.bf16 %v385_v36 }
 0x1f8   :  { %10170 = vmatpush3.bf16.msra.mxu1 %v10169_v50  ;;  %10140 = vmatprep.subr.bf16.mxu0 %v10139_v51  ;;  %v378_v50 = vld [vmem:[#allocation3 + $0x6a8] sm:$0xff] }
 0x1f9   :  { %10172 = vmatprep.subr.bf16.mxu1 %v10171_v53  ;;  %v386_v51 = vld [vmem:[#allocation3 + $0x6e8] sm:$0xff]  ;;  %v3857_v53 = vrot.slane %v11368_v40, %v11230_v4 }
 0x1fb   :  { %10142 = vmatpush3.bf16.msra.mxu0 %v10141_v55  ;;  %v10233_v55 = vunpack.c.h.s8.bf16 %v381_v45 }
 0x1fc   :  { %10174 = vmatpush3.bf16.msra.mxu1 %v10173_v57  ;;  %10144 = vmatprep.subr.bf16.mxu0 %v10143_v58  ;;  %v10203_v57 = vunpack.c.l.s8.bf16 %v378_v50  ;;  %v374_v58 = vld [vmem:[#allocation3 + $0x688] sm:$0xff] }
 0x1fd   :  { %10176 = vmatprep.subr.bf16.mxu1 %v10175_v63  ;;  %v10235_v63 = vunpack.c.l.s8.bf16 %v386_v51  ;;  %v10205_v2 = vunpack.c.l.s8.bf16 %v374_v58  ;;  %v10209_v13 = vunpack.c.h.s8.bf16 %v374_v58 }
 0x1ff   :  { %10146 = vmatpush3.bf16.msra.mxu0 %v10145_v6  ;;  %v10237_v6 = vunpack.c.l.s8.bf16 %v382_v0 }
 0x200   :  { %10178 = vmatpush3.bf16.msra.mxu1 %v10177_v8  ;;  %10148 = vmatprep.subr.bf16.mxu0 %v10147_v9  ;;  %v10207_v8 = vunpack.c.h.s8.bf16 %v378_v50  ;;  %v10239_v9 = vunpack.c.h.s8.bf16 %v386_v51  ;;  %v389_v51 = vld [vmem:[#allocation3 + $0x700] sm:$0xff] }
 0x201   :  { %10180 = vmatprep.subr.bf16.mxu1 %v10179_v12  ;;  %v387_v12 = vld [vmem:[#allocation3 + $0x6f0] sm:$0xff] }
 0x202   :  { %v10247_v19 = vunpack.c.h.s8.bf16 %v387_v12 }
 0x203   :  { %10150 = vmatpush3.bf16.msra.mxu0 %v10149_v14  ;;  %v10241_v14 = vunpack.c.h.s8.bf16 %v382_v0 }
 0x204   :  { %10182 = vmatpush3.bf16.msra.mxu1 %v10181_v5  ;;  %10152 = vmatprep.subr.bf16.mxu0 %v10151_v15  ;;  %v10211_v5 = vunpack.c.l.s8.bf16 %v379_v11  ;;  %v375_v15 = vld [vmem:[#allocation3 + $0x690] sm:$0xff] }
 0x205   :  { %10184 = vmatprep.subr.bf16.mxu1 %v10183_v7  ;;  %v8013_v24 = vpop.f32.mrb[10].mxu0  ;;  %v10243_v7 = vunpack.c.l.s8.bf16 %v387_v12 }
 0x206   :  { %v8048_v25 = vpop.f32.mrb[10].mxu1  ;;  %v8014_v26 = vpop.f32.mrb[11].mxu0 }
 0x207   :  { %v8049_v27 = vpop.f32.mrb[11].mxu1  ;;  %v8015_v28 = vadd.f32 %v8014_v26, %v8013_v24  ;;  %10154 = vmatpush3.bf16.msra.mxu0 %v10153_v17  ;;  %v10213_v17 = vunpack.c.l.s8.bf16 %v375_v15  ;;  %v124_v24 = vmul.f32 0.5, %v112_v16  ;;  %v10249_v26 = vunpack.c.h.s8.bf16 %v383_v56 }
 0x208   :  { %v8050_v29 = vadd.f32 %v8049_v27, %v8048_v25  ;;  %10186 = vmatpush3.bf16.msra.mxu1 %v10185_v1  ;;  %10156 = vmatprep.subr.bf16.mxu0 %v10155_v18  ;;  %v10245_v1 = vunpack.c.l.s8.bf16 %v383_v56  ;;  %v10215_v18 = vunpack.c.h.s8.bf16 %v379_v11  ;;  %v10217_v25 = vunpack.c.h.s8.bf16 %v375_v15 }
 0x209   :  { %10188 = vmatprep.subr.bf16.mxu1 %v10187_v20  ;;  %v4881_v34 = vadd.f32 %v8015_v28, %v11366_v32  ;;  %v3837_v32 = vrot.slane %v11368_v40, %v11224_v60  ;;  %v380_v20 = vld [vmem:[#allocation3 + $0x6b8] sm:$0xff] }
 0x20a   :  { %v10219_v27 = vunpack.c.l.s8.bf16 %v380_v20  ;;  %v376_v28 = vld [vmem:[#allocation3 + $0x698] sm:$0xff]  ;;  %v10223_v43 = vunpack.c.h.s8.bf16 %v380_v20 }
 0x20b   :  { %v11379_v39 = vadd.f32 %v8050_v29, %v4881_v34  ;;  %10158 = vmatpush3.bf16.msra.mxu0 %v10157_v38  ;;  %v10251_v29 = vunpack.c.l.s8.bf16 %v388_v22  ;;  %v384_v38 = vld [vmem:[#allocation3 + $0x6d8] sm:$0xff] }
 0x20c   :  { %10190 = vmatpush3.bf16.msra.mxu1 %v10189_v30  ;;  %10160 = vmatprep.subr.bf16.mxu0 %v10159_v33 }
 0x20d   :  { %10192 = vmatprep.subr.bf16.mxu1 %v10191_v10  ;;  %v136_v10 = vadd.f32 0.5, %v124_v24 }
 0x20f   :  { %10162 = vmatpush3.bf16.msra.mxu0 %v10161_v21 }
 0x210   :  { %10194 = vmatpush3.bf16.msra.mxu1 %v10193_v41  ;;  %10196 = vmatprep.subr.bf16.mxu0 %v10195_v42  ;;  %v10221_v41 = vunpack.c.l.s8.bf16 %v376_v28  ;;  %v10253_v42 = vunpack.c.l.s8.bf16 %v384_v38 }
 0x211   :  { %10228 = vmatprep.subr.bf16.mxu1 %v10227_v44  ;;  %v10255_v44 = vunpack.c.h.s8.bf16 %v388_v22  ;;  %v391_v22 = vld [vmem:[#allocation3 + $0x710] sm:$0xff] }
 0x212   :  { %5859 = vmatmul.mubr.f32.vlgmr.msra.gmra.mrb[24].mxu0 %v3829_v46  ;;  %v393_v46 = vld [vmem:[#allocation3 + $0x720] sm:$0xff] }
 0x213   :  { %5929 = vmatmul.mubr.f32.vlgmr.msra.gmra.mrb[24].mxu1 %v3837_v32  ;;  %10198 = vmatpush3.bf16.msra.mxu0 %v10197_v47  ;;  %v401_v32 = vld [vmem:[#allocation3 + $0x760] sm:$0xff]  ;;  %v148_v47 = vmax.f32 %v136_v10, 0.0  ;;  %v10259_v50 = vunpack.c.l.s8.bf16 %v393_v46 }
 0x214   :  { %10230 = vmatpush3.bf16.msra.mxu1 %v10229_v48  ;;  %10200 = vmatprep.subr.bf16.mxu0 %v10199_v49  ;;  %v10225_v49 = vunpack.c.h.s8.bf16 %v376_v28  ;;  %v10295_v0 = vunpack.c.h.s8.bf16 %v401_v32 }
 0x215   :  { %10232 = vmatprep.subr.bf16.mxu1 %v10231_v23  ;;  %5998 = vmatprep.mubr.f32.mxu0 %v3849_v52  ;;  %v10257_v23 = vunpack.c.h.s8.bf16 %v384_v38  ;;  %v10291_v52 = vunpack.c.l.s8.bf16 %v401_v32  ;;  %v396_v38 = vld [vmem:[#allocation3 + $0x738] sm:$0xff] }
 0x216   :  { %6068 = vmatprep.mubr.f32.mxu1 %v3857_v53  ;;  %v397_v53 = vld [vmem:[#allocation3 + $0x740] sm:$0xff] }
 0x217   :  { %10202 = vmatpush3.bf16.msra.mxu0 %v10201_v54  ;;  %v11395_v54 = vmin.f32 %v148_v47, 1.0  ;;  %v10293_v58 = vunpack.c.l.s8.bf16 %v397_v53  ;;  %v10297_v11 = vunpack.c.h.s8.bf16 %v397_v53 }
 0x218   :  { %10234 = vmatpush3.bf16.msra.mxu1 %v10233_v55  ;;  %10204 = vmatprep.subr.bf16.mxu0 %v10203_v57  ;;  %v3853_v55 = vrot.slane %v11368_v40, %v11247_v62  ;;  %v10261_v57 = vunpack.c.l.s8.bf16 %v389_v51 }
 0x219   :  { %10236 = vmatprep.subr.bf16.mxu1 %v10235_v63  ;;  %v10263_v63 = vunpack.c.h.s8.bf16 %v393_v46 }
 0x21b   :  { %10206 = vmatpush3.bf16.msra.mxu0 %v10205_v2  ;;  %v394_v2 = vld [vmem:[#allocation3 + $0x728] sm:$0xff] }
 0x21c   :  { %10238 = vmatpush3.bf16.msra.mxu1 %v10237_v6  ;;  %10208 = vmatprep.subr.bf16.mxu0 %v10207_v8  ;;  %v402_v6 = vld [vmem:[#allocation3 + $0x768] sm:$0xff]  ;;  %v3865_v8 = vrot.slane %v11395_v54, %v11209_v31  ;;  %v10267_v12 = vunpack.c.l.s8.bf16 %v394_v2  ;;  %v10271_v56 = vunpack.c.h.s8.bf16 %v394_v2  ;;  %v3861_v2 = vrot.slane %v11395_v54, %v11221_v59 }
 0x21d   :  { %10240 = vmatprep.subr.bf16.mxu1 %v10239_v9  ;;  %v3873_v9 = vrot.slane %v11395_v54, %v11212_v37  ;;  %v10303_v16 = vunpack.c.h.s8.bf16 %v402_v6 }
 0x21f   :  { %10210 = vmatpush3.bf16.msra.mxu0 %v10209_v13  ;;  %v390_v13 = vld [vmem:[#allocation3 + $0x708] sm:$0xff] }
 0x220   :  { %10242 = vmatpush3.bf16.msra.mxu1 %v10241_v14  ;;  %10212 = vmatprep.subr.bf16.mxu0 %v10211_v5  ;;  %v10299_v14 = vunpack.c.l.s8.bf16 %v402_v6  ;;  %v398_v5 = vld [vmem:[#allocation3 + $0x748] sm:$0xff]  ;;  %v10269_v15 = vunpack.c.l.s8.bf16 %v390_v13 }
 0x221   :  { %10244 = vmatprep.subr.bf16.mxu1 %v10243_v7  ;;  %v10301_v7 = vunpack.c.l.s8.bf16 %v398_v5 }
 0x223   :  { %10214 = vmatpush3.bf16.msra.mxu0 %v10213_v17  ;;  %v395_v17 = vld [vmem:[#allocation3 + $0x730] sm:$0xff] }
 0x224   :  { %10246 = vmatpush3.bf16.msra.mxu1 %v10245_v1  ;;  %10216 = vmatprep.subr.bf16.mxu0 %v10215_v18  ;;  %v403_v1 = vld [vmem:[#allocation3 + $0x770] sm:$0xff]  ;;  %v10273_v18 = vunpack.c.h.s8.bf16 %v390_v13  ;;  %v10275_v20 = vunpack.c.l.s8.bf16 %v395_v17  ;;  %v10279_v28 = vunpack.c.h.s8.bf16 %v395_v17  ;;  %v3881_v13 = vrot.slane %v11395_v54, %v11227_v3  ;;  %v414_v17 = vld [vmem:[#allocation3 + $0x7c8] sm:$0xff] }
 0x225   :  { %10248 = vmatprep.subr.bf16.mxu1 %v10247_v19  ;;  %v8083_v30 = vpop.f32.mrb[12].mxu0  ;;  %v10305_v19 = vunpack.c.h.s8.bf16 %v398_v5  ;;  %v10307_v24 = vunpack.c.l.s8.bf16 %v403_v1 }
 0x226   :  { %v8118_v33 = vpop.f32.mrb[12].mxu1  ;;  %v8084_v34 = vpop.f32.mrb[13].mxu0 }
 0x227   :  { %v8119_v35 = vpop.f32.mrb[13].mxu1  ;;  %v8085_v36 = vadd.f32 %v8084_v34, %v8083_v30  ;;  %10218 = vmatpush3.bf16.msra.mxu0 %v10217_v25  ;;  %v399_v25 = vld [vmem:[#allocation3 + $0x750] sm:$0xff]  ;;  %v404_v30 = vld [vmem:[#allocation3 + $0x778] sm:$0xff]  ;;  %v10283_v34 = vunpack.c.l.s8.bf16 %v396_v38 }
 0x228   :  { %v8120_v21 = vadd.f32 %v8119_v35, %v8118_v33  ;;  %10250 = vmatpush3.bf16.msra.mxu1 %v10249_v26  ;;  %10220 = vmatprep.subr.bf16.mxu0 %v10219_v27  ;;  %v10277_v26 = vunpack.c.l.s8.bf16 %v391_v22  ;;  %v10309_v27 = vunpack.c.l.s8.bf16 %v399_v25  ;;  %v10281_v33 = vunpack.c.h.s8.bf16 %v391_v22  ;;  %v392_v35 = vld [vmem:[#allocation3 + $0x718] sm:$0xff]  ;;  %v411_v22 = vld [vmem:[#allocation3 + $0x7b0] sm:$0xff] }
 0x229   :  { %10252 = vmatprep.subr.bf16.mxu1 %v10251_v29  ;;  %v5021_v45 = vadd.f32 %v8085_v36, %v11379_v39  ;;  %v3845_v39 = vrot.slane %v11368_v40, %v11244_v61  ;;  %v10265_v40 = vunpack.c.h.s8.bf16 %v389_v51  ;;  %v10311_v29 = vunpack.c.h.s8.bf16 %v403_v1  ;;  %v409_v51 = vld [vmem:[#allocation3 + $0x7a0] sm:$0xff] }
 0x22a   :  { %v10313_v10 = vunpack.c.h.s8.bf16 %v399_v25  ;;  %v10315_v36 = vunpack.c.l.s8.bf16 %v404_v30  ;;  %v10285_v32 = vunpack.c.l.s8.bf16 %v392_v35 }
 0x22b   :  { %v11393_v48 = vadd.f32 %v8120_v21, %v5021_v45  ;;  %10222 = vmatpush3.bf16.msra.mxu0 %v10221_v41  ;;  %v400_v21 = vld [vmem:[#allocation3 + $0x758] sm:$0xff] }
 0x22c   :  { %10254 = vmatpush3.bf16.msra.mxu1 %v10253_v42  ;;  %10224 = vmatprep.subr.bf16.mxu0 %v10223_v43  ;;  %v10317_v47 = vunpack.c.l.s8.bf16 %v400_v21 }
 0x22d   :  { %10256 = vmatprep.subr.bf16.mxu1 %v10255_v44 }
 0x22f   :  { %10226 = vmatpush3.bf16.msra.mxu0 %v10225_v49  ;;  %v10287_v49 = vunpack.c.h.s8.bf16 %v396_v38  ;;  %v415_v38 = vld [vmem:[#allocation3 + $0x7d0] sm:$0xff] }
 0x230   :  { %10258 = vmatpush3.bf16.msra.mxu1 %v10257_v23  ;;  %10260 = vmatprep.subr.bf16.mxu0 %v10259_v50  ;;  %v10319_v23 = vunpack.c.h.s8.bf16 %v404_v30  ;;  %v113_v30 = vld [vmem:[%s11544_s0 + $0x40] sm:$0xff] }
 0x231   :  { %10292 = vmatprep.subr.bf16.mxu1 %v10291_v52  ;;  %v417_v52 = vld [vmem:[#allocation3 + $0x7e0] sm:$0xff] }
 0x232   :  { %5999 = vmatmul.mubr.f32.vlgmr.msra.gmra.mrb[26].mxu0 %v3845_v39  ;;  %v10289_v39 = vunpack.c.h.s8.bf16 %v392_v35 }
 0x233   :  { %6069 = vmatmul.mubr.f32.vlgmr.msra.gmra.mrb[26].mxu1 %v3853_v55  ;;  %10262 = vmatpush3.bf16.msra.mxu0 %v10261_v57  ;;  %v10321_v55 = vunpack.c.h.s8.bf16 %v400_v21  ;;  %v10323_v57 = vunpack.c.l.s8.bf16 %v409_v51  ;;  %v420_v21 = vld [vmem:[#allocation3 + $0x7f8] sm:$0xff] }
 0x234   :  { %10294 = vmatpush3.bf16.msra.mxu1 %v10293_v58  ;;  %10264 = vmatprep.subr.bf16.mxu0 %v10263_v63  ;;  %v405_v58 = vld [vmem:[#allocation3 + $0x780] sm:$0xff]  ;;  %v10355_v63 = vunpack.c.l.s8.bf16 %v417_v52 }
 0x235   :  { %10296 = vmatprep.subr.bf16.mxu1 %v10295_v0  ;;  %6138 = vmatprep.mubr.f32.mxu0 %v3865_v8  ;;  %v413_v0 = vld [vmem:[#allocation3 + $0x7c0] sm:$0xff]  ;;  %v10325_v6 = vunpack.c.l.s8.bf16 %v405_v58  ;;  %v10329_v5 = vunpack.c.h.s8.bf16 %v405_v58 }
 0x236   :  { %6208 = vmatprep.mubr.f32.mxu1 %v3873_v9  ;;  %v10357_v8 = vunpack.c.l.s8.bf16 %v413_v0  ;;  %v10327_v9 = vunpack.c.h.s8.bf16 %v409_v51 }
 0x237   :  { %10266 = vmatpush3.bf16.msra.mxu0 %v10265_v40  ;;  %v10359_v40 = vunpack.c.h.s8.bf16 %v417_v52 }
 0x238   :  { %10298 = vmatpush3.bf16.msra.mxu1 %v10297_v11  ;;  %10268 = vmatprep.subr.bf16.mxu0 %v10267_v12  ;;  %v410_v11 = vld [vmem:[#allocation3 + $0x7a8] sm:$0xff] }
 0x239   :  { %10300 = vmatprep.subr.bf16.mxu1 %v10299_v14  ;;  %v418_v12 = vld [vmem:[#allocation3 + $0x7e8] sm:$0xff]  ;;  %v3889_v14 = vrot.slane %v11395_v54, %v11230_v4 }
 0x23b   :  { %10270 = vmatpush3.bf16.msra.mxu0 %v10269_v15  ;;  %v10361_v15 = vunpack.c.h.s8.bf16 %v413_v0 }
 0x23c   :  { %10302 = vmatpush3.bf16.msra.mxu1 %v10301_v7  ;;  %10272 = vmatprep.subr.bf16.mxu0 %v10271_v56  ;;  %v10331_v7 = vunpack.c.l.s8.bf16 %v410_v11  ;;  %v406_v56 = vld [vmem:[#allocation3 + $0x788] sm:$0xff] }
 0x23d   :  { %10304 = vmatprep.subr.bf16.mxu1 %v10303_v16  ;;  %v10363_v16 = vunpack.c.l.s8.bf16 %v418_v12  ;;  %v10333_v1 = vunpack.c.l.s8.bf16 %v406_v56  ;;  %v10337_v25 = vunpack.c.h.s8.bf16 %v406_v56 }
 0x23f   :  { %10274 = vmatpush3.bf16.msra.mxu0 %v10273_v18  ;;  %v10365_v18 = vunpack.c.l.s8.bf16 %v414_v17 }
 0x240   :  { %10306 = vmatpush3.bf16.msra.mxu1 %v10305_v19  ;;  %10276 = vmatprep.subr.bf16.mxu0 %v10275_v20  ;;  %v10335_v19 = vunpack.c.h.s8.bf16 %v410_v11  ;;  %v10367_v20 = vunpack.c.h.s8.bf16 %v418_v12  ;;  %v421_v12 = vld [vmem:[#allocation3 + $0x800] sm:$0xff] }
 0x241   :  { %10308 = vmatprep.subr.bf16.mxu1 %v10307_v24  ;;  %v419_v24 = vld [vmem:[#allocation3 + $0x7f0] sm:$0xff] }
 0x242   :  { %v10375_v35 = vunpack.c.h.s8.bf16 %v419_v24 }
 0x243   :  { %10278 = vmatpush3.bf16.msra.mxu0 %v10277_v26  ;;  %v10369_v26 = vunpack.c.h.s8.bf16 %v414_v17 }
 0x244   :  { %10310 = vmatpush3.bf16.msra.mxu1 %v10309_v27  ;;  %10280 = vmatprep.subr.bf16.mxu0 %v10279_v28  ;;  %v10339_v27 = vunpack.c.l.s8.bf16 %v411_v22  ;;  %v407_v28 = vld [vmem:[#allocation3 + $0x790] sm:$0xff] }
 0x245   :  { %10312 = vmatprep.subr.bf16.mxu1 %v10311_v29  ;;  %v8153_v41 = vpop.f32.mrb[14].mxu0  ;;  %v10371_v29 = vunpack.c.l.s8.bf16 %v419_v24 }
 0x246   :  { %v8188_v42 = vpop.f32.mrb[14].mxu1  ;;  %v8154_v43 = vpop.f32.mrb[15].mxu0 }
 0x247   :  { %v8189_v44 = vpop.f32.mrb[15].mxu1  ;;  %v8155_v45 = vadd.f32 %v8154_v43, %v8153_v41  ;;  %10282 = vmatpush3.bf16.msra.mxu0 %v10281_v33  ;;  %v10341_v33 = vunpack.c.l.s8.bf16 %v407_v28  ;;  %v125_v41 = vmul.f32 0.5, %v113_v30  ;;  %v10377_v43 = vunpack.c.h.s8.bf16 %v415_v38 }
 0x248   :  { %v8190_v46 = vadd.f32 %v8189_v44, %v8188_v42  ;;  %10314 = vmatpush3.bf16.msra.mxu1 %v10313_v10  ;;  %10284 = vmatprep.subr.bf16.mxu0 %v10283_v34  ;;  %v10373_v10 = vunpack.c.l.s8.bf16 %v415_v38  ;;  %v10343_v34 = vunpack.c.h.s8.bf16 %v411_v22  ;;  %v10345_v42 = vunpack.c.h.s8.bf16 %v407_v28 }
 0x249   :  { %10316 = vmatprep.subr.bf16.mxu1 %v10315_v36  ;;  %v5161_v50 = vadd.f32 %v8155_v45, %v11393_v48  ;;  %v3869_v48 = vrot.slane %v11395_v54, %v11224_v60  ;;  %v412_v36 = vld [vmem:[#allocation3 + $0x7b8] sm:$0xff] }
 0x24a   :  { %v10347_v44 = vunpack.c.l.s8.bf16 %v412_v36  ;;  %v408_v45 = vld [vmem:[#allocation3 + $0x798] sm:$0xff]  ;;  %v10351_v58 = vunpack.c.h.s8.bf16 %v412_v36 }
 0x24b   :  { %v11406_v53 = vadd.f32 %v8190_v46, %v5161_v50  ;;  %10286 = vmatpush3.bf16.msra.mxu0 %v10285_v32  ;;  %v10379_v46 = vunpack.c.l.s8.bf16 %v420_v21  ;;  %v416_v32 = vld [vmem:[#allocation3 + $0x7d8] sm:$0xff] }
 0x24c   :  { %10318 = vmatpush3.bf16.msra.mxu1 %v10317_v47  ;;  %10288 = vmatprep.subr.bf16.mxu0 %v10287_v49 }
 0x24d   :  { %10320 = vmatprep.subr.bf16.mxu1 %v10319_v23  ;;  %v137_v23 = vadd.f32 0.5, %v125_v41 }
 0x24f   :  { %10290 = vmatpush3.bf16.msra.mxu0 %v10289_v39 }
 0x250   :  { %10322 = vmatpush3.bf16.msra.mxu1 %v10321_v55  ;;  %10324 = vmatprep.subr.bf16.mxu0 %v10323_v57  ;;  %v10349_v55 = vunpack.c.l.s8.bf16 %v408_v45  ;;  %v10381_v57 = vunpack.c.l.s8.bf16 %v416_v32 }
 0x251   :  { %10356 = vmatprep.subr.bf16.mxu1 %v10355_v63  ;;  %v10383_v63 = vunpack.c.h.s8.bf16 %v420_v21  ;;  %v423_v21 = vld [vmem:[#allocation3 + $0x810] sm:$0xff] }
 0x252   :  { %6139 = vmatmul.mubr.f32.vlgmr.msra.gmra.mrb[28].mxu0 %v3861_v2  ;;  %v425_v2 = vld [vmem:[#allocation3 + $0x820] sm:$0xff] }
 0x253   :  { %6209 = vmatmul.mubr.f32.vlgmr.msra.gmra.mrb[28].mxu1 %v3869_v48  ;;  %10326 = vmatpush3.bf16.msra.mxu0 %v10325_v6  ;;  %v433_v48 = vld [vmem:[#allocation3 + $0x860] sm:$0xff]  ;;  %v149_v6 = vmax.f32 %v137_v23, 0.0  ;;  %v10387_v11 = vunpack.c.l.s8.bf16 %v425_v2 }
 0x254   :  { %10358 = vmatpush3.bf16.msra.mxu1 %v10357_v8  ;;  %10328 = vmatprep.subr.bf16.mxu0 %v10327_v9  ;;  %v10353_v9 = vunpack.c.h.s8.bf16 %v408_v45  ;;  %v10423_v17 = vunpack.c.h.s8.bf16 %v433_v48 }
 0x255   :  { %10360 = vmatprep.subr.bf16.mxu1 %v10359_v40  ;;  %6278 = vmatprep.mubr.f32.mxu0 %v3881_v13  ;;  %v10385_v40 = vunpack.c.h.s8.bf16 %v416_v32  ;;  %v10419_v13 = vunpack.c.l.s8.bf16 %v433_v48  ;;  %v428_v32 = vld [vmem:[#allocation3 + $0x838] sm:$0xff] }
 0x256   :  { %6348 = vmatprep.mubr.f32.mxu1 %v3889_v14  ;;  %v429_v14 = vld [vmem:[#allocation3 + $0x840] sm:$0xff] }
 0x257   :  { %10330 = vmatpush3.bf16.msra.mxu0 %v10329_v5  ;;  %v11422_v5 = vmin.f32 %v149_v6, 1.0  ;;  %v10421_v56 = vunpack.c.l.s8.bf16 %v429_v14  ;;  %v10425_v22 = vunpack.c.h.s8.bf16 %v429_v14 }
 0x258   :  { %10362 = vmatpush3.bf16.msra.mxu1 %v10361_v15  ;;  %10332 = vmatprep.subr.bf16.mxu0 %v10331_v7  ;;  %v3885_v15 = vrot.slane %v11395_v54, %v11247_v62  ;;  %v10389_v7 = vunpack.c.l.s8.bf16 %v421_v12 }
 0x259   :  { %10364 = vmatprep.subr.bf16.mxu1 %v10363_v16  ;;  %v10391_v16 = vunpack.c.h.s8.bf16 %v425_v2 }
 0x25b   :  { %10334 = vmatpush3.bf16.msra.mxu0 %v10333_v1  ;;  %v426_v1 = vld [vmem:[#allocation3 + $0x828] sm:$0xff] }
 0x25c   :  { %10366 = vmatpush3.bf16.msra.mxu1 %v10365_v18  ;;  %10336 = vmatprep.subr.bf16.mxu0 %v10335_v19  ;;  %v434_v18 = vld [vmem:[#allocation3 + $0x868] sm:$0xff]  ;;  %v3897_v19 = vrot.slane %v11422_v5, %v11209_v31  ;;  %v10395_v24 = vunpack.c.l.s8.bf16 %v426_v1  ;;  %v10399_v38 = vunpack.c.h.s8.bf16 %v426_v1  ;;  %v3893_v1 = vrot.slane %v11422_v5, %v11221_v59 }
 0x25d   :  { %10368 = vmatprep.subr.bf16.mxu1 %v10367_v20  ;;  %v3905_v20 = vrot.slane %v11422_v5, %v11212_v37  ;;  %v10431_v30 = vunpack.c.h.s8.bf16 %v434_v18 }
 0x25f   :  { %10338 = vmatpush3.bf16.msra.mxu0 %v10337_v25  ;;  %v422_v25 = vld [vmem:[#allocation3 + $0x808] sm:$0xff] }
 0x260   :  { %10370 = vmatpush3.bf16.msra.mxu1 %v10369_v26  ;;  %10340 = vmatprep.subr.bf16.mxu0 %v10339_v27  ;;  %v10427_v26 = vunpack.c.l.s8.bf16 %v434_v18  ;;  %v430_v27 = vld [vmem:[#allocation3 + $0x848] sm:$0xff]  ;;  %v10397_v28 = vunpack.c.l.s8.bf16 %v422_v25 }
 0x261   :  { %10372 = vmatprep.subr.bf16.mxu1 %v10371_v29  ;;  %v10429_v29 = vunpack.c.l.s8.bf16 %v430_v27 }
 0x263   :  { %10342 = vmatpush3.bf16.msra.mxu0 %v10341_v33  ;;  %v427_v33 = vld [vmem:[#allocation3 + $0x830] sm:$0xff] }
 0x264   :  { %10374 = vmatpush3.bf16.msra.mxu1 %v10373_v10  ;;  %10344 = vmatprep.subr.bf16.mxu0 %v10343_v34  ;;  %v435_v10 = vld [vmem:[#allocation3 + $0x870] sm:$0xff]  ;;  %v10401_v34 = vunpack.c.h.s8.bf16 %v422_v25  ;;  %v10403_v36 = vunpack.c.l.s8.bf16 %v427_v33  ;;  %v10407_v45 = vunpack.c.h.s8.bf16 %v427_v33  ;;  %v3913_v25 = vrot.slane %v11422_v5, %v11227_v3  ;;  %v446_v33 = vld [vmem:[#allocation3 + $0x8c8] sm:$0xff] }
 0x265   :  { %10376 = vmatprep.subr.bf16.mxu1 %v10375_v35  ;;  %v8223_v47 = vpop.f32.mrb[16].mxu0  ;;  %v10433_v35 = vunpack.c.h.s8.bf16 %v430_v27  ;;  %v10435_v41 = vunpack.c.l.s8.bf16 %v435_v10 }
 0x266   :  { %v8258_v49 = vpop.f32.mrb[16].mxu1  ;;  %v8224_v50 = vpop.f32.mrb[17].mxu0 }
 0x267   :  { %v8259_v51 = vpop.f32.mrb[17].mxu1  ;;  %v8225_v52 = vadd.f32 %v8224_v50, %v8223_v47  ;;  %10346 = vmatpush3.bf16.msra.mxu0 %v10345_v42  ;;  %v431_v42 = vld [vmem:[#allocation3 + $0x850] sm:$0xff]  ;;  %v436_v47 = vld [vmem:[#allocation3 + $0x878] sm:$0xff]  ;;  %v10411_v50 = vunpack.c.l.s8.bf16 %v428_v32 }
 0x268   :  { %v8260_v39 = vadd.f32 %v8259_v51, %v8258_v49  ;;  %10378 = vmatpush3.bf16.msra.mxu1 %v10377_v43  ;;  %10348 = vmatprep.subr.bf16.mxu0 %v10347_v44  ;;  %v10405_v43 = vunpack.c.l.s8.bf16 %v423_v21  ;;  %v10437_v44 = vunpack.c.l.s8.bf16 %v431_v42  ;;  %v10409_v49 = vunpack.c.h.s8.bf16 %v423_v21  ;;  %v424_v51 = vld [vmem:[#allocation3 + $0x818] sm:$0xff]  ;;  %v443_v21 = vld [vmem:[#allocation3 + $0x8b0] sm:$0xff] }
 0x269   :  { %10380 = vmatprep.subr.bf16.mxu1 %v10379_v46  ;;  %v5301_v0 = vadd.f32 %v8225_v52, %v11406_v53  ;;  %v3877_v53 = vrot.slane %v11395_v54, %v11244_v61  ;;  %v10393_v54 = vunpack.c.h.s8.bf16 %v421_v12  ;;  %v10439_v46 = vunpack.c.h.s8.bf16 %v435_v10  ;;  %v441_v12 = vld [vmem:[#allocation3 + $0x8a0] sm:$0xff] }
 0x26a   :  { %v10441_v23 = vunpack.c.h.s8.bf16 %v431_v42  ;;  %v10443_v52 = vunpack.c.l.s8.bf16 %v436_v47  ;;  %v10413_v48 = vunpack.c.l.s8.bf16 %v424_v51 }
 0x26b   :  { %v11420_v8 = vadd.f32 %v8260_v39, %v5301_v0  ;;  %10350 = vmatpush3.bf16.msra.mxu0 %v10349_v55  ;;  %v432_v39 = vld [vmem:[#allocation3 + $0x858] sm:$0xff] }
 0x26c   :  { %10382 = vmatpush3.bf16.msra.mxu1 %v10381_v57  ;;  %10352 = vmatprep.subr.bf16.mxu0 %v10351_v58  ;;  %v10445_v6 = vunpack.c.l.s8.bf16 %v432_v39 }
 0x26d   :  { %10384 = vmatprep.subr.bf16.mxu1 %v10383_v63 }
 0x26f   :  { %10354 = vmatpush3.bf16.msra.mxu0 %v10353_v9  ;;  %v10415_v9 = vunpack.c.h.s8.bf16 %v428_v32  ;;  %v447_v32 = vld [vmem:[#allocation3 + $0x8d0] sm:$0xff] }
 0x270   :  { %10386 = vmatpush3.bf16.msra.mxu1 %v10385_v40  ;;  %10388 = vmatprep.subr.bf16.mxu0 %v10387_v11  ;;  %v10447_v40 = vunpack.c.h.s8.bf16 %v436_v47  ;;  %v114_v47 = vld [vmem:[%s11544_s0 + $0x48] sm:$0xff] }
 0x271   :  { %10420 = vmatprep.subr.bf16.mxu1 %v10419_v13  ;;  %v449_v13 = vld [vmem:[#allocation3 + $0x8e0] sm:$0xff] }
 0x272   :  { %6279 = vmatmul.mubr.f32.vlgmr.msra.gmra.mrb[30].mxu0 %v3877_v53  ;;  %v10417_v53 = vunpack.c.h.s8.bf16 %v424_v51 }
 0x273   :  { %6349 = vmatmul.mubr.f32.vlgmr.msra.gmra.mrb[30].mxu1 %v3885_v15  ;;  %10390 = vmatpush3.bf16.msra.mxu0 %v10389_v7  ;;  %v10449_v15 = vunpack.c.h.s8.bf16 %v432_v39  ;;  %v10451_v7 = vunpack.c.l.s8.bf16 %v441_v12  ;;  %v452_v39 = vld [vmem:[#allocation3 + $0x8f8] sm:$0xff] }
 0x274   :  { %10422 = vmatpush3.bf16.msra.mxu1 %v10421_v56  ;;  %10392 = vmatprep.subr.bf16.mxu0 %v10391_v16  ;;  %v437_v56 = vld [vmem:[#allocation3 + $0x880] sm:$0xff]  ;;  %v10483_v16 = vunpack.c.l.s8.bf16 %v449_v13 }
 0x275   :  { %10424 = vmatprep.subr.bf16.mxu1 %v10423_v17  ;;  %6418 = vmatprep.mubr.f32.mxu0 %v3897_v19  ;;  %v445_v17 = vld [vmem:[#allocation3 + $0x8c0] sm:$0xff]  ;;  %v10453_v18 = vunpack.c.l.s8.bf16 %v437_v56  ;;  %v10457_v27 = vunpack.c.h.s8.bf16 %v437_v56 }
 0x276   :  { %6488 = vmatprep.mubr.f32.mxu1 %v3905_v20  ;;  %v10485_v19 = vunpack.c.l.s8.bf16 %v445_v17  ;;  %v10455_v20 = vunpack.c.h.s8.bf16 %v441_v12 }
 0x277   :  { %10394 = vmatpush3.bf16.msra.mxu0 %v10393_v54  ;;  %v10487_v54 = vunpack.c.h.s8.bf16 %v449_v13 }
 0x278   :  { %10426 = vmatpush3.bf16.msra.mxu1 %v10425_v22  ;;  %10396 = vmatprep.subr.bf16.mxu0 %v10395_v24  ;;  %v442_v22 = vld [vmem:[#allocation3 + $0x8a8] sm:$0xff] }
 0x279   :  { %10428 = vmatprep.subr.bf16.mxu1 %v10427_v26  ;;  %v450_v24 = vld [vmem:[#allocation3 + $0x8e8] sm:$0xff]  ;;  %v3921_v26 = vrot.slane %v11422_v5, %v11230_v4 }
 0x27b   :  { %10398 = vmatpush3.bf16.msra.mxu0 %v10397_v28  ;;  %v10489_v28 = vunpack.c.h.s8.bf16 %v445_v17 }
 0x27c   :  { %10430 = vmatpush3.bf16.msra.mxu1 %v10429_v29  ;;  %10400 = vmatprep.subr.bf16.mxu0 %v10399_v38  ;;  %v10459_v29 = vunpack.c.l.s8.bf16 %v442_v22  ;;  %v438_v38 = vld [vmem:[#allocation3 + $0x888] sm:$0xff] }
 0x27d   :  { %10432 = vmatprep.subr.bf16.mxu1 %v10431_v30  ;;  %v10491_v30 = vunpack.c.l.s8.bf16 %v450_v24  ;;  %v10461_v10 = vunpack.c.l.s8.bf16 %v438_v38  ;;  %v10465_v42 = vunpack.c.h.s8.bf16 %v438_v38 }
 0x27f   :  { %10402 = vmatpush3.bf16.msra.mxu0 %v10401_v34  ;;  %v10493_v34 = vunpack.c.l.s8.bf16 %v446_v33 }
 0x280   :  { %10434 = vmatpush3.bf16.msra.mxu1 %v10433_v35  ;;  %10404 = vmatprep.subr.bf16.mxu0 %v10403_v36  ;;  %v10463_v35 = vunpack.c.h.s8.bf16 %v442_v22  ;;  %v10495_v36 = vunpack.c.h.s8.bf16 %v450_v24  ;;  %v453_v24 = vld [vmem:[#allocation3 + $0x900] sm:$0xff] }
 0x281   :  { %10436 = vmatprep.subr.bf16.mxu1 %v10435_v41  ;;  %v451_v41 = vld [vmem:[#allocation3 + $0x8f0] sm:$0xff] }
 0x282   :  { %v10503_v51 = vunpack.c.h.s8.bf16 %v451_v41 }
 0x283   :  { %10406 = vmatpush3.bf16.msra.mxu0 %v10405_v43  ;;  %v10497_v43 = vunpack.c.h.s8.bf16 %v446_v33 }
 0x284   :  { %10438 = vmatpush3.bf16.msra.mxu1 %v10437_v44  ;;  %10408 = vmatprep.subr.bf16.mxu0 %v10407_v45  ;;  %v10467_v44 = vunpack.c.l.s8.bf16 %v443_v21  ;;  %v439_v45 = vld [vmem:[#allocation3 + $0x890] sm:$0xff] }
 0x285   :  { %10440 = vmatprep.subr.bf16.mxu1 %v10439_v46  ;;  %v8293_v55 = vpop.f32.mrb[18].mxu0  ;;  %v10499_v46 = vunpack.c.l.s8.bf16 %v451_v41 }
 0x286   :  { %v8328_v57 = vpop.f32.mrb[18].mxu1  ;;  %v8294_v58 = vpop.f32.mrb[19].mxu0 }
 0x287   :  { %v8329_v63 = vpop.f32.mrb[19].mxu1  ;;  %v8295_v0 = vadd.f32 %v8294_v58, %v8293_v55  ;;  %10410 = vmatpush3.bf16.msra.mxu0 %v10409_v49  ;;  %v10469_v49 = vunpack.c.l.s8.bf16 %v439_v45  ;;  %v126_v55 = vmul.f32 0.5, %v114_v47  ;;  %v10505_v58 = vunpack.c.h.s8.bf16 %v447_v32 }
 0x288   :  { %v8330_v2 = vadd.f32 %v8329_v63, %v8328_v57  ;;  %10442 = vmatpush3.bf16.msra.mxu1 %v10441_v23  ;;  %10412 = vmatprep.subr.bf16.mxu0 %v10411_v50  ;;  %v10501_v23 = vunpack.c.l.s8.bf16 %v447_v32  ;;  %v10471_v50 = vunpack.c.h.s8.bf16 %v443_v21  ;;  %v10473_v57 = vunpack.c.h.s8.bf16 %v439_v45 }
 0x289   :  { %10444 = vmatprep.subr.bf16.mxu1 %v10443_v52  ;;  %v5441_v11 = vadd.f32 %v8295_v0, %v11420_v8  ;;  %v3901_v8 = vrot.slane %v11422_v5, %v11224_v60  ;;  %v444_v52 = vld [vmem:[#allocation3 + $0x8b8] sm:$0xff] }
 0x28a   :  { %v10475_v63 = vunpack.c.l.s8.bf16 %v444_v52  ;;  %v440_v0 = vld [vmem:[#allocation3 + $0x898] sm:$0xff]  ;;  %v10479_v56 = vunpack.c.h.s8.bf16 %v444_v52 }
 0x28b   :  { %v11433_v14 = vadd.f32 %v8330_v2, %v5441_v11  ;;  %10414 = vmatpush3.bf16.msra.mxu0 %v10413_v48  ;;  %v10507_v2 = vunpack.c.l.s8.bf16 %v452_v39  ;;  %v448_v48 = vld [vmem:[#allocation3 + $0x8d8] sm:$0xff] }
 0x28c   :  { %10446 = vmatpush3.bf16.msra.mxu1 %v10445_v6  ;;  %10416 = vmatprep.subr.bf16.mxu0 %v10415_v9 }
 0x28d   :  { %10448 = vmatprep.subr.bf16.mxu1 %v10447_v40  ;;  %v138_v40 = vadd.f32 0.5, %v126_v55 }
 0x28f   :  { %10418 = vmatpush3.bf16.msra.mxu0 %v10417_v53 }
 0x290   :  { %10450 = vmatpush3.bf16.msra.mxu1 %v10449_v15  ;;  %10452 = vmatprep.subr.bf16.mxu0 %v10451_v7  ;;  %v10477_v15 = vunpack.c.l.s8.bf16 %v440_v0  ;;  %v10509_v7 = vunpack.c.l.s8.bf16 %v448_v48 }
 0x291   :  { %10484 = vmatprep.subr.bf16.mxu1 %v10483_v16  ;;  %v10511_v16 = vunpack.c.h.s8.bf16 %v452_v39  ;;  %v455_v39 = vld [vmem:[#allocation3 + $0x910] sm:$0xff] }
 0x292   :  { %6419 = vmatmul.mubr.f32.vlgmr.msra.gmra.mrb[32].mxu0 %v3893_v1  ;;  %v457_v1 = vld [vmem:[#allocation3 + $0x920] sm:$0xff] }
 0x293   :  { %6489 = vmatmul.mubr.f32.vlgmr.msra.gmra.mrb[32].mxu1 %v3901_v8  ;;  %10454 = vmatpush3.bf16.msra.mxu0 %v10453_v18  ;;  %v465_v8 = vld [vmem:[#allocation3 + $0x960] sm:$0xff]  ;;  %v150_v18 = vmax.f32 %v138_v40, 0.0  ;;  %v10515_v22 = vunpack.c.l.s8.bf16 %v457_v1 }
 0x294   :  { %10486 = vmatpush3.bf16.msra.mxu1 %v10485_v19  ;;  %10456 = vmatprep.subr.bf16.mxu0 %v10455_v20  ;;  %v10481_v20 = vunpack.c.h.s8.bf16 %v440_v0  ;;  %v10551_v33 = vunpack.c.h.s8.bf16 %v465_v8 }
 0x295   :  { %10488 = vmatprep.subr.bf16.mxu1 %v10487_v54  ;;  %6558 = vmatprep.mubr.f32.mxu0 %v3913_v25  ;;  %v10513_v54 = vunpack.c.h.s8.bf16 %v448_v48  ;;  %v10547_v25 = vunpack.c.l.s8.bf16 %v465_v8  ;;  %v460_v48 = vld [vmem:[#allocation3 + $0x938] sm:$0xff] }
 0x296   :  { %6628 = vmatprep.mubr.f32.mxu1 %v3921_v26  ;;  %v461_v26 = vld [vmem:[#allocation3 + $0x940] sm:$0xff] }
 0x297   :  { %10458 = vmatpush3.bf16.msra.mxu0 %v10457_v27  ;;  %v11449_v27 = vmin.f32 %v150_v18, 1.0  ;;  %v10549_v38 = vunpack.c.l.s8.bf16 %v461_v26  ;;  %v10553_v21 = vunpack.c.h.s8.bf16 %v461_v26 }
 0x298   :  { %10490 = vmatpush3.bf16.msra.mxu1 %v10489_v28  ;;  %10460 = vmatprep.subr.bf16.mxu0 %v10459_v29  ;;  %v3917_v28 = vrot.slane %v11422_v5, %v11247_v62  ;;  %v10517_v29 = vunpack.c.l.s8.bf16 %v453_v24 }
 0x299   :  { %10492 = vmatprep.subr.bf16.mxu1 %v10491_v30  ;;  %v10519_v30 = vunpack.c.h.s8.bf16 %v457_v1 }
 0x29b   :  { %10462 = vmatpush3.bf16.msra.mxu0 %v10461_v10  ;;  %v458_v10 = vld [vmem:[#allocation3 + $0x928] sm:$0xff] }
 0x29c   :  { %10494 = vmatpush3.bf16.msra.mxu1 %v10493_v34  ;;  %10464 = vmatprep.subr.bf16.mxu0 %v10463_v35  ;;  %v466_v34 = vld [vmem:[#allocation3 + $0x968] sm:$0xff]  ;;  %v3929_v35 = vrot.slane %v11449_v27, %v11209_v31  ;;  %v10523_v41 = vunpack.c.l.s8.bf16 %v458_v10  ;;  %v10527_v32 = vunpack.c.h.s8.bf16 %v458_v10  ;;  %v3925_v10 = vrot.slane %v11449_v27, %v11221_v59 }
 0x29d   :  { %10496 = vmatprep.subr.bf16.mxu1 %v10495_v36  ;;  %v3937_v36 = vrot.slane %v11449_v27, %v11212_v37  ;;  %v10559_v47 = vunpack.c.h.s8.bf16 %v466_v34 }
 0x29f   :  { %10466 = vmatpush3.bf16.msra.mxu0 %v10465_v42  ;;  %v454_v42 = vld [vmem:[#allocation3 + $0x908] sm:$0xff] }
 0x2a0   :  { %10498 = vmatpush3.bf16.msra.mxu1 %v10497_v43  ;;  %10468 = vmatprep.subr.bf16.mxu0 %v10467_v44  ;;  %v10555_v43 = vunpack.c.l.s8.bf16 %v466_v34  ;;  %v462_v44 = vld [vmem:[#allocation3 + $0x948] sm:$0xff]  ;;  %v10525_v45 = vunpack.c.l.s8.bf16 %v454_v42 }
 0x2a1   :  { %10500 = vmatprep.subr.bf16.mxu1 %v10499_v46  ;;  %v10557_v46 = vunpack.c.l.s8.bf16 %v462_v44 }
 0x2a3   :  { %10470 = vmatpush3.bf16.msra.mxu0 %v10469_v49  ;;  %v459_v49 = vld [vmem:[#allocation3 + $0x930] sm:$0xff] }
 0x2a4   :  { %10502 = vmatpush3.bf16.msra.mxu1 %v10501_v23  ;;  %10472 = vmatprep.subr.bf16.mxu0 %v10471_v50  ;;  %v467_v23 = vld [vmem:[#allocation3 + $0x970] sm:$0xff]  ;;  %v10529_v50 = vunpack.c.h.s8.bf16 %v454_v42  ;;  %v10531_v52 = vunpack.c.l.s8.bf16 %v459_v49  ;;  %v10535_v0 = vunpack.c.h.s8.bf16 %v459_v49  ;;  %v3945_v42 = vrot.slane %v11449_v27, %v11227_v3  ;;  %v478_v49 = vld [vmem:[#allocation3 + $0x9c8] sm:$0xff] }
 0x2a5   :  { %10504 = vmatprep.subr.bf16.mxu1 %v10503_v51  ;;  %v8363_v6 = vpop.f32.mrb[20].mxu0  ;;  %v10561_v51 = vunpack.c.h.s8.bf16 %v462_v44  ;;  %v10563_v55 = vunpack.c.l.s8.bf16 %v467_v23 }
 0x2a6   :  { %v8398_v9 = vpop.f32.mrb[20].mxu1  ;;  %v8364_v11 = vpop.f32.mrb[21].mxu0 }
 0x2a7   :  { %v8399_v12 = vpop.f32.mrb[21].mxu1  ;;  %v8365_v13 = vadd.f32 %v8364_v11, %v8363_v6  ;;  %10474 = vmatpush3.bf16.msra.mxu0 %v10473_v57  ;;  %v463_v57 = vld [vmem:[#allocation3 + $0x950] sm:$0xff]  ;;  %v468_v6 = vld [vmem:[#allocation3 + $0x978] sm:$0xff]  ;;  %v10539_v11 = vunpack.c.l.s8.bf16 %v460_v48 }
 0x2a8   :  { %v8400_v53 = vadd.f32 %v8399_v12, %v8398_v9  ;;  %10506 = vmatpush3.bf16.msra.mxu1 %v10505_v58  ;;  %10476 = vmatprep.subr.bf16.mxu0 %v10475_v63  ;;  %v10533_v58 = vunpack.c.l.s8.bf16 %v455_v39  ;;  %v10565_v63 = vunpack.c.l.s8.bf16 %v463_v57  ;;  %v10537_v9 = vunpack.c.h.s8.bf16 %v455_v39  ;;  %v456_v12 = vld [vmem:[#allocation3 + $0x918] sm:$0xff]  ;;  %v475_v39 = vld [vmem:[#allocation3 + $0x9b0] sm:$0xff] }
 0x2a9   :  { %10508 = vmatprep.subr.bf16.mxu1 %v10507_v2  ;;  %v5581_v17 = vadd.f32 %v8365_v13, %v11433_v14  ;;  %v3909_v14 = vrot.slane %v11422_v5, %v11244_v61  ;;  %v10521_v5 = vunpack.c.h.s8.bf16 %v453_v24  ;;  %v10567_v2 = vunpack.c.h.s8.bf16 %v467_v23  ;;  %v473_v24 = vld [vmem:[#allocation3 + $0x9a0] sm:$0xff] }
 0x2aa   :  { %v10569_v40 = vunpack.c.h.s8.bf16 %v463_v57  ;;  %v10571_v13 = vunpack.c.l.s8.bf16 %v468_v6  ;;  %v10541_v8 = vunpack.c.l.s8.bf16 %v456_v12 }
 0x2ab   :  { %v11447_v19 = vadd.f32 %v8400_v53, %v5581_v17  ;;  %10478 = vmatpush3.bf16.msra.mxu0 %v10477_v15  ;;  %v464_v53 = vld [vmem:[#allocation3 + $0x958] sm:$0xff] }
 0x2ac   :  { %10510 = vmatpush3.bf16.msra.mxu1 %v10509_v7  ;;  %10480 = vmatprep.subr.bf16.mxu0 %v10479_v56  ;;  %v10573_v18 = vunpack.c.l.s8.bf16 %v464_v53 }
 0x2ad   :  { %10512 = vmatprep.subr.bf16.mxu1 %v10511_v16 }
 0x2af   :  { %10482 = vmatpush3.bf16.msra.mxu0 %v10481_v20  ;;  %v10543_v20 = vunpack.c.h.s8.bf16 %v460_v48  ;;  %v479_v48 = vld [vmem:[#allocation3 + $0x9d0] sm:$0xff] }
 0x2b0   :  { %10514 = vmatpush3.bf16.msra.mxu1 %v10513_v54  ;;  %10516 = vmatprep.subr.bf16.mxu0 %v10515_v22  ;;  %v10575_v54 = vunpack.c.h.s8.bf16 %v468_v6  ;;  %v115_v6 = vld [vmem:[%s11544_s0 + $0x50] sm:$0xff] }
 0x2b1   :  { %10548 = vmatprep.subr.bf16.mxu1 %v10547_v25  ;;  %v481_v25 = vld [vmem:[#allocation3 + $0x9e0] sm:$0xff] }
 0x2b2   :  { %6559 = vmatmul.mubr.f32.vlgmr.msra.gmra.mrb[34].mxu0 %v3909_v14  ;;  %v10545_v14 = vunpack.c.h.s8.bf16 %v456_v12 }
 0x2b3   :  { %6629 = vmatmul.mubr.f32.vlgmr.msra.gmra.mrb[34].mxu1 %v3917_v28  ;;  %10518 = vmatpush3.bf16.msra.mxu0 %v10517_v29  ;;  %v10577_v28 = vunpack.c.h.s8.bf16 %v464_v53  ;;  %v10579_v29 = vunpack.c.l.s8.bf16 %v473_v24  ;;  %v484_v53 = vld [vmem:[#allocation3 + $0x9f8] sm:$0xff] }
 0x2b4   :  { %10550 = vmatpush3.bf16.msra.mxu1 %v10549_v38  ;;  %10520 = vmatprep.subr.bf16.mxu0 %v10519_v30  ;;  %v469_v38 = vld [vmem:[#allocation3 + $0x980] sm:$0xff]  ;;  %v10611_v30 = vunpack.c.l.s8.bf16 %v481_v25 }
 0x2b5   :  { %10552 = vmatprep.subr.bf16.mxu1 %v10551_v33  ;;  %6698 = vmatprep.mubr.f32.mxu0 %v3929_v35  ;;  %v477_v33 = vld [vmem:[#allocation3 + $0x9c0] sm:$0xff]  ;;  %v10581_v34 = vunpack.c.l.s8.bf16 %v469_v38  ;;  %v10585_v44 = vunpack.c.h.s8.bf16 %v469_v38 }
 0x2b6   :  { %6768 = vmatprep.mubr.f32.mxu1 %v3937_v36  ;;  %v10613_v35 = vunpack.c.l.s8.bf16 %v477_v33  ;;  %v10583_v36 = vunpack.c.h.s8.bf16 %v473_v24 }
 0x2b7   :  { %10522 = vmatpush3.bf16.msra.mxu0 %v10521_v5  ;;  %v10615_v5 = vunpack.c.h.s8.bf16 %v481_v25 }
 0x2b8   :  { %10554 = vmatpush3.bf16.msra.mxu1 %v10553_v21  ;;  %10524 = vmatprep.subr.bf16.mxu0 %v10523_v41  ;;  %v474_v21 = vld [vmem:[#allocation3 + $0x9a8] sm:$0xff] }
 0x2b9   :  { %10556 = vmatprep.subr.bf16.mxu1 %v10555_v43  ;;  %v482_v41 = vld [vmem:[#allocation3 + $0x9e8] sm:$0xff]  ;;  %v3953_v43 = vrot.slane %v11449_v27, %v11230_v4 }
 0x2bb   :  { %10526 = vmatpush3.bf16.msra.mxu0 %v10525_v45  ;;  %v10617_v45 = vunpack.c.h.s8.bf16 %v477_v33 }
 0x2bc   :  { %10558 = vmatpush3.bf16.msra.mxu1 %v10557_v46  ;;  %10528 = vmatprep.subr.bf16.mxu0 %v10527_v32  ;;  %v10587_v46 = vunpack.c.l.s8.bf16 %v474_v21  ;;  %v470_v32 = vld [vmem:[#allocation3 + $0x988] sm:$0xff] }
 0x2bd   :  { %10560 = vmatprep.subr.bf16.mxu1 %v10559_v47  ;;  %v10619_v47 = vunpack.c.l.s8.bf16 %v482_v41  ;;  %v10589_v23 = vunpack.c.l.s8.bf16 %v470_v32  ;;  %v10593_v57 = vunpack.c.h.s8.bf16 %v470_v32 }
 0x2bf   :  { %10530 = vmatpush3.bf16.msra.mxu0 %v10529_v50  ;;  %v10621_v50 = vunpack.c.l.s8.bf16 %v478_v49 }
 0x2c0   :  { %10562 = vmatpush3.bf16.msra.mxu1 %v10561_v51  ;;  %10532 = vmatprep.subr.bf16.mxu0 %v10531_v52  ;;  %v10591_v51 = vunpack.c.h.s8.bf16 %v474_v21  ;;  %v10623_v52 = vunpack.c.h.s8.bf16 %v482_v41  ;;  %v485_v41 = vld [vmem:[#allocation3 + $0xa00] sm:$0xff] }
 0x2c1   :  { %10564 = vmatprep.subr.bf16.mxu1 %v10563_v55  ;;  %v483_v55 = vld [vmem:[#allocation3 + $0x9f0] sm:$0xff] }
 0x2c2   :  { %v10631_v12 = vunpack.c.h.s8.bf16 %v483_v55 }
 0x2c3   :  { %10534 = vmatpush3.bf16.msra.mxu0 %v10533_v58  ;;  %v10625_v58 = vunpack.c.h.s8.bf16 %v478_v49 }
 0x2c4   :  { %10566 = vmatpush3.bf16.msra.mxu1 %v10565_v63  ;;  %10536 = vmatprep.subr.bf16.mxu0 %v10535_v0  ;;  %v10595_v63 = vunpack.c.l.s8.bf16 %v475_v39  ;;  %v471_v0 = vld [vmem:[#allocation3 + $0x990] sm:$0xff] }
 0x2c5   :  { %10568 = vmatprep.subr.bf16.mxu1 %v10567_v2  ;;  %v8433_v15 = vpop.f32.mrb[22].mxu0  ;;  %v10627_v2 = vunpack.c.l.s8.bf16 %v483_v55 }
 0x2c6   :  { %v8468_v7 = vpop.f32.mrb[22].mxu1  ;;  %v8434_v56 = vpop.f32.mrb[23].mxu0 }
 0x2c7   :  { %v8469_v16 = vpop.f32.mrb[23].mxu1  ;;  %v8435_v17 = vadd.f32 %v8434_v56, %v8433_v15  ;;  %10538 = vmatpush3.bf16.msra.mxu0 %v10537_v9  ;;  %v10597_v9 = vunpack.c.l.s8.bf16 %v471_v0  ;;  %v127_v15 = vmul.f32 0.5, %v115_v6  ;;  %v10633_v56 = vunpack.c.h.s8.bf16 %v479_v48 }
 0x2c8   :  { %v8470_v1 = vadd.f32 %v8469_v16, %v8468_v7  ;;  %10570 = vmatpush3.bf16.msra.mxu1 %v10569_v40  ;;  %10540 = vmatprep.subr.bf16.mxu0 %v10539_v11  ;;  %v10629_v40 = vunpack.c.l.s8.bf16 %v479_v48  ;;  %v10599_v11 = vunpack.c.h.s8.bf16 %v475_v39  ;;  %v10601_v7 = vunpack.c.h.s8.bf16 %v471_v0 }
 0x2c9   :  { %10572 = vmatprep.subr.bf16.mxu1 %v10571_v13  ;;  %v5721_v22 = vadd.f32 %v8435_v17, %v11447_v19  ;;  %v3933_v19 = vrot.slane %v11449_v27, %v11224_v60  ;;  %v476_v13 = vld [vmem:[#allocation3 + $0x9b8] sm:$0xff] }
 0x2ca   :  { %v10603_v16 = vunpack.c.l.s8.bf16 %v476_v13  ;;  %v472_v17 = vld [vmem:[#allocation3 + $0x998] sm:$0xff]  ;;  %v10607_v38 = vunpack.c.h.s8.bf16 %v476_v13 }
 0x2cb   :  { %v11460_v26 = vadd.f32 %v8470_v1, %v5721_v22  ;;  %10542 = vmatpush3.bf16.msra.mxu0 %v10541_v8  ;;  %v10635_v1 = vunpack.c.l.s8.bf16 %v484_v53  ;;  %v480_v8 = vld [vmem:[#allocation3 + $0x9d8] sm:$0xff] }
 0x2cc   :  { %10574 = vmatpush3.bf16.msra.mxu1 %v10573_v18  ;;  %10544 = vmatprep.subr.bf16.mxu0 %v10543_v20 }
 0x2cd   :  { %10576 = vmatprep.subr.bf16.mxu1 %v10575_v54  ;;  %v139_v54 = vadd.f32 0.5, %v127_v15 }
 0x2cf   :  { %10546 = vmatpush3.bf16.msra.mxu0 %v10545_v14 }
 0x2d0   :  { %10578 = vmatpush3.bf16.msra.mxu1 %v10577_v28  ;;  %10580 = vmatprep.subr.bf16.mxu0 %v10579_v29  ;;  %v10605_v28 = vunpack.c.l.s8.bf16 %v472_v17  ;;  %v10637_v29 = vunpack.c.l.s8.bf16 %v480_v8 }
 0x2d1   :  { %10612 = vmatprep.subr.bf16.mxu1 %v10611_v30  ;;  %v10639_v30 = vunpack.c.h.s8.bf16 %v484_v53  ;;  %v487_v53 = vld [vmem:[#allocation3 + $0xa10] sm:$0xff] }
 0x2d2   :  { %6699 = vmatmul.mubr.f32.vlgmr.msra.gmra.mrb[36].mxu0 %v3925_v10  ;;  %v489_v10 = vld [vmem:[#allocation3 + $0xa20] sm:$0xff] }
 0x2d3   :  { %6769 = vmatmul.mubr.f32.vlgmr.msra.gmra.mrb[36].mxu1 %v3933_v19  ;;  %10582 = vmatpush3.bf16.msra.mxu0 %v10581_v34  ;;  %v497_v19 = vld [vmem:[#allocation3 + $0xa60] sm:$0xff]  ;;  %v151_v34 = vmax.f32 %v139_v54, 0.0  ;;  %v10643_v21 = vunpack.c.l.s8.bf16 %v489_v10 }
 0x2d4   :  { %10614 = vmatpush3.bf16.msra.mxu1 %v10613_v35  ;;  %10584 = vmatprep.subr.bf16.mxu0 %v10583_v36  ;;  %v10609_v36 = vunpack.c.h.s8.bf16 %v472_v17  ;;  %v10679_v49 = vunpack.c.h.s8.bf16 %v497_v19 }
 0x2d5   :  { %10616 = vmatprep.subr.bf16.mxu1 %v10615_v5  ;;  %6838 = vmatprep.mubr.f32.mxu0 %v3945_v42  ;;  %v10641_v5 = vunpack.c.h.s8.bf16 %v480_v8  ;;  %v10675_v42 = vunpack.c.l.s8.bf16 %v497_v19  ;;  %v492_v8 = vld [vmem:[#allocation3 + $0xa38] sm:$0xff] }
 0x2d6   :  { %6908 = vmatprep.mubr.f32.mxu1 %v3953_v43  ;;  %v493_v43 = vld [vmem:[#allocation3 + $0xa40] sm:$0xff] }
 0x2d7   :  { %10586 = vmatpush3.bf16.msra.mxu0 %v10585_v44  ;;  %v11476_v44 = vmin.f32 %v151_v34, 1.0  ;;  %v10677_v32 = vunpack.c.l.s8.bf16 %v493_v43  ;;  %v10681_v39 = vunpack.c.h.s8.bf16 %v493_v43 }
 0x2d8   :  { %10618 = vmatpush3.bf16.msra.mxu1 %v10617_v45  ;;  %10588 = vmatprep.subr.bf16.mxu0 %v10587_v46  ;;  %v3949_v45 = vrot.slane %v11449_v27, %v11247_v62  ;;  %v10645_v46 = vunpack.c.l.s8.bf16 %v485_v41 }
 0x2d9   :  { %10620 = vmatprep.subr.bf16.mxu1 %v10619_v47  ;;  %v10647_v47 = vunpack.c.h.s8.bf16 %v489_v10 }
 0x2db   :  { %10590 = vmatpush3.bf16.msra.mxu0 %v10589_v23  ;;  %v490_v23 = vld [vmem:[#allocation3 + $0xa28] sm:$0xff] }
 0x2dc   :  { %10622 = vmatpush3.bf16.msra.mxu1 %v10621_v50  ;;  %10592 = vmatprep.subr.bf16.mxu0 %v10591_v51  ;;  %v498_v50 = vld [vmem:[#allocation3 + $0xa68] sm:$0xff]  ;;  %v3961_v51 = vrot.slane %v11476_v44, %v11209_v31  ;;  %v10651_v55 = vunpack.c.l.s8.bf16 %v490_v23  ;;  %v10655_v48 = vunpack.c.h.s8.bf16 %v490_v23  ;;  %v3957_v23 = vrot.slane %v11476_v44, %v11221_v59 }
 0x2dd   :  { %10624 = vmatprep.subr.bf16.mxu1 %v10623_v52  ;;  %v3969_v52 = vrot.slane %v11476_v44, %v11212_v37  ;;  %v10687_v6 = vunpack.c.h.s8.bf16 %v498_v50 }
 0x2df   :  { %10594 = vmatpush3.bf16.msra.mxu0 %v10593_v57  ;;  %v486_v57 = vld [vmem:[#allocation3 + $0xa08] sm:$0xff] }
 0x2e0   :  { %10626 = vmatpush3.bf16.msra.mxu1 %v10625_v58  ;;  %10596 = vmatprep.subr.bf16.mxu0 %v10595_v63  ;;  %v10683_v58 = vunpack.c.l.s8.bf16 %v498_v50  ;;  %v494_v63 = vld [vmem:[#allocation3 + $0xa48] sm:$0xff]  ;;  %v10653_v0 = vunpack.c.l.s8.bf16 %v486_v57 }
 0x2e1   :  { %10628 = vmatprep.subr.bf16.mxu1 %v10627_v2  ;;  %v10685_v2 = vunpack.c.l.s8.bf16 %v494_v63 }
 0x2e3   :  { %10598 = vmatpush3.bf16.msra.mxu0 %v10597_v9  ;;  %v491_v9 = vld [vmem:[#allocation3 + $0xa30] sm:$0xff] }
 0x2e4   :  { %10630 = vmatpush3.bf16.msra.mxu1 %v10629_v40  ;;  %10600 = vmatprep.subr.bf16.mxu0 %v10599_v11  ;;  %v499_v40 = vld [vmem:[#allocation3 + $0xa70] sm:$0xff]  ;;  %v10657_v11 = vunpack.c.h.s8.bf16 %v486_v57  ;;  %v10659_v13 = vunpack.c.l.s8.bf16 %v491_v9  ;;  %v10663_v17 = vunpack.c.h.s8.bf16 %v491_v9  ;;  %v3977_v57 = vrot.slane %v11476_v44, %v11227_v3  ;;  %v510_v9 = vld [vmem:[#allocation3 + $0xac8] sm:$0xff] }
 0x2e5   :  { %10632 = vmatprep.subr.bf16.mxu1 %v10631_v12  ;;  %v8503_v18 = vpop.f32.mrb[24].mxu0  ;;  %v10689_v12 = vunpack.c.h.s8.bf16 %v494_v63  ;;  %v10691_v15 = vunpack.c.l.s8.bf16 %v499_v40 }
 0x2e6   :  { %v8538_v20 = vpop.f32.mrb[24].mxu1  ;;  %v8504_v22 = vpop.f32.mrb[25].mxu0 }
 0x2e7   :  { %v8539_v24 = vpop.f32.mrb[25].mxu1  ;;  %v8505_v25 = vadd.f32 %v8504_v22, %v8503_v18  ;;  %10602 = vmatpush3.bf16.msra.mxu0 %v10601_v7  ;;  %v495_v7 = vld [vmem:[#allocation3 + $0xa50] sm:$0xff]  ;;  %v500_v18 = vld [vmem:[#allocation3 + $0xa78] sm:$0xff]  ;;  %v10667_v22 = vunpack.c.l.s8.bf16 %v492_v8 }
 0x2e8   :  { %v8540_v14 = vadd.f32 %v8539_v24, %v8538_v20  ;;  %10634 = vmatpush3.bf16.msra.mxu1 %v10633_v56  ;;  %10604 = vmatprep.subr.bf16.mxu0 %v10603_v16  ;;  %v10661_v56 = vunpack.c.l.s8.bf16 %v487_v53  ;;  %v10693_v16 = vunpack.c.l.s8.bf16 %v495_v7  ;;  %v10665_v20 = vunpack.c.h.s8.bf16 %v487_v53  ;;  %v488_v24 = vld [vmem:[#allocation3 + $0xa18] sm:$0xff]  ;;  %v507_v53 = vld [vmem:[#allocation3 + $0xab0] sm:$0xff] }
 0x2e9   :  { %10636 = vmatprep.subr.bf16.mxu1 %v10635_v1  ;;  %v5861_v33 = vadd.f32 %v8505_v25, %v11460_v26  ;;  %v3941_v26 = vrot.slane %v11449_v27, %v11244_v61  ;;  %v10649_v27 = vunpack.c.h.s8.bf16 %v485_v41  ;;  %v10695_v1 = vunpack.c.h.s8.bf16 %v499_v40  ;;  %v505_v41 = vld [vmem:[#allocation3 + $0xaa0] sm:$0xff] }
 0x2ea   :  { %v10697_v54 = vunpack.c.h.s8.bf16 %v495_v7  ;;  %v10699_v25 = vunpack.c.l.s8.bf16 %v500_v18  ;;  %v10669_v19 = vunpack.c.l.s8.bf16 %v488_v24 }
 0x2eb   :  { %v11474_v35 = vadd.f32 %v8540_v14, %v5861_v33  ;;  %10606 = vmatpush3.bf16.msra.mxu0 %v10605_v28  ;;  %v496_v14 = vld [vmem:[#allocation3 + $0xa58] sm:$0xff] }
 0x2ec   :  { %10638 = vmatpush3.bf16.msra.mxu1 %v10637_v29  ;;  %10608 = vmatprep.subr.bf16.mxu0 %v10607_v38  ;;  %v10701_v34 = vunpack.c.l.s8.bf16 %v496_v14 }
 0x2ed   :  { %10640 = vmatprep.subr.bf16.mxu1 %v10639_v30 }
 0x2ef   :  { %10610 = vmatpush3.bf16.msra.mxu0 %v10609_v36  ;;  %v10671_v36 = vunpack.c.h.s8.bf16 %v492_v8  ;;  %v511_v8 = vld [vmem:[#allocation3 + $0xad0] sm:$0xff] }
 0x2f0   :  { %10642 = vmatpush3.bf16.msra.mxu1 %v10641_v5  ;;  %10644 = vmatprep.subr.bf16.mxu0 %v10643_v21  ;;  %v10703_v5 = vunpack.c.h.s8.bf16 %v500_v18  ;;  %v116_v18 = vld [vmem:[%s11544_s0 + $0x58] sm:$0xff] }
 0x2f1   :  { %10676 = vmatprep.subr.bf16.mxu1 %v10675_v42  ;;  %v513_v42 = vld [vmem:[#allocation3 + $0xae0] sm:$0xff] }
 0x2f2   :  { %6839 = vmatmul.mubr.f32.vlgmr.msra.gmra.mrb[38].mxu0 %v3941_v26  ;;  %v10673_v26 = vunpack.c.h.s8.bf16 %v488_v24 }
 0x2f3   :  { %6909 = vmatmul.mubr.f32.vlgmr.msra.gmra.mrb[38].mxu1 %v3949_v45  ;;  %10646 = vmatpush3.bf16.msra.mxu0 %v10645_v46  ;;  %v10705_v45 = vunpack.c.h.s8.bf16 %v496_v14  ;;  %v10707_v46 = vunpack.c.l.s8.bf16 %v505_v41  ;;  %v516_v14 = vld [vmem:[#allocation3 + $0xaf8] sm:$0xff] }
 0x2f4   :  { %10678 = vmatpush3.bf16.msra.mxu1 %v10677_v32  ;;  %10648 = vmatprep.subr.bf16.mxu0 %v10647_v47  ;;  %v501_v32 = vld [vmem:[#allocation3 + $0xa80] sm:$0xff]  ;;  %v10739_v47 = vunpack.c.l.s8.bf16 %v513_v42 }
 0x2f5   :  { %10680 = vmatprep.subr.bf16.mxu1 %v10679_v49  ;;  %6978 = vmatprep.mubr.f32.mxu0 %v3961_v51  ;;  %v509_v49 = vld [vmem:[#allocation3 + $0xac0] sm:$0xff]  ;;  %v10709_v50 = vunpack.c.l.s8.bf16 %v501_v32  ;;  %v10713_v63 = vunpack.c.h.s8.bf16 %v501_v32 }
 0x2f6   :  { %7048 = vmatprep.mubr.f32.mxu1 %v3969_v52  ;;  %v10741_v51 = vunpack.c.l.s8.bf16 %v509_v49  ;;  %v10711_v52 = vunpack.c.h.s8.bf16 %v505_v41 }
 0x2f7   :  { %10650 = vmatpush3.bf16.msra.mxu0 %v10649_v27  ;;  %v10743_v27 = vunpack.c.h.s8.bf16 %v513_v42 }
 0x2f8   :  { %10682 = vmatpush3.bf16.msra.mxu1 %v10681_v39  ;;  %10652 = vmatprep.subr.bf16.mxu0 %v10651_v55  ;;  %v506_v39 = vld [vmem:[#allocation3 + $0xaa8] sm:$0xff] }
 0x2f9   :  { %10684 = vmatprep.subr.bf16.mxu1 %v10683_v58  ;;  %v514_v55 = vld [vmem:[#allocation3 + $0xae8] sm:$0xff]  ;;  %v3985_v58 = vrot.slane %v11476_v44, %v11230_v4 }
 0x2fb   :  { %10654 = vmatpush3.bf16.msra.mxu0 %v10653_v0  ;;  %v10745_v0 = vunpack.c.h.s8.bf16 %v509_v49 }
 0x2fc   :  { %10686 = vmatpush3.bf16.msra.mxu1 %v10685_v2  ;;  %10656 = vmatprep.subr.bf16.mxu0 %v10655_v48  ;;  %v10715_v2 = vunpack.c.l.s8.bf16 %v506_v39  ;;  %v502_v48 = vld [vmem:[#allocation3 + $0xa88] sm:$0xff] }
 0x2fd   :  { %10688 = vmatprep.subr.bf16.mxu1 %v10687_v6  ;;  %v10747_v6 = vunpack.c.l.s8.bf16 %v514_v55  ;;  %v10717_v40 = vunpack.c.l.s8.bf16 %v502_v48  ;;  %v10721_v7 = vunpack.c.h.s8.bf16 %v502_v48 }
 0x2ff   :  { %10658 = vmatpush3.bf16.msra.mxu0 %v10657_v11  ;;  %v10749_v11 = vunpack.c.l.s8.bf16 %v510_v9 }
 0x300   :  { %10690 = vmatpush3.bf16.msra.mxu1 %v10689_v12  ;;  %10660 = vmatprep.subr.bf16.mxu0 %v10659_v13  ;;  %v10719_v12 = vunpack.c.h.s8.bf16 %v506_v39  ;;  %v10751_v13 = vunpack.c.h.s8.bf16 %v514_v55  ;;  %v517_v55 = vld [vmem:[#allocation3 + $0xb00] sm:$0xff] }
 0x301   :  { %10692 = vmatprep.subr.bf16.mxu1 %v10691_v15  ;;  %v515_v15 = vld [vmem:[#allocation3 + $0xaf0] sm:$0xff] }
 0x302   :  { %v10759_v24 = vunpack.c.h.s8.bf16 %v515_v15 }
 0x303   :  { %10662 = vmatpush3.bf16.msra.mxu0 %v10661_v56  ;;  %v10753_v56 = vunpack.c.h.s8.bf16 %v510_v9 }
 0x304   :  { %10694 = vmatpush3.bf16.msra.mxu1 %v10693_v16  ;;  %10664 = vmatprep.subr.bf16.mxu0 %v10663_v17  ;;  %v10723_v16 = vunpack.c.l.s8.bf16 %v507_v53  ;;  %v503_v17 = vld [vmem:[#allocation3 + $0xa90] sm:$0xff] }
 0x305   :  { %10696 = vmatprep.subr.bf16.mxu1 %v10695_v1  ;;  %v8573_v28 = vpop.f32.mrb[26].mxu0  ;;  %v10755_v1 = vunpack.c.l.s8.bf16 %v515_v15 }
 0x306   :  { %v8608_v29 = vpop.f32.mrb[26].mxu1  ;;  %v8574_v38 = vpop.f32.mrb[27].mxu0 }
 0x307   :  { %v8609_v30 = vpop.f32.mrb[27].mxu1  ;;  %v8575_v33 = vadd.f32 %v8574_v38, %v8573_v28  ;;  %10666 = vmatpush3.bf16.msra.mxu0 %v10665_v20  ;;  %v10725_v20 = vunpack.c.l.s8.bf16 %v503_v17  ;;  %v128_v28 = vmul.f32 0.5, %v116_v18  ;;  %v10761_v38 = vunpack.c.h.s8.bf16 %v511_v8  ;;  %v531_v18 = vld [vmem:[#allocation3 + $0xb70] sm:$0xff] }
 0x308   :  { %v8610_v10 = vadd.f32 %v8609_v30, %v8608_v29  ;;  %10698 = vmatpush3.bf16.msra.mxu1 %v10697_v54  ;;  %10668 = vmatprep.subr.bf16.mxu0 %v10667_v22  ;;  %v10757_v54 = vunpack.c.l.s8.bf16 %v511_v8  ;;  %v10727_v22 = vunpack.c.h.s8.bf16 %v507_v53  ;;  %v10729_v29 = vunpack.c.h.s8.bf16 %v503_v17  ;;  %v523_v8 = vld [vmem:[#allocation3 + $0xb30] sm:$0xff] }
 0x309   :  { %10700 = vmatprep.subr.bf16.mxu1 %v10699_v25  ;;  %v6001_v21 = vadd.f32 %v8575_v33, %v11474_v35  ;;  %v3965_v35 = vrot.slane %v11476_v44, %v11224_v60  ;;  %v508_v25 = vld [vmem:[#allocation3 + $0xab8] sm:$0xff] }
 0x30a   :  { %v10731_v30 = vunpack.c.l.s8.bf16 %v508_v25  ;;  %v504_v33 = vld [vmem:[#allocation3 + $0xa98] sm:$0xff]  ;;  %v10735_v32 = vunpack.c.h.s8.bf16 %v508_v25  ;;  %v10819_v25 = vunpack.c.l.s8.bf16 %v531_v18 }
 0x30b   :  { %v11487_v43 = vadd.f32 %v8610_v10, %v6001_v21  ;;  %10670 = vmatpush3.bf16.msra.mxu0 %v10669_v19  ;;  %v10763_v10 = vunpack.c.l.s8.bf16 %v516_v14  ;;  %v512_v19 = vld [vmem:[#allocation3 + $0xad8] sm:$0xff] }
 0x30c   :  { %10702 = vmatpush3.bf16.msra.mxu1 %v10701_v34  ;;  %10672 = vmatprep.subr.bf16.mxu0 %v10671_v36 }
 0x30d   :  { %10704 = vmatprep.subr.bf16.mxu1 %v10703_v5  ;;  %v140_v5 = vadd.f32 0.5, %v128_v28 }
 0x30f   :  { %10674 = vmatpush3.bf16.msra.mxu0 %v10673_v26 }
 0x310   :  { %10706 = vmatpush3.bf16.msra.mxu1 %v10705_v45  ;;  %10708 = vmatprep.subr.bf16.mxu0 %v10707_v46  ;;  %v10733_v45 = vunpack.c.l.s8.bf16 %v504_v33  ;;  %v10765_v46 = vunpack.c.l.s8.bf16 %v512_v19 }
 0x311   :  { %10740 = vmatprep.subr.bf16.mxu1 %v10739_v47  ;;  %v10767_v47 = vunpack.c.h.s8.bf16 %v516_v14  ;;  %v527_v14 = vld [vmem:[#allocation3 + $0xb50] sm:$0xff] }
 0x312   :  { %6979 = vmatmul.mubr.f32.vlgmr.msra.gmra.mrb[40].mxu0 %v3957_v23  ;;  %v521_v23 = vld [vmem:[#allocation3 + $0xb20] sm:$0xff] }
 0x313   :  { %7049 = vmatmul.mubr.f32.vlgmr.msra.gmra.mrb[40].mxu1 %v3965_v35  ;;  %10710 = vmatpush3.bf16.msra.mxu0 %v10709_v50  ;;  %v529_v35 = vld [vmem:[#allocation3 + $0xb60] sm:$0xff]  ;;  %v152_v50 = vmax.f32 %v140_v5, 0.0  ;;  %v10771_v39 = vunpack.c.l.s8.bf16 %v521_v23  ;;  %v520_v5 = vld [vmem:[#allocation3 + $0xb18] sm:$0xff] }
 0x314   :  { %10742 = vmatpush3.bf16.msra.mxu1 %v10741_v51  ;;  %10712 = vmatprep.subr.bf16.mxu0 %v10711_v52  ;;  %v10737_v52 = vunpack.c.h.s8.bf16 %v504_v33  ;;  %v10807_v9 = vunpack.c.h.s8.bf16 %v529_v35  ;;  %v524_v33 = vld [vmem:[#allocation3 + $0xb38] sm:$0xff] }
 0x315   :  { %10744 = vmatprep.subr.bf16.mxu1 %v10743_v27  ;;  %7118 = vmatprep.mubr.f32.mxu0 %v3977_v57  ;;  %v10769_v27 = vunpack.c.h.s8.bf16 %v512_v19  ;;  %v10803_v57 = vunpack.c.l.s8.bf16 %v529_v35  ;;  %v10799_v35 = vunpack.c.h.s8.bf16 %v524_v33 }
 0x316   :  { %7188 = vmatprep.mubr.f32.mxu1 %v3985_v58  ;;  %v525_v58 = vld [vmem:[#allocation3 + $0xb40] sm:$0xff] }
 0x317   :  { %10714 = vmatpush3.bf16.msra.mxu0 %v10713_v63  ;;  %v11503_v63 = vmin.f32 %v152_v50, 1.0  ;;  %v10805_v48 = vunpack.c.l.s8.bf16 %v525_v58  ;;  %v10809_v53 = vunpack.c.h.s8.bf16 %v525_v58 }
 0x318   :  { %10746 = vmatpush3.bf16.msra.mxu1 %v10745_v0  ;;  %10716 = vmatprep.subr.bf16.mxu0 %v10715_v2  ;;  %v3981_v0 = vrot.slane %v11476_v44, %v11247_v62  ;;  %v10773_v2 = vunpack.c.l.s8.bf16 %v517_v55 }
 0x319   :  { %10748 = vmatprep.subr.bf16.mxu1 %v10747_v6  ;;  %v10775_v6 = vunpack.c.h.s8.bf16 %v521_v23 }
 0x31b   :  { %10718 = vmatpush3.bf16.msra.mxu0 %v10717_v40  ;;  %v522_v40 = vld [vmem:[#allocation3 + $0xb28] sm:$0xff] }
 0x31c   :  { %10750 = vmatpush3.bf16.msra.mxu1 %v10749_v11  ;;  %10720 = vmatprep.subr.bf16.mxu0 %v10719_v12  ;;  %v530_v11 = vld [vmem:[#allocation3 + $0xb68] sm:$0xff]  ;;  %v3993_v12 = vrot.slane %v11503_v63, %v11209_v31  ;;  %v10779_v15 = vunpack.c.l.s8.bf16 %v522_v40 }
 0x31d   :  { %10752 = vmatprep.subr.bf16.mxu1 %v10751_v13  ;;  %v4001_v13 = vrot.slane %v11503_v63, %v11212_v37  ;;  %v10783_v37 = vunpack.c.h.s8.bf16 %v522_v40 }
 0x31f   :  { %10722 = vmatpush3.bf16.msra.mxu0 %v10721_v7  ;;  %v518_v7 = vld [vmem:[#allocation3 + $0xb08] sm:$0xff] }
 0x320   :  { %10754 = vmatpush3.bf16.msra.mxu1 %v10753_v56  ;;  %10724 = vmatprep.subr.bf16.mxu0 %v10723_v16  ;;  %v10811_v56 = vunpack.c.l.s8.bf16 %v530_v11  ;;  %v526_v16 = vld [vmem:[#allocation3 + $0xb48] sm:$0xff]  ;;  %v10781_v31 = vunpack.c.l.s8.bf16 %v518_v7 }
 0x321   :  { %10756 = vmatprep.subr.bf16.mxu1 %v10755_v1  ;;  %v10813_v17 = vunpack.c.l.s8.bf16 %v526_v16  ;;  %v10815_v1 = vunpack.c.h.s8.bf16 %v530_v11 }
 0x323   :  { %10726 = vmatpush3.bf16.msra.mxu0 %v10725_v20  ;;  %v10785_v20 = vunpack.c.h.s8.bf16 %v518_v7 }
 0x324   :  { %10758 = vmatpush3.bf16.msra.mxu1 %v10757_v54  ;;  %10728 = vmatprep.subr.bf16.mxu0 %v10727_v22  ;;  %v10817_v54 = vunpack.c.h.s8.bf16 %v526_v16  ;;  %v10787_v22 = vunpack.c.l.s8.bf16 %v523_v8  ;;  %v534_v16 = vld [vmem:[#allocation3 + $0xb88] sm:$0xff] }
 0x325   :  { %10760 = vmatprep.subr.bf16.mxu1 %v10759_v24  ;;  %v8643_v34 = vpop.f32.mrb[28].mxu0  ;;  %v519_v24 = vld [vmem:[#allocation3 + $0xb10] sm:$0xff] }
 0x326   :  { %v8678_v36 = vpop.f32.mrb[28].mxu1  ;;  %v8644_v21 = vpop.f32.mrb[29].mxu0  ;;  %v10789_v28 = vunpack.c.l.s8.bf16 %v519_v24  ;;  %v10793_v19 = vunpack.c.h.s8.bf16 %v519_v24  ;;  %v535_v24 = vld [vmem:[#allocation3 + $0xb90] sm:$0xff] }
 0x327   :  { %v8679_v41 = vpop.f32.mrb[29].mxu1  ;;  %v8645_v42 = vadd.f32 %v8644_v21, %v8643_v34  ;;  %10730 = vmatpush3.bf16.msra.mxu0 %v10729_v29  ;;  %v10821_v29 = vunpack.c.l.s8.bf16 %v527_v14  ;;  %v10825_v34 = vunpack.c.h.s8.bf16 %v527_v14  ;;  %v543_v14 = vld [vmem:[#allocation3 + $0xbd0] sm:$0xff] }
 0x328   :  { %v8680_v26 = vadd.f32 %v8679_v41, %v8678_v36  ;;  %10762 = vmatpush3.bf16.msra.mxu1 %v10761_v38  ;;  %10732 = vmatprep.subr.bf16.mxu0 %v10731_v30  ;;  %v10791_v38 = vunpack.c.h.s8.bf16 %v523_v8  ;;  %v10823_v30 = vunpack.c.h.s8.bf16 %v531_v18  ;;  %v10795_v36 = vunpack.c.l.s8.bf16 %v524_v33  ;;  %v528_v41 = vld [vmem:[#allocation3 + $0xb58] sm:$0xff]  ;;  %v539_v8 = vld [vmem:[#allocation3 + $0xbb0] sm:$0xff] }
 0x329   :  { %10764 = vmatprep.subr.bf16.mxu1 %v10763_v10  ;;  %v6141_v49 = vadd.f32 %v8645_v42, %v11487_v43  ;;  %v3973_v43 = vrot.slane %v11476_v44, %v11244_v61  ;;  %v10777_v44 = vunpack.c.h.s8.bf16 %v517_v55  ;;  %v532_v10 = vld [vmem:[#allocation3 + $0xb78] sm:$0xff]  ;;  %v10829_v23 = vunpack.c.l.s8.bf16 %v528_v41  ;;  %v547_v18 = vld [vmem:[#allocation3 + $0xbf0] sm:$0xff] }
 0x32a   :  { %v10827_v21 = vunpack.c.l.s8.bf16 %v532_v10  ;;  %v10831_v50 = vunpack.c.h.s8.bf16 %v532_v10  ;;  %v10833_v58 = vunpack.c.h.s8.bf16 %v528_v41  ;;  %v540_v33 = vld [vmem:[#allocation3 + $0xbb8] sm:$0xff] }
 0x32b   :  { %v11501_v51 = vadd.f32 %v8680_v26, %v6141_v49  ;;  %10734 = vmatpush3.bf16.msra.mxu0 %v10733_v45  ;;  %v10797_v49 = vunpack.c.l.s8.bf16 %v520_v5  ;;  %v548_v10 = vld [vmem:[#allocation3 + $0xbf8] sm:$0xff] }
 0x32c   :  { %10766 = vmatpush3.bf16.msra.mxu1 %v10765_v46  ;;  %10736 = vmatprep.subr.bf16.mxu0 %v10735_v32  ;;  %v544_v41 = vld [vmem:[#allocation3 + $0xbd8] sm:$0xff] }
 0x32d   :  { %10768 = vmatprep.subr.bf16.mxu1 %v10767_v47 }
 0x32f   :  { %10738 = vmatpush3.bf16.msra.mxu0 %v10737_v52 }
 0x330   :  { %10770 = vmatpush3.bf16.msra.mxu1 %v10769_v27  ;;  %10772 = vmatprep.subr.bf16.mxu0 %v10771_v39  ;;  %v537_v27 = vld [vmem:[#allocation3 + $0xba0] sm:$0xff] }
 0x331   :  { %10804 = vmatprep.subr.bf16.mxu1 %v10803_v57  ;;  %v545_v39 = vld [vmem:[#allocation3 + $0xbe0] sm:$0xff]  ;;  %v10801_v57 = vunpack.c.h.s8.bf16 %v520_v5  ;;  %v10839_v11 = vunpack.c.h.s8.bf16 %v537_v27  ;;  %v536_v5 = vld [vmem:[#allocation3 + $0xb98] sm:$0xff] }
 0x332   :  { %7119 = vmatmul.mubr.f32.vlgmr.msra.gmra.mrb[42].mxu0 %v3973_v43  ;;  %v10835_v43 = vunpack.c.l.s8.bf16 %v537_v27 }
 0x333   :  { %7189 = vmatmul.mubr.f32.vlgmr.msra.gmra.mrb[42].mxu1 %v3981_v0  ;;  %10774 = vmatpush3.bf16.msra.mxu0 %v10773_v2  ;;  %v533_v0 = vld [vmem:[#allocation3 + $0xb80] sm:$0xff]  ;;  %v10867_v2 = vunpack.c.l.s8.bf16 %v545_v39 }
 0x334   :  { %10806 = vmatpush3.bf16.msra.mxu1 %v10805_v48  ;;  %10776 = vmatprep.subr.bf16.mxu0 %v10775_v6  ;;  %v541_v48 = vld [vmem:[#allocation3 + $0xbc0] sm:$0xff]  ;;  %v3989_v6 = vrot.slane %v11503_v63, %v11221_v59 }
 0x335   :  { %10808 = vmatprep.subr.bf16.mxu1 %v10807_v9  ;;  %7258 = vmatprep.mubr.f32.mxu0 %v3993_v12  ;;  %v10837_v9 = vunpack.c.l.s8.bf16 %v533_v0  ;;  %v10869_v40 = vunpack.c.l.s8.bf16 %v541_v48  ;;  %v10871_v12 = vunpack.c.h.s8.bf16 %v545_v39  ;;  %v10873_v7 = vunpack.c.h.s8.bf16 %v541_v48 }
 0x336   :  { %7328 = vmatprep.mubr.f32.mxu1 %v4001_v13  ;;  %v538_v13 = vld [vmem:[#allocation3 + $0xba8] sm:$0xff]  ;;  %v10865_v39 = vunpack.c.h.s8.bf16 %v536_v5 }
 0x337   :  { %10778 = vmatpush3.bf16.msra.mxu0 %v10777_v44  ;;  %v546_v44 = vld [vmem:[#allocation3 + $0xbe8] sm:$0xff] }
 0x338   :  { %10810 = vmatpush3.bf16.msra.mxu1 %v10809_v53  ;;  %10780 = vmatprep.subr.bf16.mxu0 %v10779_v15  ;;  %v4009_v53 = vrot.slane %v11503_v63, %v11227_v3  ;;  %v4017_v15 = vrot.slane %v11503_v63, %v11230_v4  ;;  %v10845_v3 = vunpack.c.l.s8.bf16 %v534_v16  ;;  %v10847_v4 = vunpack.c.h.s8.bf16 %v538_v13 }
 0x339   :  { %10812 = vmatprep.subr.bf16.mxu1 %v10811_v56  ;;  %v10843_v56 = vunpack.c.l.s8.bf16 %v538_v13 }
 0x33b   :  { %10782 = vmatpush3.bf16.msra.mxu0 %v10781_v31  ;;  %v10875_v31 = vunpack.c.l.s8.bf16 %v546_v44 }
 0x33c   :  { %10814 = vmatpush3.bf16.msra.mxu1 %v10813_v17  ;;  %10784 = vmatprep.subr.bf16.mxu0 %v10783_v37  ;;  %v542_v17 = vld [vmem:[#allocation3 + $0xbc8] sm:$0xff] }
 0x33d   :  { %10816 = vmatprep.subr.bf16.mxu1 %v10815_v1  ;;  %v10877_v37 = vunpack.c.l.s8.bf16 %v542_v17  ;;  %v10879_v1 = vunpack.c.h.s8.bf16 %v546_v44 }
 0x33f   :  { %10786 = vmatpush3.bf16.msra.mxu0 %v10785_v20  ;;  %v10849_v20 = vunpack.c.h.s8.bf16 %v534_v16 }
 0x340   :  { %10818 = vmatpush3.bf16.msra.mxu1 %v10817_v54  ;;  %10788 = vmatprep.subr.bf16.mxu0 %v10787_v22  ;;  %v10881_v54 = vunpack.c.h.s8.bf16 %v542_v17  ;;  %v10851_v22 = vunpack.c.l.s8.bf16 %v539_v8 }
 0x341   :  { %10820 = vmatprep.subr.bf16.mxu1 %v10819_v25  ;;  %v10883_v25 = vunpack.c.l.s8.bf16 %v547_v18 }
 0x343   :  { %10790 = vmatpush3.bf16.msra.mxu0 %v10789_v28  ;;  %v10853_v28 = vunpack.c.l.s8.bf16 %v535_v24 }
 0x344   :  { %10822 = vmatpush3.bf16.msra.mxu1 %v10821_v29  ;;  %10792 = vmatprep.subr.bf16.mxu0 %v10791_v38  ;;  %v10885_v29 = vunpack.c.l.s8.bf16 %v543_v14  ;;  %v10855_v38 = vunpack.c.h.s8.bf16 %v539_v8  ;;  %v7494_v8 = vld [vmem:[#allocation8 + $0x10] sm:$0xff] }
 0x345   :  { %10824 = vmatprep.subr.bf16.mxu1 %v10823_v30  ;;  %v8713_v42 = vpop.f32.mrb[30].mxu0  ;;  %v10887_v30 = vunpack.c.h.s8.bf16 %v547_v18  ;;  %v11089_v18 = vmov 0.0|0.0  }
 0x346   :  { %v8748_v26 = vpop.f32.mrb[30].mxu1  ;;  %v8714_v45 = vpop.f32.mrb[31].mxu0 }
 0x347   :  { %v8749_v46 = vpop.f32.mrb[31].mxu1  ;;  %v8715_v32 = vadd.f32 %v8714_v45, %v8713_v42  ;;  %10794 = vmatpush3.bf16.msra.mxu0 %v10793_v19  ;;  %v10857_v19 = vunpack.c.h.s8.bf16 %v535_v24  ;;  %v7496_v24 = vld [vmem:[#allocation8 + $0x20] sm:$0xff] }
 0x348   :  { %v8750_v47 = vadd.f32 %v8749_v46, %v8748_v26  ;;  %10826 = vmatpush3.bf16.msra.mxu1 %v10825_v34  ;;  %10796 = vmatprep.subr.bf16.mxu0 %v10795_v36  ;;  %v10889_v34 = vunpack.c.h.s8.bf16 %v543_v14  ;;  %v10859_v36 = vunpack.c.l.s8.bf16 %v540_v33 }
 0x349   :  { %10828 = vmatprep.subr.bf16.mxu1 %v10827_v21  ;;  %v6281_v52 = vadd.f32 %v8715_v32, %v11501_v51  ;;  %v3997_v51 = vrot.slane %v11503_v63, %v11224_v60  ;;  %v10841_v60 = vunpack.c.h.s8.bf16 %v533_v0  ;;  %v10891_v21 = vunpack.c.l.s8.bf16 %v548_v10 }
 0x34b   :  { %v11514_v55 = vadd.f32 %v8750_v47, %v6281_v52  ;;  %10798 = vmatpush3.bf16.msra.mxu0 %v10797_v49  ;;  %v10861_v49 = vunpack.c.l.s8.bf16 %v536_v5 }
 0x34c   :  { %10830 = vmatpush3.bf16.msra.mxu1 %v10829_v23  ;;  %10800 = vmatprep.subr.bf16.mxu0 %v10799_v35  ;;  %v10893_v23 = vunpack.c.l.s8.bf16 %v544_v41  ;;  %v10863_v35 = vunpack.c.h.s8.bf16 %v540_v33  ;;  %v7498_v33 = vld [vmem:[#allocation8 + $0x30] sm:$0xff] }
 0x34d   :  { %10832 = vmatprep.subr.bf16.mxu1 %v10831_v50  ;;  %v10895_v50 = vunpack.c.h.s8.bf16 %v548_v10  ;;  %v7499_v10 = vld [vmem:[#allocation8 + $0x38] sm:$0xff] }
 0x34e   :  { %v10909_v5 = vpack.c.bf16 %v7499_v10, %v7498_v33 }
 0x34f   :  { %10802 = vmatpush3.bf16.msra.mxu0 %v10801_v57  ;;  %v10897_v57 = vunpack.c.h.s8.bf16 %v544_v41 }
 0x350   :  { %10834 = vmatpush3.bf16.msra.mxu1 %v10833_v58  ;;  %10836 = vmatprep.subr.bf16.mxu0 %v10835_v43  ;;  %v4005_v58 = vrot.slane %v11503_v63, %v11244_v61  ;;  %v4013_v43 = vrot.slane %v11503_v63, %v11247_v62 }
 0x351   :  { %10868 = vmatprep.subr.bf16.mxu1 %v10867_v2 }
 0x352   :  { %7259 = vmatmul.mubr.f32.vlgmr.msra.gmra.mrb[44].mxu0 %v3989_v6 }
 0x353   :  { %7329 = vmatmul.mubr.f32.vlgmr.msra.gmra.mrb[44].mxu1 %v3997_v51  ;;  %10838 = vmatpush3.bf16.msra.mxu0 %v10837_v9 }
 0x354   :  { %10870 = vmatpush3.bf16.msra.mxu1 %v10869_v40  ;;  %10840 = vmatprep.subr.bf16.mxu0 %v10839_v11 }
 0x355   :  { %10872 = vmatprep.subr.bf16.mxu1 %v10871_v12  ;;  %7398 = vmatprep.mubr.f32.mxu0 %v4009_v53 }
 0x356   :  { %7468 = vmatprep.mubr.f32.mxu1 %v4017_v15 }
 0x357   :  { %10842 = vmatpush3.bf16.msra.mxu0 %v10841_v60 }
 0x358   :  { %10874 = vmatpush3.bf16.msra.mxu1 %v10873_v7  ;;  %10844 = vmatprep.subr.bf16.mxu0 %v10843_v56  ;;  %v11088_v7 = vmov 0.0  }
 0x359   :  { %10876 = vmatprep.subr.bf16.mxu1 %v10875_v31  ;;  %104 = vst [vmem:[#allocation2] sm:$0x1] %v11088_v7 }
 0x35b   :  { %10846 = vmatpush3.bf16.msra.mxu0 %v10845_v3 }
 0x35c   :  { %10878 = vmatpush3.bf16.msra.mxu1 %v10877_v37  ;;  %10848 = vmatprep.subr.bf16.mxu0 %v10847_v4  ;;  %v7492_v4 = vld [vmem:[#allocation8] sm:$0xff] }
 0x35d   :  { %10880 = vmatprep.subr.bf16.mxu1 %v10879_v1  ;;  %v7493_v1 = vld [vmem:[#allocation8 + $0x8] sm:$0xff] }
 0x35f   :  { %10850 = vmatpush3.bf16.msra.mxu0 %v10849_v20  ;;  %v10900_v20 = vpack.c.bf16 %v7493_v1, %v7492_v4  ;;  %v7506_v1 = vld [vmem:[#allocation8 + $0x70] sm:$0xff] }
 0x360   :  { %10882 = vmatpush3.bf16.msra.mxu1 %v10881_v54  ;;  %10852 = vmatprep.subr.bf16.mxu0 %v10851_v22  ;;  %v7495_v54 = vld [vmem:[#allocation8 + $0x18] sm:$0xff] }
 0x361   :  { %10884 = vmatprep.subr.bf16.mxu1 %v10883_v25  ;;  %v10903_v22 = vpack.c.bf16 %v7495_v54, %v7494_v8  ;;  %v7497_v25 = vld [vmem:[#allocation8 + $0x28] sm:$0xff]  ;;  %v7507_v8 = vld [vmem:[#allocation8 + $0x78] sm:$0xff]  ;;  %v7578_v54 = vld [vmem:[#allocation10] sm:$0xff] }
 0x363   :  { %10854 = vmatpush3.bf16.msra.mxu0 %v10853_v28 }
 0x364   :  { %10886 = vmatpush3.bf16.msra.mxu1 %v10885_v29  ;;  %10856 = vmatprep.subr.bf16.mxu0 %v10855_v38  ;;  %v10906_v29 = vpack.c.bf16 %v7497_v25, %v7496_v24 }
 0x365   :  { %10888 = vmatprep.subr.bf16.mxu1 %v10887_v30  ;;  %v8783_v42 = vpop.f32.mrb[32].mxu0 }
 0x366   :  { %v8818_v26 = vpop.f32.mrb[32].mxu1  ;;  %v8784_v45 = vpop.f32.mrb[33].mxu0 }
 0x367   :  { %v8819_v46 = vpop.f32.mrb[33].mxu1  ;;  %v8785_v32 = vadd.f32 %v8784_v45, %v8783_v42  ;;  %10858 = vmatpush3.bf16.msra.mxu0 %v10857_v19 }
 0x368   :  { %v8820_v47 = vadd.f32 %v8819_v46, %v8818_v26  ;;  %10890 = vmatpush3.bf16.msra.mxu1 %v10889_v34  ;;  %10860 = vmatprep.subr.bf16.mxu0 %v10859_v36 }
 0x369   :  { %10892 = vmatprep.subr.bf16.mxu1 %v10891_v21  ;;  %v6421_v52 = vadd.f32 %v8785_v32, %v11514_v55 }
 0x36b   :  { %v6491_v27 = vadd.f32 %v8820_v47, %v6421_v52  ;;  %10862 = vmatpush3.bf16.msra.mxu0 %v10861_v49 }
 0x36c   :  { %10894 = vmatpush3.bf16.msra.mxu1 %v10893_v23  ;;  %10864 = vmatprep.subr.bf16.mxu0 %v10863_v35 }
 0x36d   :  { %10896 = vmatprep.subr.bf16.mxu1 %v10895_v50 }
 0x36f   :  { %10866 = vmatpush3.bf16.msra.mxu0 %v10865_v39 }
 0x370   :  { %10898 = vmatpush3.bf16.msra.mxu1 %v10897_v57  ;;  %10899 = vmatprep.subr.bf16.mxu0 %v11089_v18 }
 0x372   :  { %7399 = vmatmul.mubr.f32.vlgmr.msra.gmra.mrb[46].mxu0 %v4005_v58 }
 0x373   :  { %7469 = vmatmul.mubr.f32.vlgmr.msra.gmra.mrb[46].mxu1 %v4013_v43  ;;  %10901 = vmatpush3.bf16.msra.mxu0 %v10900_v20  ;;  %v10921_v20 = vpack.c.bf16 %v7507_v8, %v7506_v1 }
 0x374   :  { %10902 = vmatprep.subr.bf16.mxu0 %v11089_v18  ;;  %9360 = vmatprep.mubr.msk.f32.mxu0 %vm11090_vm1, %v11088_v7  ;;  %v7579_v7 = vld [vmem:[#allocation11] sm:$0x1] }
 0x377   :  { %10904 = vmatpush3.bf16.msra.mxu0 %v10903_v22 }
 0x378   :  { %10905 = vmatprep.subr.bf16.mxu0 %v11089_v18 }
 0x37b   :  { %10907 = vmatpush3.bf16.msra.mxu0 %v10906_v29 }
 0x37c   :  { %10908 = vmatprep.subr.bf16.mxu0 %v11089_v18 }
 0x37f   :  { %10910 = vmatpush3.bf16.msra.mxu0 %v10909_v5 }
 0x380   :  { %10911 = vmatprep.subr.bf16.mxu0 %v11089_v18 }
 0x385   :  { %v8853_v0 = vpop.f32.mrb[34].mxu0 }
 0x386   :  { %v8888_v2 = vpop.f32.mrb[34].mxu1  ;;  %v8854_v55 = vpop.f32.mrb[35].mxu0 }
 0x387   :  { %v8889_v48 = vpop.f32.mrb[35].mxu1  ;;  %v8855_v6 = vadd.f32 %v8854_v55, %v8853_v0 }
 0x388   :  { %v8890_v51 = vadd.f32 %v8889_v48, %v8888_v2 }
 0x389   :  { %v6561_v9 = vadd.f32 %v8855_v6, %v6491_v27 }
 0x38b   :  { %v6631_v40 = vadd.f32 %v8890_v51, %v6561_v9  ;;  %v3621_v9 = vld [vmem:[#allocation2] sm:$0x1] }
 0x3a5   :  { %v8923_v11 = vpop.f32.mrb[36].mxu0 }
 0x3a6   :  { %v8958_v12 = vpop.f32.mrb[36].mxu1  ;;  %v8924_v13 = vpop.f32.mrb[37].mxu0 }
 0x3a7   :  { %v8959_v44 = vpop.f32.mrb[37].mxu1  ;;  %v8925_v61 = vadd.f32 %v8924_v13, %v8923_v11 }
 0x3a8   :  { %v8960_v53 = vadd.f32 %v8959_v44, %v8958_v12  ;;  %v7480_v12 = vld [vmem:[#allocation5] sm:$0x1]  ;;  %v7482_v44 = vld [vmem:[#allocation7] sm:$0x1] }
 0x3a9   :  { %v6701_v15 = vadd.f32 %v8925_v61, %v6631_v40 }
 0x3ab   :  { %v6771_v62 = vadd.f32 %v8960_v53, %v6701_v15 }
 0x3c5   :  { %v8993_v63 = vpop.f32.mrb[38].mxu0 }
 0x3c6   :  { %v9028_v60 = vpop.f32.mrb[38].mxu1  ;;  %v8994_v56 = vpop.f32.mrb[39].mxu0 }
 0x3c7   :  { %v9029_v16 = vpop.f32.mrb[39].mxu1  ;;  %v8995_v31 = vadd.f32 %v8994_v56, %v8993_v63  ;;  %v7500_v63 = vld [vmem:[#allocation8 + $0x40] sm:$0xff] }
 0x3c8   :  { %v9030_v17 = vadd.f32 %v9029_v16, %v9028_v60  ;;  %v7501_v60 = vld [vmem:[#allocation8 + $0x48] sm:$0xff]  ;;  %v7502_v16 = vld [vmem:[#allocation8 + $0x50] sm:$0xff] }
 0x3c9   :  { %v6841_v3 = vadd.f32 %v8995_v31, %v6771_v62  ;;  %v10912_v56 = vpack.c.bf16 %v7501_v60, %v7500_v63  ;;  %v7503_v31 = vld [vmem:[#allocation8 + $0x58] sm:$0xff] }
 0x3cb   :  { %v6911_v37 = vadd.f32 %v9030_v17, %v6841_v3  ;;  %10913 = vmatpush3.bf16.msra.mxu0 %v10912_v56  ;;  %v10915_v17 = vpack.c.bf16 %v7503_v31, %v7502_v16  ;;  %v7504_v3 = vld [vmem:[#allocation8 + $0x60] sm:$0xff] }
 0x3cc   :  { %10914 = vmatprep.subr.bf16.mxu0 %v11089_v18 }
 0x3cf   :  { %10916 = vmatpush3.bf16.msra.mxu0 %v10915_v17 }
 0x3d0   :  { %10917 = vmatprep.subr.bf16.mxu0 %v11089_v18 }
 0x3e5   :  { %v9063_v14 = vpop.f32.mrb[40].mxu0 }
 0x3e6   :  { %v9098_v28 = vpop.f32.mrb[40].mxu1  ;;  %v9064_v38 = vpop.f32.mrb[41].mxu0 }
 0x3e7   :  { %v9099_v30 = vpop.f32.mrb[41].mxu1  ;;  %v9065_v19 = vadd.f32 %v9064_v38, %v9063_v14 }
 0x3e8   :  { %v9100_v34 = vadd.f32 %v9099_v30, %v9098_v28  ;;  %v7586_v28 = vrot.slane %v7579_v7, %v11221_v59 }
 0x3e9   :  { %v6981_v36 = vadd.f32 %v9065_v19, %v6911_v37  ;;  %v7505_v37 = vld [vmem:[#allocation8 + $0x68] sm:$0xff] }
 0x3ea   :  { %v10918_v4 = vpack.c.bf16 %v7505_v37, %v7504_v3 }
 0x3eb   :  { %v7051_v21 = vadd.f32 %v9100_v34, %v6981_v36 }
 0x3ec   :  { %10919 = vmatpush3.bf16.msra.mxu0 %v10918_v4 }
 0x3ed   :  { %10920 = vmatprep.subr.bf16.mxu0 %v11089_v18 }
 0x3f0   :  { %10922 = vmatpush3.bf16.msra.mxu0 %v10921_v20 }
 0x405   :  { %v9133_v41 = vpop.f32.mrb[42].mxu0 }
 0x406   :  { %v9168_v42 = vpop.f32.mrb[42].mxu1  ;;  %v9134_v26 = vpop.f32.mrb[43].mxu0 }
 0x407   :  { %v9169_v45 = vpop.f32.mrb[43].mxu1  ;;  %v9135_v46 = vadd.f32 %v9134_v26, %v9133_v41 }
 0x408   :  { %v9170_v32 = vadd.f32 %v9169_v45, %v9168_v42 }
 0x409   :  { %v7121_v47 = vadd.f32 %v9135_v46, %v7051_v21 }
 0x40b   :  { %v7191_v49 = vadd.f32 %v9170_v32, %v7121_v47 }
 0x425   :  { %v9203_v23 = vpop.f32.mrb[44].mxu0 }
 0x426   :  { %v9238_v35 = vpop.f32.mrb[44].mxu1  ;;  %v9204_v50 = vpop.f32.mrb[45].mxu0 }
 0x427   :  { %v9239_v52 = vpop.f32.mrb[45].mxu1  ;;  %v9205_v27 = vadd.f32 %v9204_v50, %v9203_v23 }
 0x428   :  { %v9240_v39 = vadd.f32 %v9239_v52, %v9238_v35 }
 0x429   :  { %v7261_v57 = vadd.f32 %v9205_v27, %v7191_v49 }
 0x42b   :  { %v7331_v58 = vadd.f32 %v9240_v39, %v7261_v57 }
 0x445   :  { %v9273_v43 = vpop.f32.mrb[46].mxu0 }
 0x446   :  { %v9308_v0 = vpop.f32.mrb[46].mxu1  ;;  %v9274_v2 = vpop.f32.mrb[47].mxu0 }
 0x447   :  { %v9309_v55 = vpop.f32.mrb[47].mxu1  ;;  %v9275_v48 = vadd.f32 %v9274_v2, %v9273_v43 }
 0x448   :  { %v9310_v6 = vadd.f32 %v9309_v55, %v9308_v0 }
 0x449   :  { %v7401_v51 = vadd.f32 %v9275_v48, %v7331_v58 }
 0x44b   :  { %v7471_v40 = vadd.f32 %v9310_v6, %v7401_v51 }
 0x44d   :  { %v7474_v11 = vadd.f32 %v7471_v40, %v3621_v9 }
 0x44f   :  { %7475 = vst [vmem:[#allocation2] sm:$0x1] %v7474_v11 }
 0x456   :  { %v7479_v13 = vld [vmem:[#allocation2] sm:$0x1] }
 0x457   :  { %v7481_v61 = vmul.f32 %v7480_v12, %v7479_v13 }
 0x459   :  { %v7483_v53 = vsub.f32 %v7481_v61, %v7482_v44 }
 0x45b   :  { %v7484_v15 = vmul.f32 %v7483_v53, %v7483_v53 }
 0x45d   :  { %v7486_v62 = vsel %vm7485_vm0, %v7484_v15, 0.0 }
 0x45e   :  { %7487 = vadd.xlane.f32.xlu0 %v7486_v62 }
 0x462   :  { %7580 = vadd.xlane.f32.xlu0 %v7578_v54 }
 0x4eb   :  { %v7488_v22 = vpop.xlane.xlu0 %7487 }
 0x4ec   :  { %v7489_v24 = vadd.f32 1e-12, %v7488_v22 }
 0x4ee   :  { %10934 = vrsqrt.f32 %v7489_v24 }
 0x4ef   :  { %v7581_v29 = vpop.xlane.xlu0 %7580 }
 0x4f0   :  { %v7588_v38 = vmul.f32 %v7586_v28, %v7581_v29 }
 0x4f2   :  { %v7589_v30 = vadd.f32 %v7588_v38, %v7578_v54 }
 0x4f4   :  { %vm7590_vm2 = vcmp.gt.f32.partialorder %v7589_v30, 0.0 }
 0x4f8   :  { %v10935_v25 = vpop.eup %10934 }
 0x4f9   :  { %v7491_v14 = vmul.f32 %v10935_v25, %v7483_v53 }
 0x4fb   :  { %9361 = vmatmul.mubr.f32.vlgmr.msra.gmra.mrb[48].mxu0 %v7491_v14 }
 0x5ce   :  { %v7574_v33 = vpop.f32.mrb[48].mxu0 }
 0x5cf   :  { %v7594_v10 = vrot.slane %v7574_v33, %v11221_v59  ;;  %v9362_v18 = vpop.f32.mrb[49].mxu0 }
 0x5d1   :  { %v7595_v19 = vsel %vm7590_vm2, %v7594_v10, -1e+30 }
 0x5d2   :  { %7596 = vmax.xlane.f32.xlu1 %v7595_v19 }
 0x65f   :  { %v7597_v34 = vpop.xlane.xlu1 %7596 }
 0x660   :  { %v7598_v36 = vsub.f32 %v7595_v19, %v7597_v34 }
 0x662   :  { %v7599_v5 = vmul.f32 1.442695, %v7598_v36 }
 0x664   :  { %10936 = vpow2.f32 %v7599_v5 }
 0x66e   :  { %v10937_v21 = vpop.eup %10936 }
 0x66f   :  { %v7601_v41 = vsel %vm7590_vm2, %v10937_v21, 0.0 }
 0x670   :  { %7602 = vadd.xlane.f32.xlu1 %v7601_v41 }
 0x6fd   :  { %v7603_v42 = vpop.xlane.xlu1 %7602 }
 0x6fe   :  { %v7604_v26 = vmax.f32 %v7603_v42, 1e-30 }
 0x700   :  { %10938 = vrcp.f32 %v7604_v26 }
 0x70a   :  { %v10939_v45 = vpop.eup %10938 }
 0x70b   :  { %v7606_v46 = vmul.f32 %v10939_v45, %v7601_v41 }
 0x70d   :  { %v7607_v32 = vmul.f32 %v7606_v46, %v7578_v54  ;;  %v7614_v47 = vrot.slane %v7606_v46, 4 }
 0x70f   :  { %v7608_v49 = vrot.slane %v7607_v32, 4  ;;  %v7615_v23 = vadd.f32 %v7614_v47, %v7606_v46 }
 0x711   :  { %v7609_v59 = vadd.f32 %v7608_v49, %v7607_v32  ;;  %v7616_v35 = vrot.slane %v7615_v23, 2 }
 0x713   :  { %v7610_v50 = vrot.slane %v7609_v59, 2  ;;  %v7617_v52 = vadd.f32 %v7616_v35, %v7615_v23 }
 0x715   :  { %v7611_v27 = vadd.f32 %v7610_v50, %v7609_v59  ;;  %v7618_v39 = vrot.slane %v7617_v52, 1 }
 0x717   :  { %v7612_v57 = vrot.slane %v7611_v27, 1  ;;  %v7619_v58 = vadd.f32 %v7618_v39, %v7617_v52 }
 0x719   :  { %v7613_v43 = vadd.f32 %v7612_v57, %v7611_v27  ;;  %v7620_v0 = vmul.f32 %v7619_v58, %v7579_v7 }
 0x71b   :  { %v7621_v2 = vadd.f32 %v7620_v0, %v7613_v43 }
 0x71d   :  { %7622 = vst [vmem:[%s11551_s7] sm:$0x1] %v7621_v2 }
 0x71e   :  { %7627 = vsyncpa [#allocation4], 1 }
 0x71f   :  { %7628 = vsyncpa [#allocation6], 1 }
 0x720   :  { %7629 = vsyncpa [#allocation9], 1 }
 0x721   :  { %7630 = vsyncpa [#allocation12], 1 }

</bundles_post_ra>
